<compile_context>
chip_gen: v7x
topology: tpu7x:2x2x1
jax: 0.10.0
libtpu: 0.0.40
codegen_flags: <defaults>
</compile_context>

<pallas_src>
import jax
import jax.numpy as jnp
from jax.experimental import pallas as pl
from jax.experimental.pallas import tpu as pltpu

BN_EPS = 1e-5
NEG_SLOPE = 0.2
VMEM_LIMIT_BYTES = 32 * 1024 * 1024   # safe on v5e/v6e (128 MiB) and v7x (64 MiB)


# ---------------------------------------------------------------- tiling ----

def _pick_tile(dim, max_tile, granule):
    """Largest tile <= max_tile that divides `dim` and is a multiple of
    `granule`; falls back to the full dim (always a legal block shape)."""
    if dim <= max_tile:
        return dim
    t = (max_tile // granule) * granule
    while t >= granule:
        if dim % t == 0:
            return t
        t -= granule
    return dim


# ---------------------------------------------------------------- kernels ---

def _fused_conv_bn_lrelu_kernel(p_ref, w_ref, b_ref, g_ref, bt_ref, o_ref, acc_ref):
    """Single-pass path: grid = (Cout tiles, K tiles); the whole M dimension is
    resident in the accumulator, so BN stats over the full batch are exact."""
    k = pl.program_id(1)

    @pl.when(k == 0)
    def _():
        acc_ref[...] = jnp.zeros_like(acc_ref)

    acc_ref[...] += jnp.dot(p_ref[...], w_ref[...],
                            preferred_element_type=jnp.float32)

    @pl.when(k == pl.num_programs(1) - 1)
    def _():
        y = acc_ref[...] + b_ref[...]                              # (tm, tc) f32
        mean = jnp.mean(y, axis=0, keepdims=True)                  # (1, tc)
        var = jnp.maximum(jnp.mean(y * y, axis=0, keepdims=True) - mean * mean, 0.0)
        scale = g_ref[...] * jax.lax.rsqrt(var + BN_EPS)
        shift = bt_ref[...] - mean * scale
        z = y * scale + shift
        o_ref[...] = jnp.where(z >= 0.0, z, NEG_SLOPE * z).astype(o_ref.dtype)


def _matmul_bias_stats_kernel(p_ref, w_ref, b_ref, y_ref, sum_ref, sq_ref, acc_ref):
    """Two-pass fallback, pass 1: grid = (Cout tiles, M tiles, K tiles), K
    innermost.  Emits bf16 y; exact f32 per-channel sum / sum-of-squares are
    accumulated into blocks that stay resident across the (M, K) sweep."""
    m = pl.program_id(1)
    k = pl.program_id(2)
    k_last = pl.num_programs(2) - 1

    @pl.when(k == 0)
    def _():
        acc_ref[...] = jnp.zeros_like(acc_ref)

    acc_ref[...] += jnp.dot(p_ref[...], w_ref[...],
                            preferred_element_type=jnp.float32)

    @pl.when(jnp.logical_and(k == k_last, m == 0))
    def _():
        sum_ref[...] = jnp.zeros_like(sum_ref)
        sq_ref[...] = jnp.zeros_like(sq_ref)

    @pl.when(k == k_last)
    def _():
        y = acc_ref[...] + b_ref[...]
        y_ref[...] = y.astype(y_ref.dtype)                         # bf16 writeback
        sum_ref[...] += jnp.sum(y, axis=0, keepdims=True)          # exact f32 stats
        sq_ref[...] += jnp.sum(y * y, axis=0, keepdims=True)


def _bn_lrelu_kernel(y_ref, scale_ref, shift_ref, o_ref):
    y = y_ref[...] * scale_ref[...] + shift_ref[...]
    o_ref[...] = jnp.where(y >= 0.0, y, NEG_SLOPE * y).astype(o_ref.dtype)


def _head_kernel(f_ref, w_ref, b_ref, o_ref):
    # Fused 1x1 conv (512->1) + Linear(16->1): out[n] = sum_d f[n,d]*w_eff[d] + b_eff.
    f = f_ref[...].astype(jnp.float32)
    o_ref[...] = jnp.sum(f * w_ref[...], axis=1, keepdims=True) + b_ref[...]


# --------------------------------------------------------------- wrappers ---

def conv_bn_lrelu(patches, w_mat, bias, gamma, beta):
    """patches (M, K) bf16, w_mat (K, Cout) bf16, bias/gamma/beta (Cout,) f32.
    Returns bf16 activations (M, Cout) after train-mode BatchNorm + LeakyReLU."""
    M, K = patches.shape
    cout = w_mat.shape[1]

    tm = _pick_tile(M, 1024, 16)      # 16-row granule: full bf16 sublane packing
    tk = _pick_tile(K, 1024, 256)     # 256 granule: whole MXU chunks on v6e/v7x
    tc = _pick_tile(cout, 128, 128)   # 128: exposes parallel Cout tiles for v7x

    b_row = bias.reshape(1, -1)
    g_row = gamma.reshape(1, -1)
    bt_row = beta.reshape(1, -1)

    if tm == M:
        # ---- fused single-pass path (the common case at small batch) ----
        return pl.pallas_call(
            _fused_conv_bn_lrelu_kernel,
            grid=(cout // tc, K // tk),
            in_specs=[
                pl.BlockSpec((tm, tk), lambda c, k: (0, k)),
                pl.BlockSpec((tk, tc), lambda c, k: (k, c)),
                pl.BlockSpec((1, tc), lambda c, k: (0, c)),
                pl.BlockSpec((1, tc), lambda c, k: (0, c)),
                pl.BlockSpec((1, tc), lambda c, k: (0, c)),
            ],
            out_specs=pl.BlockSpec((tm, tc), lambda c, k: (0, c)),
            out_shape=jax.ShapeDtypeStruct((M, cout), jnp.bfloat16),
            scratch_shapes=[pltpu.VMEM((tm, tc), jnp.float32)],
            compiler_params=pltpu.CompilerParams(
                dimension_semantics=("parallel", "arbitrary"),
                vmem_limit_bytes=VMEM_LIMIT_BYTES),
        )(patches, w_mat, b_row, g_row, bt_row)

    # ---- two-pass fallback (M needs multiple tiles, i.e. larger batch) ----
    y, ssum, ssq = pl.pallas_call(
        _matmul_bias_stats_kernel,
        grid=(cout // tc, M // tm, K // tk),
        in_specs=[
            pl.BlockSpec((tm, tk), lambda c, m, k: (m, k)),
            pl.BlockSpec((tk, tc), lambda c, m, k: (k, c)),
            pl.BlockSpec((1, tc), lambda c, m, k: (0, c)),
        ],
        out_specs=[
            pl.BlockSpec((tm, tc), lambda c, m, k: (m, c)),
            pl.BlockSpec((1, tc), lambda c, m, k: (0, c)),
            pl.BlockSpec((1, tc), lambda c, m, k: (0, c)),
        ],
        out_shape=[
            jax.ShapeDtypeStruct((M, cout), jnp.bfloat16),
            jax.ShapeDtypeStruct((1, cout), jnp.float32),
            jax.ShapeDtypeStruct((1, cout), jnp.float32),
        ],
        scratch_shapes=[pltpu.VMEM((tm, tc), jnp.float32)],
        compiler_params=pltpu.CompilerParams(
            # M and K must stay sequential: the stats blocks are resident
            # across both axes (see review correctness note).
            dimension_semantics=("parallel", "arbitrary", "arbitrary"),
            vmem_limit_bytes=VMEM_LIMIT_BYTES),
    )(patches, w_mat, b_row)

    mean = ssum[0] / M
    var = jnp.maximum(ssq[0] / M - mean * mean, 0.0)
    scale = gamma * jax.lax.rsqrt(var + BN_EPS)
    shift = beta - mean * scale

    return pl.pallas_call(
        _bn_lrelu_kernel,
        grid=(M // tm, cout // tc),
        in_specs=[
            pl.BlockSpec((tm, tc), lambda m, c: (m, c)),
            pl.BlockSpec((1, tc), lambda m, c: (0, c)),
            pl.BlockSpec((1, tc), lambda m, c: (0, c)),
        ],
        out_specs=pl.BlockSpec((tm, tc), lambda m, c: (m, c)),
        out_shape=jax.ShapeDtypeStruct((M, cout), jnp.bfloat16),
        compiler_params=pltpu.CompilerParams(
            dimension_semantics=("parallel", "parallel"),
            vmem_limit_bytes=VMEM_LIMIT_BYTES),
    )(y, scale.reshape(1, -1), shift.reshape(1, -1))


def fused_head(feat, wc, bc, wl, bl):
    """feat (N, 16*512) bf16; wc (1,512,1,1); bc (1,); wl (1,16); bl (1,)."""
    n, d = feat.shape
    wc_vec = wc.reshape(-1).astype(jnp.float32)                  # (512,)
    wl_vec = wl.reshape(-1).astype(jnp.float32)                  # (16,)
    w_eff = (wl_vec[:, None] * wc_vec[None, :]).reshape(1, d)    # (1, 8192)
    b_eff = (bc[0] * jnp.sum(wl_vec) + bl[0]).reshape(1, 1)

    out = pl.pallas_call(
        _head_kernel,
        out_shape=jax.ShapeDtypeStruct((n, 1), jnp.float32),
        in_specs=[pl.BlockSpec(memory_space=pltpu.MemorySpace.VMEM)] * 3,
        out_specs=pl.BlockSpec(memory_space=pltpu.MemorySpace.VMEM),
        compiler_params=pltpu.CompilerParams(vmem_limit_bytes=VMEM_LIMIT_BYTES),
    )(feat, w_eff, b_eff)
    return out[:, 0]


# --------------------------------------------------------------- JAX glue ---

def im2col(x_nhwc, k, stride, pad):
    """x: (N, H, W, C) -> patches (N*Hout*Wout, k*k*C) in (kh, kw, Cin) order."""
    # TODO(synk): build patch tiles inside the matmul kernel via manual
    # make_async_copy of overlapping NHWC input windows (or k*k shifted matmul
    # accumulation) to eliminate the k^2 HBM read amplification of im2col.
    n, h, w, c = x_nhwc.shape
    xp = jnp.pad(x_nhwc, ((0, 0), (pad, pad), (pad, pad), (0, 0)))
    hout = (h + 2 * pad - k) // stride + 1
    wout = (w + 2 * pad - k) // stride + 1
    cols = []
    for i in range(k):
        for j in range(k):
            cols.append(xp[:, i::stride, j::stride, :][:, :hout, :wout, :])
    patches = jnp.stack(cols, axis=3)                 # (N, Hout, Wout, k*k, C)
    return patches.reshape(n * hout * wout, k * k * c), hout, wout


def init_params(key):
    """Deterministic synthetic parameters with PyTorch module shapes."""
    cfgs = [("ds1", 3, 64, 4), ("ds2", 64, 128, 4),
            ("ds3", 128, 256, 4), ("ds4", 256, 512, 3)]
    keys = jax.random.split(key, 2 * len(cfgs) + 4)
    params, ki = {}, 0
    for name, cin, cout, k in cfgs:
        w = 0.02 * jax.random.normal(keys[ki], (cout, cin, k, k), jnp.float32); ki += 1
        b = 0.02 * jax.random.normal(keys[ki], (cout,), jnp.float32); ki += 1
        gamma = jnp.ones((cout,), jnp.float32)        # BatchNorm2d default init
        beta = jnp.zeros((cout,), jnp.float32)
        params[name] = (w, b, gamma, beta)
    params["conv"] = (
        0.02 * jax.random.normal(keys[ki + 0], (1, 512, 1, 1), jnp.float32),
        0.02 * jax.random.normal(keys[ki + 1], (1,), jnp.float32),
    )
    params["out"] = (
        0.02 * jax.random.normal(keys[ki + 2], (1, 16), jnp.float32),
        0.02 * jax.random.normal(keys[ki + 3], (1,), jnp.float32),
    )
    return params


def discriminator32_forward(x_nchw, params):
    x = jnp.transpose(x_nchw, (0, 2, 3, 1)).astype(jnp.float32)   # NCHW -> NHWC
    n = x.shape[0]
    layer_cfgs = [("ds1", 4, 2, 1), ("ds2", 4, 2, 1),
                  ("ds3", 4, 2, 1), ("ds4", 3, 1, 1)]
    for name, k, s, p in layer_cfgs:
        w, b, gamma, beta = params[name]
        cout = w.shape[0]
        patches, hout, wout = im2col(x, k, s, p)
        # torch (Cout, Cin, kh, kw) -> (kh*kw*Cin, Cout) matching the patch order
        w_mat = jnp.transpose(w, (2, 3, 1, 0)).reshape(-1, cout)

        # Pad K to a multiple of 128 (ds1: 48 -> 128) with zero rows/cols so the
        # contraction is lane-dense and fills whole MXU chunks; result unchanged.
        kdim = patches.shape[1]
        k_pad = -(-kdim // 128) * 128
        if k_pad != kdim:
            patches = jnp.pad(patches, ((0, 0), (0, k_pad - kdim)))
            w_mat = jnp.pad(w_mat, ((0, k_pad - kdim), (0, 0)))

        # Pad Cout to a multiple of 128 so output stores are lane-dense
        # (ds1: 64 -> 128).  Padded channels stay exactly zero, sliced off below.
        cout_pad = -(-cout // 128) * 128
        if cout_pad != cout:
            extra = cout_pad - cout
            w_mat = jnp.pad(w_mat, ((0, 0), (0, extra)))
            b = jnp.pad(b, (0, extra))
            gamma = jnp.pad(gamma, (0, extra), constant_values=1.0)
            beta = jnp.pad(beta, (0, extra))

        patches = patches.astype(jnp.bfloat16)        # bf16 MXU inputs, f32 acc
        y = conv_bn_lrelu(patches, w_mat.astype(jnp.bfloat16), b, gamma, beta)
        x = y.reshape(n, hout, wout, cout_pad)[..., :cout]

    # Head: 1x1 conv 512->1 over the 4x4 map, view(-1,16), Linear(16,1).
    # torch view(-1, 16) flattens H,W (C == 1), so the NHWC flatten below matches.
    wc, bc = params["conv"]
    wl, bl = params["out"]
    feat = x.reshape(n, 4 * 4 * 512)
    return fused_head(feat, wc, bc, wl, bl)           # (N,), i.e. squeeze(-1)


if __name__ == "__main__":
    key = jax.random.PRNGKey(0)
    kx, kp = jax.random.split(key)
    x = jax.random.normal(kx, (2, 3, 32, 32), jnp.float32)  # Discriminator32 expects 32x32x3
    params = init_params(kp)

    out = jax.jit(discriminator32_forward)(x, params)
    out = jax.block_until_ready(out)
    assert out.shape == (2,) and out.dtype == jnp.float32
    print("KERNEL_OK")
</pallas_src>

<mosaic_0001>
module attributes {stable_mosaic.version = 11 : i64} {
  func.func @_fused_conv_bn_lrelu_kernel(%arg0: i32, %arg1: i32, %arg2: memref<512x128xbf16, #tpu.memory_space<vmem>>, %arg3: memref<128x128xbf16, #tpu.memory_space<vmem>>, %arg4: memref<1x128xf32, #tpu.memory_space<vmem>>, %arg5: memref<1x128xf32, #tpu.memory_space<vmem>>, %arg6: memref<1x128xf32, #tpu.memory_space<vmem>>, %arg7: memref<512x128xbf16, #tpu.memory_space<vmem>>, %arg8: memref<512x128xf32, #tpu.memory_space<vmem>>) attributes {dimension_semantics = [#tpu.dimension_semantics<parallel>, #tpu.dimension_semantics<arbitrary>], iteration_bounds = array<i64: 1, 1>, scalar_prefetch = 0 : i64, scratch_operands = 1 : i64, tpu.core_type = #tpu.core_type<tc>, window_params = [{transform_indices = @transform_0, window_bounds = array<i64: 512, 128>}, {transform_indices = @transform_1, window_bounds = array<i64: 128, 128>}, {transform_indices = @transform_2, window_bounds = array<i64: 1, 128>}, {transform_indices = @transform_3, window_bounds = array<i64: 1, 128>}, {transform_indices = @transform_4, window_bounds = array<i64: 1, 128>}, {transform_indices = @transform_5, window_bounds = array<i64: 512, 128>}]} {
    %c0_i32 = arith.constant 0 : i32
    %0 = arith.cmpi eq, %arg1, %c0_i32 : i32
    %1 = arith.extui %0 : i1 to i32
    %c0_i32_0 = arith.constant 0 : i32
    %2 = arith.cmpi ne, %1, %c0_i32_0 : i32
    scf.if %2 {
      %cst_10 = arith.constant 0.000000e+00 : f32
      %12 = vector.broadcast %cst_10 : f32 to vector<512x128xf32>
      %c0_11 = arith.constant 0 : index
      %c0_12 = arith.constant 0 : index
      %13 = vector.load %arg8[%c0_11, %c0_12] : memref<512x128xf32, #tpu.memory_space<vmem>>, vector<512x128xf32>
      tpu.vector_store %arg8[%c0_11, %c0_12], %12 {strides = array<i32>} : memref<512x128xf32, #tpu.memory_space<vmem>>, vector<512x128xf32>,
    } else {
    }
    %c0 = arith.constant 0 : index
    %c0_1 = arith.constant 0 : index
    %3 = vector.load %arg8[%c0, %c0_1] : memref<512x128xf32, #tpu.memory_space<vmem>>, vector<512x128xf32>
    %c0_2 = arith.constant 0 : index
    %c0_3 = arith.constant 0 : index
    %4 = vector.load %arg2[%c0_2, %c0_3] : memref<512x128xbf16, #tpu.memory_space<vmem>>, vector<512x128xbf16>
    %c0_4 = arith.constant 0 : index
    %c0_5 = arith.constant 0 : index
    %5 = vector.load %arg3[%c0_4, %c0_5] : memref<128x128xbf16, #tpu.memory_space<vmem>>, vector<128x128xbf16>
    %cst = arith.constant dense<0.000000e+00> : vector<512x128xf32>
    %6 = tpu.matmul %4, %5, %cst {dimension_numbers = #tpu.dot_dimension_numbers<[1], [0], [0], [1], [0, 0, 1, 1], [], []>} : vector<512x128xbf16>, vector<128x128xbf16>, vector<512x128xf32> -> vector<512x128xf32>
    %7 = arith.addf %3, %6 : vector<512x128xf32>
    %c0_6 = arith.constant 0 : index
    %c0_7 = arith.constant 0 : index
    %8 = vector.load %arg8[%c0_6, %c0_7] : memref<512x128xf32, #tpu.memory_space<vmem>>, vector<512x128xf32>
    tpu.vector_store %arg8[%c0_6, %c0_7], %7 {strides = array<i32>} : memref<512x128xf32, #tpu.memory_space<vmem>>, vector<512x128xf32>,
    %c0_i32_8 = arith.constant 0 : i32
    %9 = arith.cmpi eq, %arg1, %c0_i32_8 : i32
    %10 = arith.extui %9 : i1 to i32
    %c0_i32_9 = arith.constant 0 : i32
    %11 = arith.cmpi ne, %10, %c0_i32_9 : i32
    scf.if %11 {
      %c0_10 = arith.constant 0 : index
      %c0_11 = arith.constant 0 : index
      %12 = vector.load %arg8[%c0_10, %c0_11] : memref<512x128xf32, #tpu.memory_space<vmem>>, vector<512x128xf32>
      %c0_12 = arith.constant 0 : index
      %c0_13 = arith.constant 0 : index
      %13 = vector.load %arg4[%c0_12, %c0_13] : memref<1x128xf32, #tpu.memory_space<vmem>>, vector<1x128xf32>
      %14 = vector.broadcast %13 : vector<1x128xf32> to vector<512x128xf32>
      %15 = arith.addf %12, %14 : vector<512x128xf32>
      %cst_14 = arith.constant dense<0.000000e+00> : vector<128xf32>
      %16 = vector.multi_reduction <add>, %15, %cst_14 [0] : vector<512x128xf32> to vector<128xf32>
      %17 = vector.shape_cast %16 : vector<128xf32> to vector<1x128xf32>
      %cst_15 = arith.constant 5.120000e+02 : f32
      %18 = vector.broadcast %cst_15 : f32 to vector<1x128xf32>
      %19 = arith.divf %17, %18 : vector<1x128xf32>
      %20 = arith.mulf %15, %15 : vector<512x128xf32>
      %cst_16 = arith.constant dense<0.000000e+00> : vector<128xf32>
      %21 = vector.multi_reduction <add>, %20, %cst_16 [0] : vector<512x128xf32> to vector<128xf32>
      %22 = vector.shape_cast %21 : vector<128xf32> to vector<1x128xf32>
      %cst_17 = arith.constant 5.120000e+02 : f32
      %23 = vector.broadcast %cst_17 : f32 to vector<1x128xf32>
      %24 = arith.divf %22, %23 : vector<1x128xf32>
      %25 = arith.mulf %19, %19 : vector<1x128xf32>
      %26 = arith.subf %24, %25 : vector<1x128xf32>
      %cst_18 = arith.constant 0.000000e+00 : f32
      %27 = vector.broadcast %cst_18 : f32 to vector<1x128xf32>
      %28 = arith.maximumf %26, %27 : vector<1x128xf32>
      %c0_19 = arith.constant 0 : index
      %c0_20 = arith.constant 0 : index
      %29 = vector.load %arg5[%c0_19, %c0_20] : memref<1x128xf32, #tpu.memory_space<vmem>>, vector<1x128xf32>
      %cst_21 = arith.constant 9.99999974E-6 : f32
      %30 = vector.broadcast %cst_21 : f32 to vector<1x128xf32>
      %31 = arith.addf %28, %30 : vector<1x128xf32>
      %32 = math.rsqrt %31 : vector<1x128xf32>
      %33 = arith.mulf %29, %32 : vector<1x128xf32>
      %c0_22 = arith.constant 0 : index
      %c0_23 = arith.constant 0 : index
      %34 = vector.load %arg6[%c0_22, %c0_23] : memref<1x128xf32, #tpu.memory_space<vmem>>, vector<1x128xf32>
      %35 = arith.mulf %19, %33 : vector<1x128xf32>
      %36 = arith.subf %34, %35 : vector<1x128xf32>
      %37 = vector.broadcast %33 : vector<1x128xf32> to vector<512x128xf32>
      %38 = arith.mulf %15, %37 : vector<512x128xf32>
      %39 = vector.broadcast %36 : vector<1x128xf32> to vector<512x128xf32>
      %40 = arith.addf %38, %39 : vector<512x128xf32>
      %cst_24 = arith.constant 0.000000e+00 : f32
      %41 = vector.broadcast %cst_24 : f32 to vector<512x128xf32>
      %42 = arith.cmpf oge, %40, %41 : vector<512x128xf32>
      %cst_25 = arith.constant 2.000000e-01 : f32
      %43 = vector.broadcast %cst_25 : f32 to vector<512x128xf32>
      %44 = arith.mulf %43, %40 : vector<512x128xf32>
      %45 = arith.select %42, %40, %44 : vector<512x128xi1>, vector<512x128xf32>
      %46 = arith.truncf %45 : vector<512x128xf32> to vector<512x128xbf16>
      %c0_26 = arith.constant 0 : index
      %c0_27 = arith.constant 0 : index
      %47 = vector.load %arg7[%c0_26, %c0_27] : memref<512x128xbf16, #tpu.memory_space<vmem>>, vector<512x128xbf16>
      tpu.vector_store %arg7[%c0_26, %c0_27], %46 {strides = array<i32>} : memref<512x128xbf16, #tpu.memory_space<vmem>>, vector<512x128xbf16>,
    } else {
    }
    return
  }
  func.func @transform_0(%arg0: i32, %arg1: i32) -> (i32, i32) {
    %c0_i32 = arith.constant 0 : i32
    %c0_i32_0 = arith.constant 0 : i32
    return %c0_i32, %arg1 : i32, i32
  }
  func.func @transform_1(%arg0: i32, %arg1: i32) -> (i32, i32) {
    %c0_i32 = arith.constant 0 : i32
    return %arg1, %arg0 : i32, i32
  }
  func.func @transform_2(%arg0: i32, %arg1: i32) -> (i32, i32) {
    %c0_i32 = arith.constant 0 : i32
    %c0_i32_0 = arith.constant 0 : i32
    return %c0_i32, %arg0 : i32, i32
  }
  func.func @transform_3(%arg0: i32, %arg1: i32) -> (i32, i32) {
    %c0_i32 = arith.constant 0 : i32
    %c0_i32_0 = arith.constant 0 : i32
    return %c0_i32, %arg0 : i32, i32
  }
  func.func @transform_4(%arg0: i32, %arg1: i32) -> (i32, i32) {
    %c0_i32 = arith.constant 0 : i32
    %c0_i32_0 = arith.constant 0 : i32
    return %c0_i32, %arg0 : i32, i32
  }
  func.func @transform_5(%arg0: i32, %arg1: i32) -> (i32, i32) {
    %c0_i32 = arith.constant 0 : i32
    %c0_i32_0 = arith.constant 0 : i32
    return %c0_i32, %arg0 : i32, i32
  }
}

module attributes {stable_mosaic.version = 11 : i64} {
  func.func @_fused_conv_bn_lrelu_kernel(%arg0: i32, %arg1: i32, %arg2: memref<128x1024xbf16, #tpu.memory_space<vmem>>, %arg3: memref<1024x128xbf16, #tpu.memory_space<vmem>>, %arg4: memref<1x128xf32, #tpu.memory_space<vmem>>, %arg5: memref<1x128xf32, #tpu.memory_space<vmem>>, %arg6: memref<1x128xf32, #tpu.memory_space<vmem>>, %arg7: memref<128x128xbf16, #tpu.memory_space<vmem>>, %arg8: memref<128x128xf32, #tpu.memory_space<vmem>>) attributes {dimension_semantics = [#tpu.dimension_semantics<parallel>, #tpu.dimension_semantics<arbitrary>], iteration_bounds = array<i64: 1, 1>, scalar_prefetch = 0 : i64, scratch_operands = 1 : i64, tpu.core_type = #tpu.core_type<tc>, window_params = [{transform_indices = @transform_0, window_bounds = array<i64: 128, 1024>}, {transform_indices = @transform_1, window_bounds = array<i64: 1024, 128>}, {transform_indices = @transform_2, window_bounds = array<i64: 1, 128>}, {transform_indices = @transform_3, window_bounds = array<i64: 1, 128>}, {transform_indices = @transform_4, window_bounds = array<i64: 1, 128>}, {transform_indices = @transform_5, window_bounds = array<i64: 128, 128>}]} {
    %c0_i32 = arith.constant 0 : i32
    %0 = arith.cmpi eq, %arg1, %c0_i32 : i32
    %1 = arith.extui %0 : i1 to i32
    %c0_i32_0 = arith.constant 0 : i32
    %2 = arith.cmpi ne, %1, %c0_i32_0 : i32
    scf.if %2 {
      %cst_10 = arith.constant 0.000000e+00 : f32
      %12 = vector.broadcast %cst_10 : f32 to vector<128x128xf32>
      %c0_11 = arith.constant 0 : index
      %c0_12 = arith.constant 0 : index
      %13 = vector.load %arg8[%c0_11, %c0_12] : memref<128x128xf32, #tpu.memory_space<vmem>>, vector<128x128xf32>
      tpu.vector_store %arg8[%c0_11, %c0_12], %12 {strides = array<i32>} : memref<128x128xf32, #tpu.memory_space<vmem>>, vector<128x128xf32>,
    } else {
    }
    %c0 = arith.constant 0 : index
    %c0_1 = arith.constant 0 : index
    %3 = vector.load %arg8[%c0, %c0_1] : memref<128x128xf32, #tpu.memory_space<vmem>>, vector<128x128xf32>
    %c0_2 = arith.constant 0 : index
    %c0_3 = arith.constant 0 : index
    %4 = vector.load %arg2[%c0_2, %c0_3] : memref<128x1024xbf16, #tpu.memory_space<vmem>>, vector<128x1024xbf16>
    %c0_4 = arith.constant 0 : index
    %c0_5 = arith.constant 0 : index
    %5 = vector.load %arg3[%c0_4, %c0_5] : memref<1024x128xbf16, #tpu.memory_space<vmem>>, vector<1024x128xbf16>
    %cst = arith.constant dense<0.000000e+00> : vector<128x128xf32>
    %6 = tpu.matmul %4, %5, %cst {dimension_numbers = #tpu.dot_dimension_numbers<[1], [0], [0], [1], [0, 0, 1, 1], [], []>} : vector<128x1024xbf16>, vector<1024x128xbf16>, vector<128x128xf32> -> vector<128x128xf32>
    %7 = arith.addf %3, %6 : vector<128x128xf32>
    %c0_6 = arith.constant 0 : index
    %c0_7 = arith.constant 0 : index
    %8 = vector.load %arg8[%c0_6, %c0_7] : memref<128x128xf32, #tpu.memory_space<vmem>>, vector<128x128xf32>
    tpu.vector_store %arg8[%c0_6, %c0_7], %7 {strides = array<i32>} : memref<128x128xf32, #tpu.memory_space<vmem>>, vector<128x128xf32>,
    %c0_i32_8 = arith.constant 0 : i32
    %9 = arith.cmpi eq, %arg1, %c0_i32_8 : i32
    %10 = arith.extui %9 : i1 to i32
    %c0_i32_9 = arith.constant 0 : i32
    %11 = arith.cmpi ne, %10, %c0_i32_9 : i32
    scf.if %11 {
      %c0_10 = arith.constant 0 : index
      %c0_11 = arith.constant 0 : index
      %12 = vector.load %arg8[%c0_10, %c0_11] : memref<128x128xf32, #tpu.memory_space<vmem>>, vector<128x128xf32>
      %c0_12 = arith.constant 0 : index
      %c0_13 = arith.constant 0 : index
      %13 = vector.load %arg4[%c0_12, %c0_13] : memref<1x128xf32, #tpu.memory_space<vmem>>, vector<1x128xf32>
      %14 = vector.broadcast %13 : vector<1x128xf32> to vector<128x128xf32>
      %15 = arith.addf %12, %14 : vector<128x128xf32>
      %cst_14 = arith.constant dense<0.000000e+00> : vector<128xf32>
      %16 = vector.multi_reduction <add>, %15, %cst_14 [0] : vector<128x128xf32> to vector<128xf32>
      %17 = vector.shape_cast %16 : vector<128xf32> to vector<1x128xf32>
      %cst_15 = arith.constant 1.280000e+02 : f32
      %18 = vector.broadcast %cst_15 : f32 to vector<1x128xf32>
      %19 = arith.divf %17, %18 : vector<1x128xf32>
      %20 = arith.mulf %15, %15 : vector<128x128xf32>
      %cst_16 = arith.constant dense<0.000000e+00> : vector<128xf32>
      %21 = vector.multi_reduction <add>, %20, %cst_16 [0] : vector<128x128xf32> to vector<128xf32>
      %22 = vector.shape_cast %21 : vector<128xf32> to vector<1x128xf32>
      %cst_17 = arith.constant 1.280000e+02 : f32
      %23 = vector.broadcast %cst_17 : f32 to vector<1x128xf32>
      %24 = arith.divf %22, %23 : vector<1x128xf32>
      %25 = arith.mulf %19, %19 : vector<1x128xf32>
      %26 = arith.subf %24, %25 : vector<1x128xf32>
      %cst_18 = arith.constant 0.000000e+00 : f32
      %27 = vector.broadcast %cst_18 : f32 to vector<1x128xf32>
      %28 = arith.maximumf %26, %27 : vector<1x128xf32>
      %c0_19 = arith.constant 0 : index
      %c0_20 = arith.constant 0 : index
      %29 = vector.load %arg5[%c0_19, %c0_20] : memref<1x128xf32, #tpu.memory_space<vmem>>, vector<1x128xf32>
      %cst_21 = arith.constant 9.99999974E-6 : f32
      %30 = vector.broadcast %cst_21 : f32 to vector<1x128xf32>
      %31 = arith.addf %28, %30 : vector<1x128xf32>
      %32 = math.rsqrt %31 : vector<1x128xf32>
      %33 = arith.mulf %29, %32 : vector<1x128xf32>
      %c0_22 = arith.constant 0 : index
      %c0_23 = arith.constant 0 : index
      %34 = vector.load %arg6[%c0_22, %c0_23] : memref<1x128xf32, #tpu.memory_space<vmem>>, vector<1x128xf32>
      %35 = arith.mulf %19, %33 : vector<1x128xf32>
      %36 = arith.subf %34, %35 : vector<1x128xf32>
      %37 = vector.broadcast %33 : vector<1x128xf32> to vector<128x128xf32>
      %38 = arith.mulf %15, %37 : vector<128x128xf32>
      %39 = vector.broadcast %36 : vector<1x128xf32> to vector<128x128xf32>
      %40 = arith.addf %38, %39 : vector<128x128xf32>
      %cst_24 = arith.constant 0.000000e+00 : f32
      %41 = vector.broadcast %cst_24 : f32 to vector<128x128xf32>
      %42 = arith.cmpf oge, %40, %41 : vector<128x128xf32>
      %cst_25 = arith.constant 2.000000e-01 : f32
      %43 = vector.broadcast %cst_25 : f32 to vector<128x128xf32>
      %44 = arith.mulf %43, %40 : vector<128x128xf32>
      %45 = arith.select %42, %40, %44 : vector<128x128xi1>, vector<128x128xf32>
      %46 = arith.truncf %45 : vector<128x128xf32> to vector<128x128xbf16>
      %c0_26 = arith.constant 0 : index
      %c0_27 = arith.constant 0 : index
      %47 = vector.load %arg7[%c0_26, %c0_27] : memref<128x128xbf16, #tpu.memory_space<vmem>>, vector<128x128xbf16>
      tpu.vector_store %arg7[%c0_26, %c0_27], %46 {strides = array<i32>} : memref<128x128xbf16, #tpu.memory_space<vmem>>, vector<128x128xbf16>,
    } else {
    }
    return
  }
  func.func @transform_0(%arg0: i32, %arg1: i32) -> (i32, i32) {
    %c0_i32 = arith.constant 0 : i32
    %c0_i32_0 = arith.constant 0 : i32
    return %c0_i32, %arg1 : i32, i32
  }
  func.func @transform_1(%arg0: i32, %arg1: i32) -> (i32, i32) {
    %c0_i32 = arith.constant 0 : i32
    return %arg1, %arg0 : i32, i32
  }
  func.func @transform_2(%arg0: i32, %arg1: i32) -> (i32, i32) {
    %c0_i32 = arith.constant 0 : i32
    %c0_i32_0 = arith.constant 0 : i32
    return %c0_i32, %arg0 : i32, i32
  }
  func.func @transform_3(%arg0: i32, %arg1: i32) -> (i32, i32) {
    %c0_i32 = arith.constant 0 : i32
    %c0_i32_0 = arith.constant 0 : i32
    return %c0_i32, %arg0 : i32, i32
  }
  func.func @transform_4(%arg0: i32, %arg1: i32) -> (i32, i32) {
    %c0_i32 = arith.constant 0 : i32
    %c0_i32_0 = arith.constant 0 : i32
    return %c0_i32, %arg0 : i32, i32
  }
  func.func @transform_5(%arg0: i32, %arg1: i32) -> (i32, i32) {
    %c0_i32 = arith.constant 0 : i32
    %c0_i32_0 = arith.constant 0 : i32
    return %c0_i32, %arg0 : i32, i32
  }
}

module attributes {stable_mosaic.version = 11 : i64} {
  func.func @_fused_conv_bn_lrelu_kernel(%arg0: i32, %arg1: i32, %arg2: memref<32x1024xbf16, #tpu.memory_space<vmem>>, %arg3: memref<1024x128xbf16, #tpu.memory_space<vmem>>, %arg4: memref<1x128xf32, #tpu.memory_space<vmem>>, %arg5: memref<1x128xf32, #tpu.memory_space<vmem>>, %arg6: memref<1x128xf32, #tpu.memory_space<vmem>>, %arg7: memref<32x128xbf16, #tpu.memory_space<vmem>>, %arg8: memref<32x128xf32, #tpu.memory_space<vmem>>) attributes {dimension_semantics = [#tpu.dimension_semantics<parallel>, #tpu.dimension_semantics<arbitrary>], iteration_bounds = array<i64: 2, 2>, scalar_prefetch = 0 : i64, scratch_operands = 1 : i64, tpu.core_type = #tpu.core_type<tc>, window_params = [{transform_indices = @transform_0, window_bounds = array<i64: 32, 1024>}, {transform_indices = @transform_1, window_bounds = array<i64: 1024, 128>}, {transform_indices = @transform_2, window_bounds = array<i64: 1, 128>}, {transform_indices = @transform_3, window_bounds = array<i64: 1, 128>}, {transform_indices = @transform_4, window_bounds = array<i64: 1, 128>}, {transform_indices = @transform_5, window_bounds = array<i64: 32, 128>}]} {
    %c0_i32 = arith.constant 0 : i32
    %0 = arith.cmpi eq, %arg1, %c0_i32 : i32
    %1 = arith.extui %0 : i1 to i32
    %c0_i32_0 = arith.constant 0 : i32
    %2 = arith.cmpi ne, %1, %c0_i32_0 : i32
    scf.if %2 {
      %cst_9 = arith.constant 0.000000e+00 : f32
      %12 = vector.broadcast %cst_9 : f32 to vector<32x128xf32>
      %c0_10 = arith.constant 0 : index
      %c0_11 = arith.constant 0 : index
      %13 = vector.load %arg8[%c0_10, %c0_11] : memref<32x128xf32, #tpu.memory_space<vmem>>, vector<32x128xf32>
      tpu.vector_store %arg8[%c0_10, %c0_11], %12 {strides = array<i32>} : memref<32x128xf32, #tpu.memory_space<vmem>>, vector<32x128xf32>,
    } else {
    }
    %c0 = arith.constant 0 : index
    %c0_1 = arith.constant 0 : index
    %3 = vector.load %arg8[%c0, %c0_1] : memref<32x128xf32, #tpu.memory_space<vmem>>, vector<32x128xf32>
    %c0_2 = arith.constant 0 : index
    %c0_3 = arith.constant 0 : index
    %4 = vector.load %arg2[%c0_2, %c0_3] : memref<32x1024xbf16, #tpu.memory_space<vmem>>, vector<32x1024xbf16>
    %c0_4 = arith.constant 0 : index
    %c0_5 = arith.constant 0 : index
    %5 = vector.load %arg3[%c0_4, %c0_5] : memref<1024x128xbf16, #tpu.memory_space<vmem>>, vector<1024x128xbf16>
    %cst = arith.constant dense<0.000000e+00> : vector<32x128xf32>
    %6 = tpu.matmul %4, %5, %cst {dimension_numbers = #tpu.dot_dimension_numbers<[1], [0], [0], [1], [0, 0, 1, 1], [], []>} : vector<32x1024xbf16>, vector<1024x128xbf16>, vector<32x128xf32> -> vector<32x128xf32>
    %7 = arith.addf %3, %6 : vector<32x128xf32>
    %c0_6 = arith.constant 0 : index
    %c0_7 = arith.constant 0 : index
    %8 = vector.load %arg8[%c0_6, %c0_7] : memref<32x128xf32, #tpu.memory_space<vmem>>, vector<32x128xf32>
    tpu.vector_store %arg8[%c0_6, %c0_7], %7 {strides = array<i32>} : memref<32x128xf32, #tpu.memory_space<vmem>>, vector<32x128xf32>,
    %c1_i32 = arith.constant 1 : i32
    %9 = arith.cmpi eq, %arg1, %c1_i32 : i32
    %10 = arith.extui %9 : i1 to i32
    %c0_i32_8 = arith.constant 0 : i32
    %11 = arith.cmpi ne, %10, %c0_i32_8 : i32
    scf.if %11 {
      %c0_9 = arith.constant 0 : index
      %c0_10 = arith.constant 0 : index
      %12 = vector.load %arg8[%c0_9, %c0_10] : memref<32x128xf32, #tpu.memory_space<vmem>>, vector<32x128xf32>
      %c0_11 = arith.constant 0 : index
      %c0_12 = arith.constant 0 : index
      %13 = vector.load %arg4[%c0_11, %c0_12] : memref<1x128xf32, #tpu.memory_space<vmem>>, vector<1x128xf32>
      %14 = vector.broadcast %13 : vector<1x128xf32> to vector<32x128xf32>
      %15 = arith.addf %12, %14 : vector<32x128xf32>
      %cst_13 = arith.constant dense<0.000000e+00> : vector<128xf32>
      %16 = vector.multi_reduction <add>, %15, %cst_13 [0] : vector<32x128xf32> to vector<128xf32>
      %17 = vector.shape_cast %16 : vector<128xf32> to vector<1x128xf32>
      %cst_14 = arith.constant 3.200000e+01 : f32
      %18 = vector.broadcast %cst_14 : f32 to vector<1x128xf32>
      %19 = arith.divf %17, %18 : vector<1x128xf32>
      %20 = arith.mulf %15, %15 : vector<32x128xf32>
      %cst_15 = arith.constant dense<0.000000e+00> : vector<128xf32>
      %21 = vector.multi_reduction <add>, %20, %cst_15 [0] : vector<32x128xf32> to vector<128xf32>
      %22 = vector.shape_cast %21 : vector<128xf32> to vector<1x128xf32>
      %cst_16 = arith.constant 3.200000e+01 : f32
      %23 = vector.broadcast %cst_16 : f32 to vector<1x128xf32>
      %24 = arith.divf %22, %23 : vector<1x128xf32>
      %25 = arith.mulf %19, %19 : vector<1x128xf32>
      %26 = arith.subf %24, %25 : vector<1x128xf32>
      %cst_17 = arith.constant 0.000000e+00 : f32
      %27 = vector.broadcast %cst_17 : f32 to vector<1x128xf32>
      %28 = arith.maximumf %26, %27 : vector<1x128xf32>
      %c0_18 = arith.constant 0 : index
      %c0_19 = arith.constant 0 : index
      %29 = vector.load %arg5[%c0_18, %c0_19] : memref<1x128xf32, #tpu.memory_space<vmem>>, vector<1x128xf32>
      %cst_20 = arith.constant 9.99999974E-6 : f32
      %30 = vector.broadcast %cst_20 : f32 to vector<1x128xf32>
      %31 = arith.addf %28, %30 : vector<1x128xf32>
      %32 = math.rsqrt %31 : vector<1x128xf32>
      %33 = arith.mulf %29, %32 : vector<1x128xf32>
      %c0_21 = arith.constant 0 : index
      %c0_22 = arith.constant 0 : index
      %34 = vector.load %arg6[%c0_21, %c0_22] : memref<1x128xf32, #tpu.memory_space<vmem>>, vector<1x128xf32>
      %35 = arith.mulf %19, %33 : vector<1x128xf32>
      %36 = arith.subf %34, %35 : vector<1x128xf32>
      %37 = vector.broadcast %33 : vector<1x128xf32> to vector<32x128xf32>
      %38 = arith.mulf %15, %37 : vector<32x128xf32>
      %39 = vector.broadcast %36 : vector<1x128xf32> to vector<32x128xf32>
      %40 = arith.addf %38, %39 : vector<32x128xf32>
      %cst_23 = arith.constant 0.000000e+00 : f32
      %41 = vector.broadcast %cst_23 : f32 to vector<32x128xf32>
      %42 = arith.cmpf oge, %40, %41 : vector<32x128xf32>
      %cst_24 = arith.constant 2.000000e-01 : f32
      %43 = vector.broadcast %cst_24 : f32 to vector<32x128xf32>
      %44 = arith.mulf %43, %40 : vector<32x128xf32>
      %45 = arith.select %42, %40, %44 : vector<32x128xi1>, vector<32x128xf32>
      %46 = arith.truncf %45 : vector<32x128xf32> to vector<32x128xbf16>
      %c0_25 = arith.constant 0 : index
      %c0_26 = arith.constant 0 : index
      %47 = vector.load %arg7[%c0_25, %c0_26] : memref<32x128xbf16, #tpu.memory_space<vmem>>, vector<32x128xbf16>
      tpu.vector_store %arg7[%c0_25, %c0_26], %46 {strides = array<i32>} : memref<32x128xbf16, #tpu.memory_space<vmem>>, vector<32x128xbf16>,
    } else {
    }
    return
  }
  func.func @transform_0(%arg0: i32, %arg1: i32) -> (i32, i32) {
    %c0_i32 = arith.constant 0 : i32
    %c0_i32_0 = arith.constant 0 : i32
    return %c0_i32, %arg1 : i32, i32
  }
  func.func @transform_1(%arg0: i32, %arg1: i32) -> (i32, i32) {
    %c0_i32 = arith.constant 0 : i32
    return %arg1, %arg0 : i32, i32
  }
  func.func @transform_2(%arg0: i32, %arg1: i32) -> (i32, i32) {
    %c0_i32 = arith.constant 0 : i32
    %c0_i32_0 = arith.constant 0 : i32
    return %c0_i32, %arg0 : i32, i32
  }
  func.func @transform_3(%arg0: i32, %arg1: i32) -> (i32, i32) {
    %c0_i32 = arith.constant 0 : i32
    %c0_i32_0 = arith.constant 0 : i32
    return %c0_i32, %arg0 : i32, i32
  }
  func.func @transform_4(%arg0: i32, %arg1: i32) -> (i32, i32) {
    %c0_i32 = arith.constant 0 : i32
    %c0_i32_0 = arith.constant 0 : i32
    return %c0_i32, %arg0 : i32, i32
  }
  func.func @transform_5(%arg0: i32, %arg1: i32) -> (i32, i32) {
    %c0_i32 = arith.constant 0 : i32
    %c0_i32_0 = arith.constant 0 : i32
    return %c0_i32, %arg0 : i32, i32
  }
}

module attributes {stable_mosaic.version = 11 : i64} {
  func.func @_fused_conv_bn_lrelu_kernel(%arg0: i32, %arg1: i32, %arg2: memref<32x768xbf16, #tpu.memory_space<vmem>>, %arg3: memref<768x128xbf16, #tpu.memory_space<vmem>>, %arg4: memref<1x128xf32, #tpu.memory_space<vmem>>, %arg5: memref<1x128xf32, #tpu.memory_space<vmem>>, %arg6: memref<1x128xf32, #tpu.memory_space<vmem>>, %arg7: memref<32x128xbf16, #tpu.memory_space<vmem>>, %arg8: memref<32x128xf32, #tpu.memory_space<vmem>>) attributes {dimension_semantics = [#tpu.dimension_semantics<parallel>, #tpu.dimension_semantics<arbitrary>], iteration_bounds = array<i64: 4, 3>, scalar_prefetch = 0 : i64, scratch_operands = 1 : i64, tpu.core_type = #tpu.core_type<tc>, window_params = [{transform_indices = @transform_0, window_bounds = array<i64: 32, 768>}, {transform_indices = @transform_1, window_bounds = array<i64: 768, 128>}, {transform_indices = @transform_2, window_bounds = array<i64: 1, 128>}, {transform_indices = @transform_3, window_bounds = array<i64: 1, 128>}, {transform_indices = @transform_4, window_bounds = array<i64: 1, 128>}, {transform_indices = @transform_5, window_bounds = array<i64: 32, 128>}]} {
    %c0_i32 = arith.constant 0 : i32
    %0 = arith.cmpi eq, %arg1, %c0_i32 : i32
    %1 = arith.extui %0 : i1 to i32
    %c0_i32_0 = arith.constant 0 : i32
    %2 = arith.cmpi ne, %1, %c0_i32_0 : i32
    scf.if %2 {
      %cst_9 = arith.constant 0.000000e+00 : f32
      %12 = vector.broadcast %cst_9 : f32 to vector<32x128xf32>
      %c0_10 = arith.constant 0 : index
      %c0_11 = arith.constant 0 : index
      %13 = vector.load %arg8[%c0_10, %c0_11] : memref<32x128xf32, #tpu.memory_space<vmem>>, vector<32x128xf32>
      tpu.vector_store %arg8[%c0_10, %c0_11], %12 {strides = array<i32>} : memref<32x128xf32, #tpu.memory_space<vmem>>, vector<32x128xf32>,
    } else {
    }
    %c0 = arith.constant 0 : index
    %c0_1 = arith.constant 0 : index
    %3 = vector.load %arg8[%c0, %c0_1] : memref<32x128xf32, #tpu.memory_space<vmem>>, vector<32x128xf32>
    %c0_2 = arith.constant 0 : index
    %c0_3 = arith.constant 0 : index
    %4 = vector.load %arg2[%c0_2, %c0_3] : memref<32x768xbf16, #tpu.memory_space<vmem>>, vector<32x768xbf16>
    %c0_4 = arith.constant 0 : index
    %c0_5 = arith.constant 0 : index
    %5 = vector.load %arg3[%c0_4, %c0_5] : memref<768x128xbf16, #tpu.memory_space<vmem>>, vector<768x128xbf16>
    %cst = arith.constant dense<0.000000e+00> : vector<32x128xf32>
    %6 = tpu.matmul %4, %5, %cst {dimension_numbers = #tpu.dot_dimension_numbers<[1], [0], [0], [1], [0, 0, 1, 1], [], []>} : vector<32x768xbf16>, vector<768x128xbf16>, vector<32x128xf32> -> vector<32x128xf32>
    %7 = arith.addf %3, %6 : vector<32x128xf32>
    %c0_6 = arith.constant 0 : index
    %c0_7 = arith.constant 0 : index
    %8 = vector.load %arg8[%c0_6, %c0_7] : memref<32x128xf32, #tpu.memory_space<vmem>>, vector<32x128xf32>
    tpu.vector_store %arg8[%c0_6, %c0_7], %7 {strides = array<i32>} : memref<32x128xf32, #tpu.memory_space<vmem>>, vector<32x128xf32>,
    %c2_i32 = arith.constant 2 : i32
    %9 = arith.cmpi eq, %arg1, %c2_i32 : i32
    %10 = arith.extui %9 : i1 to i32
    %c0_i32_8 = arith.constant 0 : i32
    %11 = arith.cmpi ne, %10, %c0_i32_8 : i32
    scf.if %11 {
      %c0_9 = arith.constant 0 : index
      %c0_10 = arith.constant 0 : index
      %12 = vector.load %arg8[%c0_9, %c0_10] : memref<32x128xf32, #tpu.memory_space<vmem>>, vector<32x128xf32>
      %c0_11 = arith.constant 0 : index
      %c0_12 = arith.constant 0 : index
      %13 = vector.load %arg4[%c0_11, %c0_12] : memref<1x128xf32, #tpu.memory_space<vmem>>, vector<1x128xf32>
      %14 = vector.broadcast %13 : vector<1x128xf32> to vector<32x128xf32>
      %15 = arith.addf %12, %14 : vector<32x128xf32>
      %cst_13 = arith.constant dense<0.000000e+00> : vector<128xf32>
      %16 = vector.multi_reduction <add>, %15, %cst_13 [0] : vector<32x128xf32> to vector<128xf32>
      %17 = vector.shape_cast %16 : vector<128xf32> to vector<1x128xf32>
      %cst_14 = arith.constant 3.200000e+01 : f32
      %18 = vector.broadcast %cst_14 : f32 to vector<1x128xf32>
      %19 = arith.divf %17, %18 : vector<1x128xf32>
      %20 = arith.mulf %15, %15 : vector<32x128xf32>
      %cst_15 = arith.constant dense<0.000000e+00> : vector<128xf32>
      %21 = vector.multi_reduction <add>, %20, %cst_15 [0] : vector<32x128xf32> to vector<128xf32>
      %22 = vector.shape_cast %21 : vector<128xf32> to vector<1x128xf32>
      %cst_16 = arith.constant 3.200000e+01 : f32
      %23 = vector.broadcast %cst_16 : f32 to vector<1x128xf32>
      %24 = arith.divf %22, %23 : vector<1x128xf32>
      %25 = arith.mulf %19, %19 : vector<1x128xf32>
      %26 = arith.subf %24, %25 : vector<1x128xf32>
      %cst_17 = arith.constant 0.000000e+00 : f32
      %27 = vector.broadcast %cst_17 : f32 to vector<1x128xf32>
      %28 = arith.maximumf %26, %27 : vector<1x128xf32>
      %c0_18 = arith.constant 0 : index
      %c0_19 = arith.constant 0 : index
      %29 = vector.load %arg5[%c0_18, %c0_19] : memref<1x128xf32, #tpu.memory_space<vmem>>, vector<1x128xf32>
      %cst_20 = arith.constant 9.99999974E-6 : f32
      %30 = vector.broadcast %cst_20 : f32 to vector<1x128xf32>
      %31 = arith.addf %28, %30 : vector<1x128xf32>
      %32 = math.rsqrt %31 : vector<1x128xf32>
      %33 = arith.mulf %29, %32 : vector<1x128xf32>
      %c0_21 = arith.constant 0 : index
      %c0_22 = arith.constant 0 : index
      %34 = vector.load %arg6[%c0_21, %c0_22] : memref<1x128xf32, #tpu.memory_space<vmem>>, vector<1x128xf32>
      %35 = arith.mulf %19, %33 : vector<1x128xf32>
      %36 = arith.subf %34, %35 : vector<1x128xf32>
      %37 = vector.broadcast %33 : vector<1x128xf32> to vector<32x128xf32>
      %38 = arith.mulf %15, %37 : vector<32x128xf32>
      %39 = vector.broadcast %36 : vector<1x128xf32> to vector<32x128xf32>
      %40 = arith.addf %38, %39 : vector<32x128xf32>
      %cst_23 = arith.constant 0.000000e+00 : f32
      %41 = vector.broadcast %cst_23 : f32 to vector<32x128xf32>
      %42 = arith.cmpf oge, %40, %41 : vector<32x128xf32>
      %cst_24 = arith.constant 2.000000e-01 : f32
      %43 = vector.broadcast %cst_24 : f32 to vector<32x128xf32>
      %44 = arith.mulf %43, %40 : vector<32x128xf32>
      %45 = arith.select %42, %40, %44 : vector<32x128xi1>, vector<32x128xf32>
      %46 = arith.truncf %45 : vector<32x128xf32> to vector<32x128xbf16>
      %c0_25 = arith.constant 0 : index
      %c0_26 = arith.constant 0 : index
      %47 = vector.load %arg7[%c0_25, %c0_26] : memref<32x128xbf16, #tpu.memory_space<vmem>>, vector<32x128xbf16>
      tpu.vector_store %arg7[%c0_25, %c0_26], %46 {strides = array<i32>} : memref<32x128xbf16, #tpu.memory_space<vmem>>, vector<32x128xbf16>,
    } else {
    }
    return
  }
  func.func @transform_0(%arg0: i32, %arg1: i32) -> (i32, i32) {
    %c0_i32 = arith.constant 0 : i32
    %c0_i32_0 = arith.constant 0 : i32
    return %c0_i32, %arg1 : i32, i32
  }
  func.func @transform_1(%arg0: i32, %arg1: i32) -> (i32, i32) {
    %c0_i32 = arith.constant 0 : i32
    return %arg1, %arg0 : i32, i32
  }
  func.func @transform_2(%arg0: i32, %arg1: i32) -> (i32, i32) {
    %c0_i32 = arith.constant 0 : i32
    %c0_i32_0 = arith.constant 0 : i32
    return %c0_i32, %arg0 : i32, i32
  }
  func.func @transform_3(%arg0: i32, %arg1: i32) -> (i32, i32) {
    %c0_i32 = arith.constant 0 : i32
    %c0_i32_0 = arith.constant 0 : i32
    return %c0_i32, %arg0 : i32, i32
  }
  func.func @transform_4(%arg0: i32, %arg1: i32) -> (i32, i32) {
    %c0_i32 = arith.constant 0 : i32
    %c0_i32_0 = arith.constant 0 : i32
    return %c0_i32, %arg0 : i32, i32
  }
  func.func @transform_5(%arg0: i32, %arg1: i32) -> (i32, i32) {
    %c0_i32 = arith.constant 0 : i32
    %c0_i32_0 = arith.constant 0 : i32
    return %c0_i32, %arg0 : i32, i32
  }
}

module attributes {stable_mosaic.version = 11 : i64} {
  func.func @_head_kernel(%arg0: memref<2x8192xbf16, #tpu.memory_space<vmem>>, %arg1: memref<1x8192xf32, #tpu.memory_space<vmem>>, %arg2: memref<1x1xf32, #tpu.memory_space<vmem>>, %arg3: memref<2x1xf32, #tpu.memory_space<vmem>>) attributes {dimension_semantics = [], scalar_prefetch = 0 : i64, scratch_operands = 0 : i64, tpu.core_type = #tpu.core_type<tc>} {
    %c0 = arith.constant 0 : index
    %c0_0 = arith.constant 0 : index
    %0 = vector.load %arg0[%c0, %c0_0] : memref<2x8192xbf16, #tpu.memory_space<vmem>>, vector<2x8192xbf16>
    %1 = arith.extf %0 : vector<2x8192xbf16> to vector<2x8192xf32>
    %c0_1 = arith.constant 0 : index
    %c0_2 = arith.constant 0 : index
    %2 = vector.load %arg1[%c0_1, %c0_2] : memref<1x8192xf32, #tpu.memory_space<vmem>>, vector<1x8192xf32>
    %3 = vector.broadcast %2 : vector<1x8192xf32> to vector<2x8192xf32>
    %4 = arith.mulf %1, %3 : vector<2x8192xf32>
    %cst = arith.constant dense<0.000000e+00> : vector<2xf32>
    %5 = vector.multi_reduction <add>, %4, %cst [1] : vector<2x8192xf32> to vector<2xf32>
    %6 = vector.shape_cast %5 : vector<2xf32> to vector<2x1xf32>
    %c0_3 = arith.constant 0 : index
    %c0_4 = arith.constant 0 : index
    %7 = vector.load %arg2[%c0_3, %c0_4] : memref<1x1xf32, #tpu.memory_space<vmem>>, vector<1x1xf32>
    %8 = vector.broadcast %7 : vector<1x1xf32> to vector<2x1xf32>
    %9 = arith.addf %6, %8 : vector<2x1xf32>
    %c0_5 = arith.constant 0 : index
    %c0_6 = arith.constant 0 : index
    %10 = vector.load %arg3[%c0_5, %c0_6] : memref<2x1xf32, #tpu.memory_space<vmem>>, vector<2x1xf32>
    tpu.vector_store %arg3[%c0_5, %c0_6], %9 {strides = array<i32>} : memref<2x1xf32, #tpu.memory_space<vmem>>, vector<2x1xf32>,
    return
  }
}

</mosaic_0001>

<bundles_post_ra>
// kernel: discriminator32_forward.5
= control target key start
LH: loop header
LB: loop body
LE: loop exit
PB: predicated region body
PF: predicated region fallthrough
CT: control target
= control target key end

     0   :  { %s4233_s1 = inlined_call_operand.vmem [shape: bf16[128,128], index: 1, kind: input, shape index: {}]   ;;  %s4234_s0 = inlined_call_operand.vmem [shape: bf16[512,128], index: 0, kind: input, shape index: {}]   ;;  %s4235_s2 = inlined_call_operand.vmem [shape: f32[1,128], index: 2, kind: input, shape index: {}]   ;;  %s4236_s3 = inlined_call_operand.vmem [shape: f32[1,128], index: 3, kind: input, shape index: {}]   ;;  %s4237_s4 = inlined_call_operand.vmem [shape: f32[1,128], index: 4, kind: input, shape index: {}]   ;;  %s4238_s5 = inlined_call_operand.vmem [shape: bf16[512,128], index: 5, kind: output, shape index: {}]  }
   0x1   :  { %v2395_v0 = vld [vmem:[%s4233_s1] sm:$0xff]   ;;  %v2396_v1 = vld [vmem:[%s4233_s1 + $0x8] sm:$0xff]   ;;  %v2397_v2 = vld [vmem:[%s4233_s1 + $0x10] sm:$0xff]  }
   0x2   :  { %2299 = vmatprep.subr.bf16.mxu0 %v2395_v0  ;;  %2379 = vmatprep.subr.bf16.mxu1 %v2395_v0  ;;  %v2398_v3 = vld [vmem:[%s4233_s1 + $0x18] sm:$0xff]   ;;  %v2403_v4 = vld [vmem:[%s4234_s0] sm:$0xff]   ;;  %v2400_v6 = vld [vmem:[%s4233_s1 + $0x28] sm:$0xff]  }
   0x3   :  { %2300 = vmatpush3.bf16.msra.mxu0 %v2395_v0  ;;  %2387 = vmatpush3.bf16.msra.mxu1 %v2395_v0  ;;  %v2399_v5 = vld [vmem:[%s4233_s1 + $0x20] sm:$0xff]   ;;  %v2401_v7 = vld [vmem:[%s4233_s1 + $0x30] sm:$0xff]   ;;  %v2402_v8 = vld [vmem:[%s4233_s1 + $0x38] sm:$0xff]  }
   0x4   :  { %2301 = vmatprep.subr.bf16.mxu0 %v2396_v1  ;;  %2380 = vmatprep.subr.bf16.mxu1 %v2396_v1  ;;  %v2419_v9 = vld [vmem:[%s4234_s0 + $0x80] sm:$0xff]   ;;  %v2404_v10 = vld [vmem:[%s4234_s0 + $0x8] sm:$0xff]   ;;  %v2405_v11 = vld [vmem:[%s4234_s0 + $0x10] sm:$0xff]  }
   0x5   :  { %2315 = vmatprep.mubr.bf16.mxu0 %v2403_v4  ;;  %2347 = vmatprep.mubr.bf16.mxu1 %v2419_v9  ;;  %v2420_v12 = vld [vmem:[%s4234_s0 + $0x88] sm:$0xff]   ;;  %v2421_v13 = vld [vmem:[%s4234_s0 + $0x90] sm:$0xff]   ;;  %v2406_v14 = vld [vmem:[%s4234_s0 + $0x18] sm:$0xff]  }
   0x6   :  { %v2407_v15 = vld [vmem:[%s4234_s0 + $0x20] sm:$0xff]   ;;  %v2422_v16 = vld [vmem:[%s4234_s0 + $0x98] sm:$0xff]   ;;  %v2408_v18 = vld [vmem:[%s4234_s0 + $0x28] sm:$0xff]  }
   0x7   :  { %2302 = vmatpush3.bf16.msra.mxu0 %v2396_v1  ;;  %2388 = vmatpush3.bf16.msra.mxu1 %v2396_v1  ;;  %v2423_v17 = vld [vmem:[%s4234_s0 + $0xa0] sm:$0xff]   ;;  %v2424_v19 = vld [vmem:[%s4234_s0 + $0xa8] sm:$0xff]   ;;  %v2409_v20 = vld [vmem:[%s4234_s0 + $0x30] sm:$0xff]  }
   0x8   :  { %2303 = vmatprep.subr.bf16.mxu0 %v2397_v2  ;;  %2381 = vmatprep.subr.bf16.mxu1 %v2397_v2  ;;  %v2425_v21 = vld [vmem:[%s4234_s0 + $0xb0] sm:$0xff]   ;;  %v2410_v22 = vld [vmem:[%s4234_s0 + $0x38] sm:$0xff]   ;;  %v2411_v24 = vld [vmem:[%s4234_s0 + $0x40] sm:$0xff]  }
   0x9   :  { %v2426_v23 = vld [vmem:[%s4234_s0 + $0xb8] sm:$0xff]   ;;  %v2427_v25 = vld [vmem:[%s4234_s0 + $0xc0] sm:$0xff]   ;;  %v2412_v26 = vld [vmem:[%s4234_s0 + $0x48] sm:$0xff]  }
   0xa   :  { %v2428_v27 = vld [vmem:[%s4234_s0 + $0xc8] sm:$0xff]   ;;  %v2413_v28 = vld [vmem:[%s4234_s0 + $0x50] sm:$0xff]   ;;  %v2414_v30 = vld [vmem:[%s4234_s0 + $0x58] sm:$0xff]  }
   0xb   :  { %2304 = vmatpush3.bf16.msra.mxu0 %v2397_v2  ;;  %2389 = vmatpush3.bf16.msra.mxu1 %v2397_v2  ;;  %v2429_v29 = vld [vmem:[%s4234_s0 + $0xd0] sm:$0xff]   ;;  %v2430_v31 = vld [vmem:[%s4234_s0 + $0xd8] sm:$0xff]   ;;  %v2415_v32 = vld [vmem:[%s4234_s0 + $0x60] sm:$0xff]  }
   0xc   :  { %2305 = vmatprep.subr.bf16.mxu0 %v2398_v3  ;;  %2382 = vmatprep.subr.bf16.mxu1 %v2398_v3  ;;  %v2431_v33 = vld [vmem:[%s4234_s0 + $0xe0] sm:$0xff]   ;;  %v2416_v34 = vld [vmem:[%s4234_s0 + $0x68] sm:$0xff]   ;;  %v2417_v36 = vld [vmem:[%s4234_s0 + $0x70] sm:$0xff]  }
   0xd   :  { %v2432_v35 = vld [vmem:[%s4234_s0 + $0xe8] sm:$0xff]   ;;  %v2433_v37 = vld [vmem:[%s4234_s0 + $0xf0] sm:$0xff]   ;;  %v2418_v38 = vld [vmem:[%s4234_s0 + $0x78] sm:$0xff]  }
   0xe   :  { %v2434_v39 = vld [vmem:[%s4234_s0 + $0xf8] sm:$0xff]   ;;  %v2590_v40 = vld [vmem:[%s4235_s2] ss:$0 sm:$0xff] }
   0xf   :  { %2306 = vmatpush3.bf16.msra.mxu0 %v2398_v3  ;;  %2390 = vmatpush3.bf16.msra.mxu1 %v2398_v3 }
  0x10   :  { %2307 = vmatprep.subr.bf16.mxu0 %v2399_v5  ;;  %2383 = vmatprep.subr.bf16.mxu1 %v2399_v5 }
  0x13   :  { %2308 = vmatpush3.bf16.msra.mxu0 %v2399_v5  ;;  %2391 = vmatpush3.bf16.msra.mxu1 %v2399_v5 }
  0x14   :  { %2309 = vmatprep.subr.bf16.mxu0 %v2400_v6  ;;  %2384 = vmatprep.subr.bf16.mxu1 %v2400_v6 }
  0x17   :  { %2310 = vmatpush3.bf16.msra.mxu0 %v2400_v6  ;;  %2392 = vmatpush3.bf16.msra.mxu1 %v2400_v6 }
  0x18   :  { %2311 = vmatprep.subr.bf16.mxu0 %v2401_v7  ;;  %2385 = vmatprep.subr.bf16.mxu1 %v2401_v7 }
  0x1b   :  { %2312 = vmatpush3.bf16.msra.mxu0 %v2401_v7  ;;  %2393 = vmatpush3.bf16.msra.mxu1 %v2401_v7 }
  0x1c   :  { %2313 = vmatprep.subr.bf16.mxu0 %v2402_v8  ;;  %2386 = vmatprep.subr.bf16.mxu1 %v2402_v8 }
  0x1f   :  { %2314 = vmatpush3.bf16.msra.mxu0 %v2402_v8  ;;  %2394 = vmatpush3.bf16.msra.mxu1 %v2402_v8 }
  0x22   :  { %2316 = vmatmul.mubr.bf16.vlgmr.msra.gmra.mrb[0].mxu0 %v2404_v10  ;;  %2348 = vmatmul.mubr.bf16.vlgmr.msra.gmra.mrb[0].mxu1 %v2420_v12 }
  0x23   :  { %2319 = vmatprep.mubr.bf16.mxu0 %v2405_v11  ;;  %2351 = vmatprep.mubr.bf16.mxu1 %v2421_v13 }
  0x2a   :  { %2320 = vmatmul.mubr.bf16.gmra.mrb[4].mxu0 %v2406_v14  ;;  %2352 = vmatmul.mubr.bf16.gmra.mrb[4].mxu1 %v2422_v16 }
  0x2b   :  { %2323 = vmatprep.mubr.bf16.mxu0 %v2407_v15  ;;  %2355 = vmatprep.mubr.bf16.mxu1 %v2423_v17 }
  0x32   :  { %2324 = vmatmul.mubr.bf16.gmra.mrb[8].mxu0 %v2408_v18  ;;  %2356 = vmatmul.mubr.bf16.gmra.mrb[8].mxu1 %v2424_v19 }
  0x33   :  { %2327 = vmatprep.mubr.bf16.mxu0 %v2409_v20  ;;  %2359 = vmatprep.mubr.bf16.mxu1 %v2425_v21 }
  0x3a   :  { %2328 = vmatmul.mubr.bf16.gmra.mrb[12].mxu0 %v2410_v22  ;;  %2360 = vmatmul.mubr.bf16.gmra.mrb[12].mxu1 %v2426_v23 }
  0x3b   :  { %2331 = vmatprep.mubr.bf16.mxu0 %v2411_v24  ;;  %2363 = vmatprep.mubr.bf16.mxu1 %v2427_v25 }
  0x42   :  { %2332 = vmatmul.mubr.bf16.gmra.mrb[16].mxu0 %v2412_v26  ;;  %2364 = vmatmul.mubr.bf16.gmra.mrb[16].mxu1 %v2428_v27 }
  0x43   :  { %2335 = vmatprep.mubr.bf16.mxu0 %v2413_v28  ;;  %2367 = vmatprep.mubr.bf16.mxu1 %v2429_v29 }
  0x4a   :  { %2336 = vmatmul.mubr.bf16.gmra.mrb[20].mxu0 %v2414_v30  ;;  %2368 = vmatmul.mubr.bf16.gmra.mrb[20].mxu1 %v2430_v31 }
  0x4b   :  { %2339 = vmatprep.mubr.bf16.mxu0 %v2415_v32  ;;  %2371 = vmatprep.mubr.bf16.mxu1 %v2431_v33 }
  0x52   :  { %2340 = vmatmul.mubr.bf16.gmra.mrb[24].mxu0 %v2416_v34  ;;  %2372 = vmatmul.mubr.bf16.gmra.mrb[24].mxu1 %v2432_v35 }
  0x53   :  { %2343 = vmatprep.mubr.bf16.mxu0 %v2417_v36  ;;  %2375 = vmatprep.mubr.bf16.mxu1 %v2433_v37 }
  0x5a   :  { %2344 = vmatmul.mubr.bf16.gmra.mrb[28].mxu0 %v2418_v38  ;;  %2376 = vmatmul.mubr.bf16.gmra.mrb[28].mxu1 %v2434_v39 }
  0xf5   :  { %v2317_v41 = vpop.f32.mrb[0].mxu0  ;;  %v2349_v42 = vpop.f32.mrb[0].mxu1 }
  0xf6   :  { %v507_v43 = vpop.f32.mrb[1].mxu0  ;;  %v2593_v44 = vadd.f32 %v2349_v42, %v2590_v40  ;;  %v2595_v45 = vpop.f32.mrb[1].mxu1  ;;  %v2604_v52 = vadd.f32 %v2317_v41, %v2590_v40 }
  0xf7   :  { %v2598_v46 = vadd.f32 %v2590_v40, %v507_v43  ;;  %v2318_v47 = vpop.f32.mrb[2].mxu0  ;;  %v2350_v48 = vpop.f32.mrb[2].mxu1 }
  0xf8   :  { %v510_v49 = vpop.f32.mrb[3].mxu0  ;;  %v2601_v50 = vadd.f32 %v2350_v48, %v2590_v40  ;;  %v638_v51 = vpop.f32.mrb[3].mxu1  ;;  %v2613_v55 = vadd.f32 %v2318_v47, %v2590_v40  ;;  %v1101_v59 = vmul.f32 %v2604_v52, %v2604_v52 }
  0xf9   :  { %v2607_v53 = vadd.f32 %v2590_v40, %v510_v49  ;;  %v2610_v54 = vadd.f32 %v2590_v40, %v638_v51  ;;  %v1099_v56 = vmul.f32 %v2598_v46, %v2598_v46 }
  0xfa   :  { %v1102_v0 = vmul.f32 %v2613_v55, %v2613_v55 }
  0xfb   :  { %v1028_v57 = vadd.f32 %v2607_v53, %v2598_v46  ;;  %v1100_v58 = vmul.f32 %v2607_v53, %v2607_v53 }
  0xfd   :  { %v1029_v60 = vadd.f32 %v1028_v57, %v2604_v52  ;;  %v1163_v61 = vadd.f32 %v1100_v58, %v1099_v56  ;;  %v2321_v62 = vpop.f32.mrb[4].mxu0  ;;  %v2353_v63 = vpop.f32.mrb[4].mxu1 }
  0xfe   :  { %v523_v1 = vpop.f32.mrb[5].mxu0  ;;  %v2627_v2 = vadd.f32 %v2353_v63, %v2590_v40  ;;  %v651_v3 = vpop.f32.mrb[5].mxu1  ;;  %v2637_v10 = vadd.f32 %v2321_v62, %v2590_v40 }
  0xff   :  { %v1164_v4 = vadd.f32 %v1163_v61, %v1101_v59  ;;  %v2630_v5 = vadd.f32 %v2590_v40, %v523_v1  ;;  %v1030_v6 = vadd.f32 %v1029_v60, %v2613_v55  ;;  %v2322_v7 = vpop.f32.mrb[6].mxu0  ;;  %v2634_v8 = vadd.f32 %v2590_v40, %v651_v3  ;;  %v2354_v9 = vpop.f32.mrb[6].mxu1 }
 0x100   :  { %v526_v11 = vpop.f32.mrb[7].mxu0  ;;  %v2640_v12 = vadd.f32 %v2354_v9, %v2590_v40  ;;  %v654_v13 = vpop.f32.mrb[7].mxu1  ;;  %v2649_v18 = vadd.f32 %v2322_v7, %v2590_v40  ;;  %v1105_v23 = vmul.f32 %v2637_v10, %v2637_v10 }
 0x101   :  { %v1031_v14 = vadd.f32 %v1030_v6, %v2630_v5  ;;  %v1103_v15 = vmul.f32 %v2630_v5, %v2630_v5  ;;  %v1165_v16 = vadd.f32 %v1164_v4, %v1102_v0  ;;  %v2646_v17 = vadd.f32 %v2590_v40, %v526_v11 }
 0x102   :  { %v2652_v19 = vadd.f32 %v2590_v40, %v654_v13  ;;  %v1106_v28 = vmul.f32 %v2649_v18, %v2649_v18 }
 0x103   :  { %v1166_v20 = vadd.f32 %v1165_v16, %v1103_v15  ;;  %v1032_v21 = vadd.f32 %v1031_v14, %v2646_v17  ;;  %v1104_v22 = vmul.f32 %v2646_v17, %v2646_v17 }
 0x105   :  { %v1033_v24 = vadd.f32 %v1032_v21, %v2637_v10  ;;  %v1167_v25 = vadd.f32 %v1166_v20, %v1104_v22  ;;  %v2325_v26 = vpop.f32.mrb[8].mxu0  ;;  %v2357_v27 = vpop.f32.mrb[8].mxu1 }
 0x106   :  { %v539_v29 = vpop.f32.mrb[9].mxu0  ;;  %v2663_v30 = vadd.f32 %v2357_v27, %v2590_v40  ;;  %v667_v31 = vpop.f32.mrb[9].mxu1  ;;  %v2673_v38 = vadd.f32 %v2325_v26, %v2590_v40 }
 0x107   :  { %v1168_v32 = vadd.f32 %v1167_v25, %v1105_v23  ;;  %v2666_v33 = vadd.f32 %v2590_v40, %v539_v29  ;;  %v1034_v34 = vadd.f32 %v1033_v24, %v2649_v18  ;;  %v2326_v35 = vpop.f32.mrb[10].mxu0  ;;  %v2670_v36 = vadd.f32 %v2590_v40, %v667_v31  ;;  %v2358_v37 = vpop.f32.mrb[10].mxu1 }
 0x108   :  { %v542_v39 = vpop.f32.mrb[11].mxu0  ;;  %v2676_v41 = vadd.f32 %v2358_v37, %v2590_v40  ;;  %v670_v42 = vpop.f32.mrb[11].mxu1  ;;  %v2685_v51 = vadd.f32 %v2326_v35, %v2590_v40  ;;  %v1109_v60 = vmul.f32 %v2673_v38, %v2673_v38 }
 0x109   :  { %v1035_v43 = vadd.f32 %v1034_v34, %v2666_v33  ;;  %v1107_v47 = vmul.f32 %v2666_v33, %v2666_v33  ;;  %v1169_v48 = vadd.f32 %v1168_v32, %v1106_v28  ;;  %v2682_v49 = vadd.f32 %v2590_v40, %v542_v39 }
 0x10a   :  { %v2688_v56 = vadd.f32 %v2590_v40, %v670_v42  ;;  %v1110_v1 = vmul.f32 %v2685_v51, %v2685_v51 }
 0x10b   :  { %v1170_v57 = vadd.f32 %v1169_v48, %v1107_v47  ;;  %v1036_v58 = vadd.f32 %v1035_v43, %v2682_v49  ;;  %v1108_v59 = vmul.f32 %v2682_v49, %v2682_v49 }
 0x10d   :  { %v1037_v61 = vadd.f32 %v1036_v58, %v2673_v38  ;;  %v1171_v62 = vadd.f32 %v1170_v57, %v1108_v59  ;;  %v2329_v63 = vpop.f32.mrb[12].mxu0  ;;  %v2361_v0 = vpop.f32.mrb[12].mxu1 }
 0x10e   :  { %v555_v3 = vpop.f32.mrb[13].mxu0  ;;  %v2699_v4 = vadd.f32 %v2361_v0, %v2590_v40  ;;  %v683_v6 = vpop.f32.mrb[13].mxu1  ;;  %v2709_v16 = vadd.f32 %v2329_v63, %v2590_v40 }
 0x10f   :  { %v1172_v7 = vadd.f32 %v1171_v62, %v1109_v60  ;;  %v2702_v9 = vadd.f32 %v2590_v40, %v555_v3  ;;  %v1038_v11 = vadd.f32 %v1037_v61, %v2685_v51  ;;  %v2330_v13 = vpop.f32.mrb[14].mxu0  ;;  %v2706_v14 = vadd.f32 %v2590_v40, %v683_v6  ;;  %v2362_v15 = vpop.f32.mrb[14].mxu1 }
 0x110   :  { %v558_v20 = vpop.f32.mrb[15].mxu0  ;;  %v2712_v21 = vadd.f32 %v2362_v15, %v2590_v40  ;;  %v686_v22 = vpop.f32.mrb[15].mxu1  ;;  %v2721_v27 = vadd.f32 %v2330_v13, %v2590_v40  ;;  %v1113_v34 = vmul.f32 %v2709_v16, %v2709_v16 }
 0x111   :  { %v1039_v23 = vadd.f32 %v1038_v11, %v2702_v9  ;;  %v1111_v24 = vmul.f32 %v2702_v9, %v2702_v9  ;;  %v1173_v25 = vadd.f32 %v1172_v7, %v1110_v1  ;;  %v2718_v26 = vadd.f32 %v2590_v40, %v558_v20 }
 0x112   :  { %4295 = vst [vmem:[#allocation3_spill] sm:$0xff] %v2721_v27  ;;  %v2724_v28 = vadd.f32 %v2590_v40, %v686_v22  ;;  %v1114_v43 = vmul.f32 %v2721_v27, %v2721_v27 }
 0x113   :  { %v1174_v29 = vadd.f32 %v1173_v25, %v1111_v24  ;;  %v1040_v31 = vadd.f32 %v1039_v23, %v2718_v26  ;;  %v1112_v32 = vmul.f32 %v2718_v26, %v2718_v26 }
 0x115   :  { %v1041_v35 = vadd.f32 %v1040_v31, %v2709_v16  ;;  %v1175_v37 = vadd.f32 %v1174_v29, %v1112_v32  ;;  %v2333_v39 = vpop.f32.mrb[16].mxu0  ;;  %v2365_v42 = vpop.f32.mrb[16].mxu1 }
 0x116   :  { %v571_v47 = vpop.f32.mrb[17].mxu0  ;;  %v2735_v48 = vadd.f32 %v2365_v42, %v2590_v40  ;;  %v699_v57 = vpop.f32.mrb[17].mxu1  ;;  %v2745_v0 = vadd.f32 %v2333_v39, %v2590_v40 }
 0x117   :  { %v1176_v58 = vadd.f32 %v1175_v37, %v1113_v34  ;;  %v2738_v59 = vadd.f32 %v2590_v40, %v571_v47  ;;  %v1042_v60 = vadd.f32 %v1041_v35, %v2721_v27  ;;  %v2334_v61 = vpop.f32.mrb[18].mxu0  ;;  %v2742_v62 = vadd.f32 %v2590_v40, %v699_v57  ;;  %v2366_v63 = vpop.f32.mrb[18].mxu1 }
 0x118   :  { %4296 = vst [vmem:[#allocation4_spill] sm:$0xff] %v2735_v48  ;;  %4298 = vst [vmem:[#allocation6_spill] sm:$0xff] %v2745_v0  ;;  %v574_v1 = vpop.f32.mrb[19].mxu0  ;;  %v2748_v3 = vadd.f32 %v2366_v63, %v2590_v40  ;;  %v702_v6 = vpop.f32.mrb[19].mxu1  ;;  %v2757_v20 = vadd.f32 %v2334_v61, %v2590_v40  ;;  %v1117_v29 = vmul.f32 %v2745_v0, %v2745_v0 }
 0x119   :  { %4297 = vst [vmem:[#allocation5_spill] sm:$0xff] %v2738_v59  ;;  %v1043_v7 = vadd.f32 %v1042_v60, %v2738_v59  ;;  %v1115_v11 = vmul.f32 %v2738_v59, %v2738_v59  ;;  %v1177_v13 = vadd.f32 %v1176_v58, %v1114_v43  ;;  %v2754_v15 = vadd.f32 %v2590_v40, %v574_v1 }
 0x11a   :  { %4299 = vst [vmem:[#allocation7_spill] sm:$0xff] %v2748_v3  ;;  %4301 = vst [vmem:[#allocation9_spill] sm:$0xff] %v2757_v20  ;;  %v2760_v22 = vadd.f32 %v2590_v40, %v702_v6  ;;  %v1118_v37 = vmul.f32 %v2757_v20, %v2757_v20  ;;  %v1132_v27 = vmul.f32 %v2610_v54, %v2610_v54 }
 0x11b   :  { %4300 = vst [vmem:[#allocation8_spill] sm:$0xff] %v2754_v15  ;;  %v1178_v23 = vadd.f32 %v1177_v13, %v1115_v11  ;;  %v1044_v24 = vadd.f32 %v1043_v7, %v2754_v15  ;;  %v1116_v25 = vmul.f32 %v2754_v15, %v2754_v15 }
 0x11c   :  { %4302 = vst [vmem:[#allocation10_spill] sm:$0xff] %v2760_v22 }
 0x11d   :  { %v1045_v31 = vadd.f32 %v1044_v24, %v2745_v0  ;;  %v1179_v32 = vadd.f32 %v1178_v23, %v1116_v25  ;;  %v2337_v34 = vpop.f32.mrb[20].mxu0  ;;  %v2369_v35 = vpop.f32.mrb[20].mxu1 }
 0x11e   :  { %v587_v39 = vpop.f32.mrb[21].mxu0  ;;  %v2771_v42 = vadd.f32 %v2369_v35, %v2590_v40  ;;  %v715_v43 = vpop.f32.mrb[21].mxu1  ;;  %v2781_v1 = vadd.f32 %v2337_v34, %v2590_v40 }
 0x11f   :  { %v1180_v47 = vadd.f32 %v1179_v32, %v1117_v29  ;;  %v2774_v57 = vadd.f32 %v2590_v40, %v587_v39  ;;  %v1046_v58 = vadd.f32 %v1045_v31, %v2757_v20  ;;  %v2338_v60 = vpop.f32.mrb[22].mxu0  ;;  %v2778_v61 = vadd.f32 %v2590_v40, %v715_v43  ;;  %v2370_v63 = vpop.f32.mrb[22].mxu1 }
 0x120   :  { %4303 = vst [vmem:[#allocation11_spill] sm:$0xff] %v2771_v42  ;;  %4306 = vst [vmem:[#allocation14_spill] sm:$0xff] %v2781_v1  ;;  %v590_v6 = vpop.f32.mrb[23].mxu0  ;;  %v2784_v7 = vadd.f32 %v2370_v63, %v2590_v40  ;;  %v718_v11 = vpop.f32.mrb[23].mxu1  ;;  %v2793_v29 = vadd.f32 %v2338_v60, %v2590_v40  ;;  %v1121_v39 = vmul.f32 %v2781_v1, %v2781_v1 }
 0x121   :  { %4304 = vst [vmem:[#allocation12_spill] sm:$0xff] %v2774_v57  ;;  %4305 = vst [vmem:[#allocation13_spill] sm:$0xff] %v2778_v61  ;;  %v1047_v13 = vadd.f32 %v1046_v58, %v2774_v57  ;;  %v1119_v23 = vmul.f32 %v2774_v57, %v2774_v57  ;;  %v1181_v24 = vadd.f32 %v1180_v47, %v1118_v37 }
 0x122   :  { %v2790_v25 = vadd.f32 %v2590_v40, %v590_v6  ;;  %4308 = vst [vmem:[#allocation16_spill] sm:$0xff] %v2793_v29  ;;  %v2796_v31 = vadd.f32 %v2590_v40, %v718_v11  ;;  %v1122_v60 = vmul.f32 %v2793_v29, %v2793_v29 }
 0x123   :  { %v1182_v32 = vadd.f32 %v1181_v24, %v1119_v23 }
 0x124   :  { %4307 = vst [vmem:[#allocation15_spill] sm:$0xff] %v2790_v25  ;;  %4309 = vst [vmem:[#allocation17_spill] sm:$0xff] %v2796_v31  ;;  %v1048_v34 = vadd.f32 %v1047_v13, %v2790_v25  ;;  %v1120_v35 = vmul.f32 %v2790_v25, %v2790_v25 }
 0x125   :  { %v2341_v47 = vpop.f32.mrb[24].mxu0  ;;  %v2373_v58 = vpop.f32.mrb[24].mxu1 }
 0x126   :  { %v1049_v37 = vadd.f32 %v1048_v34, %v2781_v1  ;;  %v1183_v43 = vadd.f32 %v1182_v32, %v1120_v35  ;;  %v603_v63 = vpop.f32.mrb[25].mxu0  ;;  %v2807_v6 = vadd.f32 %v2373_v58, %v2590_v40  ;;  %v731_v11 = vpop.f32.mrb[25].mxu1  ;;  %v2817_v35 = vadd.f32 %v2341_v47, %v2590_v40 }
 0x127   :  { %v2810_v23 = vadd.f32 %v2590_v40, %v603_v63  ;;  %v2342_v25 = vpop.f32.mrb[26].mxu0  ;;  %v2814_v34 = vadd.f32 %v2590_v40, %v731_v11  ;;  %v2374_v32 = vpop.f32.mrb[26].mxu1 }
 0x128   :  { %v1184_v13 = vadd.f32 %v1183_v43, %v1121_v39  ;;  %v1050_v24 = vadd.f32 %v1049_v37, %v2793_v29  ;;  %4311 = vst [vmem:[#allocation19_spill] sm:$0xff] %v2817_v35  ;;  %v606_v1 = vpop.f32.mrb[27].mxu0  ;;  %v2820_v57 = vadd.f32 %v2374_v32, %v2590_v40  ;;  %v734_v58 = vpop.f32.mrb[27].mxu1  ;;  %v2829_v11 = vadd.f32 %v2342_v25, %v2590_v40 }
 0x129   :  { %4310 = vst [vmem:[#allocation18_spill] sm:$0xff] %v2810_v23  ;;  %v1123_v43 = vmul.f32 %v2810_v23, %v2810_v23  ;;  %v2826_v37 = vadd.f32 %v2590_v40, %v606_v1  ;;  %v2832_v47 = vadd.f32 %v2590_v40, %v734_v58 }
 0x12a   :  { %v1051_v39 = vadd.f32 %v1050_v24, %v2810_v23  ;;  %v1185_v63 = vadd.f32 %v1184_v13, %v1122_v60  ;;  %4313 = vst [vmem:[#allocation21_spill] sm:$0xff] %v2829_v11  ;;  %v1125_v24 = vmul.f32 %v2817_v35, %v2817_v35  ;;  %v1126_v25 = vmul.f32 %v2829_v11, %v2829_v11 }
 0x12b   :  { %4312 = vst [vmem:[#allocation20_spill] sm:$0xff] %v2826_v37  ;;  %v1124_v20 = vmul.f32 %v2826_v37, %v2826_v37 }
 0x12c   :  { %v1186_v29 = vadd.f32 %v1185_v63, %v1123_v43  ;;  %v1052_v32 = vadd.f32 %v1051_v39, %v2826_v37 }
 0x12d   :  { %v2345_v1 = vpop.f32.mrb[28].mxu0  ;;  %v2377_v23 = vpop.f32.mrb[28].mxu1 }
 0x12e   :  { %v1053_v60 = vadd.f32 %v1052_v32, %v2817_v35  ;;  %v1187_v13 = vadd.f32 %v1186_v29, %v1124_v20  ;;  %v619_v0 = vpop.f32.mrb[29].mxu0  ;;  %v2843_v58 = vadd.f32 %v2377_v23, %v2590_v40  ;;  %v747_v43 = vpop.f32.mrb[29].mxu1  ;;  %v2853_v29 = vadd.f32 %v2345_v1, %v2590_v40 }
 0x12f   :  { %v2846_v63 = vadd.f32 %v2590_v40, %v619_v0  ;;  %v2346_v15 = vpop.f32.mrb[30].mxu0  ;;  %v2850_v32 = vadd.f32 %v2590_v40, %v747_v43  ;;  %v2378_v20 = vpop.f32.mrb[30].mxu1  ;;  %v2866_v43 = vadd.f32 %v2590_v40, %v2595_v45 }
 0x130   :  { %4314 = vst [vmem:[#allocation22_spill] sm:$0xff] %v2843_v58  ;;  %v1188_v39 = vadd.f32 %v1187_v13, %v1125_v24  ;;  %v1054_v37 = vadd.f32 %v1053_v60, %v2829_v11  ;;  %v622_v35 = vpop.f32.mrb[31].mxu0  ;;  %v2856_v59 = vadd.f32 %v2378_v20, %v2590_v40  ;;  %v750_v23 = vpop.f32.mrb[31].mxu1  ;;  %v2872_v20 = vadd.f32 %v2346_v15, %v2590_v40 }
 0x131   :  { %4315 = vst [vmem:[#allocation23_spill] sm:$0xff] %v2846_v63  ;;  %4316 = vst [vmem:[#allocation24_spill] sm:$0xff] %v2850_v32  ;;  %v1127_v0 = vmul.f32 %v2846_v63, %v2846_v63  ;;  %v2862_v60 = vadd.f32 %v2590_v40, %v622_v35  ;;  %v2869_v1 = vadd.f32 %v2590_v40, %v750_v23 }
 0x132   :  { %v1055_v24 = vadd.f32 %v1054_v37, %v2846_v63  ;;  %v1189_v13 = vadd.f32 %v1188_v39, %v1126_v25  ;;  %v1129_v35 = vmul.f32 %v2853_v29, %v2853_v29  ;;  %v1130_v45 = vmul.f32 %v2872_v20, %v2872_v20 }
 0x133   :  { %4317 = vst [vmem:[#allocation25_spill] sm:$0xff] %v2862_v60  ;;  %4318 = vst [vmem:[#allocation26_spill] sm:$0xff] %v2869_v1  ;;  %v1128_v63 = vmul.f32 %v2862_v60, %v2862_v60  ;;  %v1131_v40 = vmul.f32 %v2866_v43, %v2866_v43 }
 0x134   :  { %v1190_v11 = vadd.f32 %v1189_v13, %v1127_v0  ;;  %v1056_v37 = vadd.f32 %v1055_v24, %v2862_v60 }
 0x136   :  { %v1057_v25 = vadd.f32 %v1056_v37, %v2853_v29  ;;  %v1191_v39 = vadd.f32 %v1190_v11, %v1128_v63  ;;  %v1133_v11 = vmul.f32 %v2593_v44, %v2593_v44 }
 0x138   :  { %v1192_v23 = vadd.f32 %v1191_v39, %v1129_v35  ;;  %v1058_v0 = vadd.f32 %v1057_v25, %v2872_v20  ;;  %v1134_v35 = vmul.f32 %v2601_v50, %v2601_v50 }
 0x13a   :  { %v1059_v15 = vadd.f32 %v1058_v0, %v2866_v43  ;;  %v1193_v24 = vadd.f32 %v1192_v23, %v1130_v45  ;;  %v1135_v45 = vmul.f32 %v2634_v8, %v2634_v8 }
 0x13c   :  { %v1194_v13 = vadd.f32 %v1193_v24, %v1131_v40  ;;  %v1060_v60 = vadd.f32 %v1059_v15, %v2610_v54  ;;  %v1136_v24 = vmul.f32 %v2652_v19, %v2652_v19 }
 0x13e   :  { %v1061_v63 = vadd.f32 %v1060_v60, %v2593_v44  ;;  %v1195_v37 = vadd.f32 %v1194_v13, %v1132_v27  ;;  %v1137_v27 = vmul.f32 %v2627_v2, %v2627_v2 }
 0x140   :  { %v1196_v25 = vadd.f32 %v1195_v37, %v1133_v11  ;;  %v1062_v39 = vadd.f32 %v1061_v63, %v2601_v50  ;;  %v1138_v11 = vmul.f32 %v2640_v12, %v2640_v12 }
 0x142   :  { %v1063_v23 = vadd.f32 %v1062_v39, %v2634_v8  ;;  %v1197_v0 = vadd.f32 %v1196_v25, %v1134_v35  ;;  %v1139_v35 = vmul.f32 %v2670_v36, %v2670_v36 }
 0x144   :  { %v1198_v40 = vadd.f32 %v1197_v0, %v1135_v45  ;;  %v1064_v15 = vadd.f32 %v1063_v23, %v2652_v19  ;;  %v1140_v0 = vmul.f32 %v2688_v56, %v2688_v56 }
 0x146   :  { %v1065_v60 = vadd.f32 %v1064_v15, %v2627_v2  ;;  %v1199_v13 = vadd.f32 %v1198_v40, %v1136_v24  ;;  %v1141_v40 = vmul.f32 %v2663_v30, %v2663_v30 }
 0x148   :  { %v1200_v63 = vadd.f32 %v1199_v13, %v1137_v27  ;;  %v1066_v37 = vadd.f32 %v1065_v60, %v2640_v12  ;;  %v1142_v27 = vmul.f32 %v2676_v41, %v2676_v41 }
 0x14a   :  { %v1067_v25 = vadd.f32 %v1066_v37, %v2670_v36  ;;  %v1201_v39 = vadd.f32 %v1200_v63, %v1138_v11  ;;  %v1143_v11 = vmul.f32 %v2706_v14, %v2706_v14 }
 0x14c   :  { %v1202_v45 = vadd.f32 %v1201_v39, %v1139_v35  ;;  %v1068_v23 = vadd.f32 %v1067_v25, %v2688_v56  ;;  %v1144_v39 = vmul.f32 %v2724_v28, %v2724_v28 }
 0x14e   :  { %v1069_v15 = vadd.f32 %v1068_v23, %v2663_v30  ;;  %v1203_v24 = vadd.f32 %v1202_v45, %v1140_v0  ;;  %v1145_v45 = vmul.f32 %v2699_v4, %v2699_v4 }
 0x150   :  { %v1204_v60 = vadd.f32 %v1203_v24, %v1141_v40  ;;  %v1070_v13 = vadd.f32 %v1069_v15, %v2676_v41  ;;  %v1146_v40 = vmul.f32 %v2712_v21, %v2712_v21 }
 0x152   :  { %v1071_v63 = vadd.f32 %v1070_v13, %v2706_v14  ;;  %v1205_v37 = vadd.f32 %v1204_v60, %v1142_v27  ;;  %v1147_v27 = vmul.f32 %v2742_v62, %v2742_v62 }
 0x154   :  { %v1206_v35 = vadd.f32 %v1205_v37, %v1143_v11  ;;  %v1072_v25 = vadd.f32 %v1071_v63, %v2724_v28  ;;  %v1148_v37 = vmul.f32 %v2760_v22, %v2760_v22 }
 0x156   :  { %v1073_v23 = vadd.f32 %v1072_v25, %v2699_v4  ;;  %v1207_v0 = vadd.f32 %v1206_v35, %v1144_v39  ;;  %v1149_v35 = vmul.f32 %v2735_v48, %v2735_v48 }
 0x158   :  { %v1208_v15 = vadd.f32 %v1207_v0, %v1145_v45  ;;  %v1074_v24 = vadd.f32 %v1073_v23, %v2712_v21  ;;  %v1150_v45 = vmul.f32 %v2748_v3, %v2748_v3 }
 0x15a   :  { %v1075_v60 = vadd.f32 %v1074_v24, %v2742_v62  ;;  %v1209_v13 = vadd.f32 %v1208_v15, %v1146_v40  ;;  %v1151_v40 = vmul.f32 %v2778_v61, %v2778_v61 }
 0x15c   :  { %v1210_v11 = vadd.f32 %v1209_v13, %v1147_v27  ;;  %v1076_v63 = vadd.f32 %v1075_v60, %v2760_v22  ;;  %v1152_v13 = vmul.f32 %v2796_v31, %v2796_v31 }
 0x15e   :  { %v1077_v25 = vadd.f32 %v1076_v63, %v2735_v48  ;;  %v1211_v39 = vadd.f32 %v1210_v11, %v1148_v37  ;;  %v1153_v11 = vmul.f32 %v2771_v42, %v2771_v42 }
 0x160   :  { %v1212_v23 = vadd.f32 %v1211_v39, %v1149_v35  ;;  %v1078_v0 = vadd.f32 %v1077_v25, %v2748_v3  ;;  %v1154_v35 = vmul.f32 %v2784_v7, %v2784_v7 }
 0x162   :  { %v1079_v15 = vadd.f32 %v1078_v0, %v2778_v61  ;;  %v1213_v24 = vadd.f32 %v1212_v23, %v1150_v45  ;;  %v1155_v45 = vmul.f32 %v2814_v34, %v2814_v34 }
 0x164   :  { %v1214_v27 = vadd.f32 %v1213_v24, %v1151_v40  ;;  %v1080_v60 = vadd.f32 %v1079_v15, %v2796_v31  ;;  %v1156_v24 = vmul.f32 %v2832_v47, %v2832_v47 }
 0x166   :  { %v1081_v63 = vadd.f32 %v1080_v60, %v2771_v42  ;;  %v1215_v37 = vadd.f32 %v1214_v27, %v1152_v13  ;;  %v1157_v27 = vmul.f32 %v2807_v6, %v2807_v6 }
 0x168   :  { %v1216_v25 = vadd.f32 %v1215_v37, %v1153_v11  ;;  %v1082_v39 = vadd.f32 %v1081_v63, %v2784_v7  ;;  %v1158_v11 = vmul.f32 %v2820_v57, %v2820_v57 }
 0x16a   :  { %v1083_v23 = vadd.f32 %v1082_v39, %v2814_v34  ;;  %v1217_v0 = vadd.f32 %v1216_v25, %v1154_v35  ;;  %v1159_v35 = vmul.f32 %v2850_v32, %v2850_v32 }
 0x16c   :  { %v1218_v40 = vadd.f32 %v1217_v0, %v1155_v45  ;;  %v1084_v15 = vadd.f32 %v1083_v23, %v2832_v47  ;;  %v1160_v0 = vmul.f32 %v2869_v1, %v2869_v1 }
 0x16e   :  { %v1085_v60 = vadd.f32 %v1084_v15, %v2807_v6  ;;  %v1219_v13 = vadd.f32 %v1218_v40, %v1156_v24  ;;  %v1161_v40 = vmul.f32 %v2843_v58, %v2843_v58 }
 0x170   :  { %v1220_v63 = vadd.f32 %v1219_v13, %v1157_v27  ;;  %v1086_v37 = vadd.f32 %v1085_v60, %v2820_v57  ;;  %v1162_v27 = vmul.f32 %v2856_v59, %v2856_v59 }
 0x172   :  { %v1087_v25 = vadd.f32 %v1086_v37, %v2850_v32  ;;  %v1221_v39 = vadd.f32 %v1220_v63, %v1158_v11 }
 0x174   :  { %v1222_v45 = vadd.f32 %v1221_v39, %v1159_v35  ;;  %v1088_v23 = vadd.f32 %v1087_v25, %v2869_v1 }
 0x176   :  { %v1089_v15 = vadd.f32 %v1088_v23, %v2843_v58  ;;  %v1223_v24 = vadd.f32 %v1222_v45, %v1160_v0 }
 0x178   :  { %v1090_v60 = vadd.f32 %v1089_v15, %v2856_v59  ;;  %v1224_v13 = vadd.f32 %v1223_v24, %v1161_v40  ;;  %v1244_v40 = vlaneseq }
 0x17a   :  { %v1091_v37 = vrot.slane %v1090_v60, 4  ;;  %v1225_v11 = vadd.f32 %v1224_v13, %v1162_v27  ;;  %v2979_v24 = vshrl.u32 %v1244_v40, 7  ;;  %v1236_v27 = vld [vmem:[%s4236_s3] sm:$0x1]  ;;  %v4326_v40 = vld [vmem:[#allocation14_spill] sm:$0xff] }
 0x17c   :  { %v1092_v63 = vadd.f32 %v1091_v37, %v1090_v60  ;;  %v1226_v35 = vrot.slane %v1225_v11, 4  ;;  %v4263_v60 = vsub.s32 0, %v2979_v24 }
 0x17e   :  { %v1093_v25 = vrot.slane %v1092_v63, 2  ;;  %v1227_v39 = vadd.f32 %v1226_v35, %v1225_v11  ;;  %v4319_v11 = vld [vmem:[#allocation3_spill] sm:$0xff]  ;;  %v4321_v35 = vld [vmem:[#allocation8_spill] sm:$0xff] }
 0x180   :  { %v1094_v42 = vadd.f32 %v1093_v25, %v1092_v63  ;;  %v1228_v31 = vrot.slane %v1227_v39, 2  ;;  %v4320_v63 = vld [vmem:[#allocation5_spill] sm:$0xff]  ;;  %v4322_v25 = vld [vmem:[#allocation6_spill] sm:$0xff] }
 0x182   :  { %v1095_v61 = vrot.slane %v1094_v42, 1  ;;  %v1229_v3 = vadd.f32 %v1228_v31, %v1227_v39  ;;  %v4323_v39 = vld [vmem:[#allocation9_spill] sm:$0xff] }
 0x184   :  { %v1096_v48 = vadd.f32 %v1095_v61, %v1094_v42  ;;  %v1230_v22 = vrot.slane %v1229_v3, 1 }
 0x186   :  { %v1098_v23 = vmul.f32 0.001953125, %v1096_v48  ;;  %v1231_v45 = vadd.f32 %v1230_v22, %v1229_v3  ;;  %v2988_v48 = vld [vmem:[%s4237_s4] sm:$0x1] }
 0x188   :  { %v1232_v0 = vmul.f32 0.001953125, %v1231_v45  ;;  %v1233_v58 = vmul.f32 %v1098_v23, %v1098_v23 }
 0x18a   :  { %v1234_v1 = vsub.f32 %v1232_v0, %v1233_v58  ;;  %v4325_v0 = vld [vmem:[#allocation15_spill] sm:$0xff] }
 0x18c   :  { %v1235_v32 = vmax.f32 %v1234_v1, 0.0 }
 0x18e   :  { %v1237_v15 = vadd.f32 1e-05, %v1235_v32 }
 0x190   :  { %2435 = vrsqrt.f32 %v1237_v15 }
 0x19a   :  { %v2436_v31 = vpop.eup %2435 }
 0x19b   :  { %v1239_v42 = vmul.f32 %v2436_v31, %v1236_v27  ;;  %v4327_v31 = vld [vmem:[#allocation16_spill] sm:$0xff] }
 0x19d   :  { %v2990_v3 = vmul.f32 %v1239_v42, %v1098_v23  ;;  %v2994_v22 = vrot.slane %v1239_v42, %v4263_v60  ;;  %v4324_v23 = vld [vmem:[#allocation12_spill] sm:$0xff] }
 0x19e   :  { %v4341_v60 = vld [vmem:[#allocation24_spill] sm:$0xff] }
 0x19f   :  { %v1242_v61 = vsub.f32 %v2988_v48, %v2990_v3  ;;  %v3000_v58 = vmul.f32 %v2994_v22, %v2598_v46  ;;  %v3004_v32 = vmul.f32 %v2994_v22, %v2607_v53  ;;  %v3008_v1 = vmul.f32 %v2994_v22, %v2604_v52  ;;  %v4328_v48 = vld [vmem:[#allocation18_spill] sm:$0xff] }
 0x1a0   :  { %v3012_v13 = vmul.f32 %v2994_v22, %v2613_v55  ;;  %v3016_v37 = vmul.f32 %v2994_v22, %v2630_v5  ;;  %v3020_v46 = vmul.f32 %v2994_v22, %v2646_v17  ;;  %v3024_v53 = vmul.f32 %v2994_v22, %v2637_v10 }
 0x1a1   :  { %v3028_v52 = vmul.f32 %v2994_v22, %v2649_v18  ;;  %v3032_v55 = vmul.f32 %v2994_v22, %v2666_v33  ;;  %v3036_v5 = vmul.f32 %v2994_v22, %v2682_v49  ;;  %v3040_v17 = vmul.f32 %v2994_v22, %v2673_v38 }
 0x1a2   :  { %v3044_v10 = vmul.f32 %v2994_v22, %v2685_v51  ;;  %v3048_v18 = vmul.f32 %v2994_v22, %v2702_v9  ;;  %v3052_v33 = vmul.f32 %v2994_v22, %v2718_v26  ;;  %v3056_v49 = vmul.f32 %v2994_v22, %v2709_v16 }
 0x1a3   :  { %v3060_v38 = vmul.f32 %v2994_v22, %v4319_v11  ;;  %v3064_v51 = vmul.f32 %v2994_v22, %v4320_v63  ;;  %v3068_v9 = vmul.f32 %v2994_v22, %v4321_v35  ;;  %v3072_v26 = vmul.f32 %v2994_v22, %v4322_v25  ;;  %v4329_v11 = vld [vmem:[#allocation20_spill] sm:$0xff]  ;;  %v4330_v35 = vld [vmem:[#allocation19_spill] sm:$0xff] }
 0x1a4   :  { %v3076_v16 = vmul.f32 %v2994_v22, %v4323_v39  ;;  %v3080_v45 = vmul.f32 %v2994_v22, %v4324_v23  ;;  %v3084_v15 = vmul.f32 %v2994_v22, %v4325_v0  ;;  %v3088_v27 = vmul.f32 %v2994_v22, %v4326_v40  ;;  %v4331_v39 = vld [vmem:[#allocation21_spill] sm:$0xff]  ;;  %v4332_v0 = vld [vmem:[#allocation23_spill] sm:$0xff] }
 0x1a5   :  { %v3092_v42 = vmul.f32 %v2994_v22, %v4327_v31  ;;  %v3096_v3 = vmul.f32 %v2994_v22, %v4328_v48  ;;  %v3100_v63 = vmul.f32 %v2994_v22, %v4329_v11  ;;  %v3104_v25 = vmul.f32 %v2994_v22, %v4330_v35  ;;  %v4333_v31 = vld [vmem:[#allocation25_spill] sm:$0xff] }
 0x1a6   :  { %v3108_v23 = vmul.f32 %v2994_v22, %v4331_v39  ;;  %v3112_v40 = vmul.f32 %v2994_v22, %v4332_v0  ;;  %v3116_v48 = vmul.f32 %v2994_v22, %v4333_v31  ;;  %v3120_v11 = vmul.f32 %v2994_v22, %v2853_v29 }
 0x1a7   :  { %v3124_v35 = vmul.f32 %v2994_v22, %v2872_v20  ;;  %v3128_v39 = vmul.f32 %v2994_v22, %v2866_v43  ;;  %v3132_v0 = vmul.f32 %v2994_v22, %v2610_v54  ;;  %v3136_v31 = vmul.f32 %v2994_v22, %v2593_v44 }
 0x1a8   :  { %v3140_v29 = vmul.f32 %v2994_v22, %v2601_v50  ;;  %v3144_v20 = vmul.f32 %v2994_v22, %v2634_v8  ;;  %v3148_v43 = vmul.f32 %v2994_v22, %v2652_v19  ;;  %v3152_v54 = vmul.f32 %v2994_v22, %v2627_v2 }
 0x1a9   :  { %v3156_v44 = vmul.f32 %v2994_v22, %v2640_v12  ;;  %v3160_v50 = vmul.f32 %v2994_v22, %v2670_v36  ;;  %v3164_v8 = vmul.f32 %v2994_v22, %v2688_v56  ;;  %v3168_v19 = vmul.f32 %v2994_v22, %v2663_v30 }
 0x1aa   :  { %v3172_v2 = vmul.f32 %v2994_v22, %v2676_v41  ;;  %v3176_v12 = vmul.f32 %v2994_v22, %v2706_v14  ;;  %v3180_v36 = vmul.f32 %v2994_v22, %v2724_v28  ;;  %v3184_v56 = vmul.f32 %v2994_v22, %v2699_v4 }
 0x1ab   :  { %v3188_v30 = vmul.f32 %v2994_v22, %v2712_v21  ;;  %v3192_v41 = vmul.f32 %v2994_v22, %v2742_v62  ;;  %v3196_v14 = vmul.f32 %v2994_v22, %v2784_v7  ;;  %v3200_v28 = vmul.f32 %v2994_v22, %v2814_v34 }
 0x1ac   :  { %v3204_v4 = vmul.f32 %v2994_v22, %v2832_v47  ;;  %v3208_v21 = vmul.f32 %v2994_v22, %v2807_v6  ;;  %v3212_v62 = vmul.f32 %v2994_v22, %v2820_v57  ;;  %v3216_v7 = vmul.f32 %v2994_v22, %v4341_v60 }
 0x1ad   :  { %4334 = vst [vmem:[#allocation3_spill] sm:$0xff] %v3188_v30  ;;  %4335 = vst [vmem:[#allocation5_spill] sm:$0xff] %v3192_v41  ;;  %v3232_v57 = vmul.f32 %v2994_v22, %v2856_v59  ;;  %v4349_v60 = vsub.s32 0, %v2979_v24  ;;  %v4353_v30 = vld [vmem:[#allocation11_spill] sm:$0xff] }
 0x1ae   :  { %4336 = vst [vmem:[#allocation8_spill] sm:$0xff] %v3196_v14  ;;  %4337 = vst [vmem:[#allocation6_spill] sm:$0xff] %v3200_v28  ;;  %v4343_v14 = vld [vmem:[#allocation26_spill] sm:$0xff] }
 0x1af   :  { %4338 = vst [vmem:[#allocation9_spill] sm:$0xff] %v3204_v4  ;;  %4339 = vst [vmem:[#allocation12_spill] sm:$0xff] %v3208_v21  ;;  %v3220_v34 = vmul.f32 %v2994_v22, %v4343_v14  ;;  %v4345_v28 = vld [vmem:[#allocation22_spill] sm:$0xff]  ;;  %v4348_v21 = vld [vmem:[#allocation4_spill] sm:$0xff] }
 0x1b0   :  { %4340 = vst [vmem:[#allocation15_spill] sm:$0xff] %v3212_v62  ;;  %4342 = vst [vmem:[#allocation14_spill] sm:$0xff] %v3216_v7  ;;  %v3224_v47 = vmul.f32 %v2994_v22, %v4345_v28  ;;  %v4347_v4 = vld [vmem:[#allocation10_spill] sm:$0xff]  ;;  %v1299_v41 = vmul.f32 %v2994_v22, %v4348_v21  ;;  %v3236_v7 = vrot.slane %v1242_v61, %v4349_v60  ;;  %v4350_v14 = vld [vmem:[#allocation7_spill] sm:$0xff] }
 0x1b1   :  { %4344 = vst [vmem:[#allocation16_spill] sm:$0xff] %v3220_v34  ;;  %v1298_v6 = vmul.f32 %v2994_v22, %v4347_v4  ;;  %v1300_v34 = vmul.f32 %v2994_v22, %v4350_v14  ;;  %v4351_v62 = vld [vmem:[#allocation13_spill] sm:$0xff]  ;;  %v1303_v21 = vmul.f32 %v2994_v22, %v4353_v30 }
 0x1b2   :  { %4346 = vst [vmem:[#allocation18_spill] sm:$0xff] %v3224_v47  ;;  %v1301_v28 = vmul.f32 %v2994_v22, %v4351_v62  ;;  %v4352_v47 = vld [vmem:[#allocation17_spill] sm:$0xff]  ;;  %v3248_v59 = vadd.f32 %v3236_v7, %v3000_v58  ;;  %v3252_v24 = vadd.f32 %v3236_v7, %v3004_v32  ;;  %v3256_v61 = vadd.f32 %v3236_v7, %v3008_v1 }
 0x1b3   :  { %v1302_v4 = vmul.f32 %v2994_v22, %v4352_v47  ;;  %v3260_v62 = vadd.f32 %v3236_v7, %v3012_v13  ;;  %v3264_v47 = vadd.f32 %v3236_v7, %v3016_v37  ;;  %v3268_v22 = vadd.f32 %v3236_v7, %v3020_v46 }
 0x1b4   :  { %v3272_v58 = vadd.f32 %v3236_v7, %v3024_v53  ;;  %v3276_v32 = vadd.f32 %v3236_v7, %v3028_v52  ;;  %v3280_v1 = vadd.f32 %v3236_v7, %v3032_v55  ;;  %v3284_v13 = vadd.f32 %v3236_v7, %v3036_v5  ;;  %v4356_v30 = vld [vmem:[#allocation5_spill] sm:$0xff] }
 0x1b5   :  { %v3288_v37 = vadd.f32 %v3236_v7, %v3040_v17  ;;  %v3292_v46 = vadd.f32 %v3236_v7, %v3044_v10  ;;  %v3296_v53 = vadd.f32 %v3236_v7, %v3048_v18  ;;  %v3300_v52 = vadd.f32 %v3236_v7, %v3052_v33 }
 0x1b6   :  { %v3304_v55 = vadd.f32 %v3236_v7, %v3056_v49  ;;  %v3308_v5 = vadd.f32 %v3236_v7, %v3060_v38  ;;  %v3312_v17 = vadd.f32 %v3236_v7, %v3064_v51  ;;  %v3316_v10 = vadd.f32 %v3236_v7, %v3068_v9 }
 0x1b7   :  { %v3320_v18 = vadd.f32 %v3236_v7, %v3072_v26  ;;  %v3324_v33 = vadd.f32 %v3236_v7, %v3076_v16  ;;  %v3328_v49 = vadd.f32 %v3236_v7, %v3080_v45  ;;  %v3332_v38 = vadd.f32 %v3236_v7, %v3084_v15 }
 0x1b8   :  { %v3336_v51 = vadd.f32 %v3236_v7, %v3088_v27  ;;  %v3340_v9 = vadd.f32 %v3236_v7, %v3092_v42  ;;  %v3344_v26 = vadd.f32 %v3236_v7, %v3096_v3  ;;  %v3348_v16 = vadd.f32 %v3236_v7, %v3100_v63 }
 0x1b9   :  { %v3352_v45 = vadd.f32 %v3236_v7, %v3104_v25  ;;  %v3356_v15 = vadd.f32 %v3236_v7, %v3108_v23  ;;  %v3360_v27 = vadd.f32 %v3236_v7, %v3112_v40  ;;  %v3364_v42 = vadd.f32 %v3236_v7, %v3116_v48 }
 0x1ba   :  { %v3368_v3 = vadd.f32 %v3236_v7, %v3120_v11  ;;  %v3372_v63 = vadd.f32 %v3236_v7, %v3124_v35  ;;  %v3376_v25 = vadd.f32 %v3236_v7, %v3128_v39  ;;  %v3380_v23 = vadd.f32 %v3236_v7, %v3132_v0 }
 0x1bb   :  { %v3384_v40 = vadd.f32 %v3236_v7, %v3136_v31  ;;  %v3388_v48 = vadd.f32 %v3236_v7, %v3140_v29  ;;  %v3392_v11 = vadd.f32 %v3236_v7, %v3144_v20  ;;  %v3396_v35 = vadd.f32 %v3236_v7, %v3148_v43 }
 0x1bc   :  { %v3400_v39 = vadd.f32 %v3236_v7, %v3152_v54  ;;  %v3404_v0 = vadd.f32 %v3236_v7, %v3156_v44  ;;  %v3408_v31 = vadd.f32 %v3236_v7, %v3160_v50  ;;  %v3412_v29 = vadd.f32 %v3236_v7, %v3164_v8  ;;  %v4355_v8 = vld [vmem:[#allocation3_spill] sm:$0xff] }
 0x1bd   :  { %v3416_v20 = vadd.f32 %v3236_v7, %v3168_v19  ;;  %v3420_v43 = vadd.f32 %v3236_v7, %v3172_v2  ;;  %v3424_v54 = vadd.f32 %v3236_v7, %v3176_v12  ;;  %v3428_v44 = vadd.f32 %v3236_v7, %v3180_v36 }
 0x1be   :  { %v3432_v50 = vadd.f32 %v3236_v7, %v3184_v56  ;;  %v3436_v19 = vadd.f32 %v3236_v7, %v4355_v8  ;;  %v3440_v2 = vadd.f32 %v3236_v7, %v4356_v30  ;;  %v3443_v60 = vadd.f32 %v3236_v7, %v1298_v6  ;;  %v4364_v30 = vld [vmem:[#allocation8_spill] sm:$0xff]  ;;  %v4366_v6 = vld [vmem:[#allocation6_spill] sm:$0xff] }
 0x1bf   :  { %4354 = vst [vmem:[#allocation20_spill] sm:$0xff] %v3428_v44  ;;  %v3446_v12 = vadd.f32 %v3236_v7, %v1299_v41  ;;  %v3449_v36 = vadd.f32 %v3236_v7, %v1300_v34  ;;  %v3452_v56 = vadd.f32 %v3236_v7, %v1301_v28  ;;  %v3455_v14 = vadd.f32 %v3236_v7, %v1302_v4  ;;  %v4370_v28 = vld [vmem:[#allocation12_spill] sm:$0xff]  ;;  %v4372_v4 = vld [vmem:[#allocation15_spill] sm:$0xff] }
 0x1c0   :  { %4357 = vst [vmem:[#allocation19_spill] sm:$0xff] %v3440_v2  ;;  %4358 = vst [vmem:[#allocation21_spill] sm:$0xff] %v3443_v60  ;;  %v3458_v8 = vadd.f32 %v3236_v7, %v1303_v21  ;;  %v3462_v2 = vadd.f32 %v3236_v7, %v4364_v30  ;;  %v3466_v41 = vadd.f32 %v3236_v7, %v4366_v6  ;;  %vm1383_vm0 = vcmp.ge.f32.partialorder %v3248_v59, 0.0 }
 0x1c1   :  { %4359 = vst [vmem:[#allocation23_spill] sm:$0xff] %v3446_v12  ;;  %4360 = vst [vmem:[#allocation25_spill] sm:$0xff] %v3449_v36  ;;  %v4368_v12 = vld [vmem:[#allocation9_spill] sm:$0xff]  ;;  %v3478_v21 = vadd.f32 %v3236_v7, %v4372_v4  ;;  %vm1384_vm1 = vcmp.ge.f32.partialorder %v3252_v24, 0.0  ;;  %vm1385_vm2 = vcmp.ge.f32.partialorder %v3256_v61, 0.0  ;;  %vm1386_vm3 = vcmp.ge.f32.partialorder %v3260_v62, 0.0 }
 0x1c2   :  { %4361 = vst [vmem:[#allocation24_spill] sm:$0xff] %v3452_v56  ;;  %4362 = vst [vmem:[#allocation26_spill] sm:$0xff] %v3455_v14  ;;  %v3470_v34 = vadd.f32 %v3236_v7, %v4368_v12  ;;  %v3474_v56 = vadd.f32 %v3236_v7, %v4370_v28  ;;  %v3494_v28 = vadd.f32 %v3236_v7, %v3232_v57  ;;  %vm1387_vm4 = vcmp.ge.f32.partialorder %v3264_v47, 0.0 }
 0x1c3   :  { %4363 = vst [vmem:[#allocation22_spill] sm:$0xff] %v3458_v8  ;;  %4365 = vst [vmem:[#allocation10_spill] sm:$0xff] %v3462_v2  ;;  %v4374_v8 = vld [vmem:[#allocation14_spill] sm:$0xff]  ;;  %v4376_v2 = vld [vmem:[#allocation16_spill] sm:$0xff]  ;;  %vm1388_vm5 = vcmp.ge.f32.partialorder %v3268_v22, 0.0  ;;  %vm1389_vm6 = vcmp.ge.f32.partialorder %v3272_v58, 0.0 }
 0x1c4   :  { %4367 = vst [vmem:[#allocation4_spill] sm:$0xff] %v3466_v41  ;;  %4369 = vst [vmem:[#allocation7_spill] sm:$0xff] %v3470_v34  ;;  %v3482_v30 = vadd.f32 %v3236_v7, %v4374_v8  ;;  %v3486_v6 = vadd.f32 %v3236_v7, %v4376_v2  ;;  %v4378_v41 = vld [vmem:[#allocation18_spill] sm:$0xff]  ;;  %vm1390_vm7 = vcmp.ge.f32.partialorder %v3276_v32, 0.0  ;;  %vm1391_vm8 = vcmp.ge.f32.partialorder %v3280_v1, 0.0 }
 0x1c5   :  { %4371 = vst [vmem:[#allocation13_spill] sm:$0xff] %v3474_v56  ;;  %4373 = vst [vmem:[#allocation17_spill] sm:$0xff] %v3478_v21  ;;  %v3490_v12 = vadd.f32 %v3236_v7, %v4378_v41  ;;  %vm1392_vm9 = vcmp.ge.f32.partialorder %v3284_v13, 0.0  ;;  %v1447_v7 = vmul.f32 0.2, %v3248_v59  ;;  %vm1393_vm10 = vcmp.ge.f32.partialorder %v3288_v37, 0.0 }
 0x1c6   :  { %4375 = vst [vmem:[#allocation11_spill] sm:$0xff] %v3482_v30  ;;  %4377 = vst [vmem:[#allocation3_spill] sm:$0xff] %v3486_v6  ;;  %v1448_v57 = vmul.f32 0.2, %v3252_v24  ;;  %v1449_v2 = vmul.f32 0.2, %v3256_v61 }
 0x1c7   :  { %4379 = vst [vmem:[#allocation5_spill] sm:$0xff] %v3490_v12  ;;  %4380 = vst [vmem:[#allocation8_spill] sm:$0xff] %v3494_v28  ;;  %v1450_v8 = vmul.f32 0.2, %v3260_v62  ;;  %v1451_v41 = vmul.f32 0.2, %v3264_v47  ;;  %v3520_v30 = vsel %vm1383_vm0, %v3248_v59, %v1447_v7 }
 0x1c8   :  { %v1452_v4 = vmul.f32 0.2, %v3268_v22  ;;  %vm1394_vm11 = vcmp.ge.f32.partialorder %v3292_v46, 0.0  ;;  %v1453_v28 = vmul.f32 0.2, %v3272_v58  ;;  %4381 = vst [vmem:[#allocation6_spill] sm:$0xff] %v3520_v30  ;;  %v3531_v14 = vsel %vm1384_vm1, %v3252_v24, %v1448_v57 }
 0x1c9   :  { %v1454_v12 = vmul.f32 0.2, %v3276_v32  ;;  %v1455_v6 = vmul.f32 0.2, %v3280_v1  ;;  %vm1395_vm12 = vcmp.ge.f32.partialorder %v3296_v53, 0.0  ;;  %4382 = vst [vmem:[#allocation9_spill] sm:$0xff] %v3531_v14  ;;  %v3546_v30 = vsel %vm1385_vm2, %v3256_v61, %v1449_v2 }
 0x1ca   :  { %v1456_v21 = vmul.f32 0.2, %v3284_v13  ;;  %v1457_v56 = vmul.f32 0.2, %v3288_v37  ;;  %v3526_v34 = vmul.f32 0.2, %v3292_v46 }
 0x1cb   :  { %vm1396_vm13 = vcmp.ge.f32.partialorder %v3300_v52, 0.0  ;;  %v3535_v36 = vmul.f32 0.2, %v3296_v53  ;;  %v3538_v59 = vmul.f32 0.2, %v3300_v52  ;;  %4384 = vst [vmem:[#allocation15_spill] sm:$0xff] %v3546_v30 }
 0x1cc   :  { %v3541_v7 = vmul.f32 0.2, %v3304_v55  ;;  %vm1397_vm14 = vcmp.ge.f32.partialorder %v3304_v55, 0.0  ;;  %v3550_v24 = vmul.f32 0.2, %v3308_v5  ;;  %vm1398_vm15 = vcmp.ge.f32.partialorder %v3308_v5, 0.0 }
 0x1cd   :  { %v3553_v57 = vmul.f32 0.2, %v3312_v17  ;;  %v3556_v14 = vmul.f32 0.2, %v3316_v10  ;;  %v3565_v61 = vmul.f32 0.2, %v3320_v18 }
 0x1ce   :  { %4383 = vst [vmem:[#allocation12_spill] sm:$0xff] %v3541_v7  ;;  %v3561_v7 = vsel %vm1386_vm3, %v3260_v62, %v1450_v8  ;;  %v3568_v2 = vmul.f32 0.2, %v3324_v33  ;;  %v3571_v30 = vmul.f32 0.2, %v3328_v49  ;;  %vm1399_vm0 = vcmp.ge.f32.partialorder %v3312_v17, 0.0 }
 0x1cf   :  { %4385 = vst [vmem:[#allocation14_spill] sm:$0xff] %v3556_v14  ;;  %4386 = vst [vmem:[#allocation16_spill] sm:$0xff] %v3561_v7  ;;  %v3576_v14 = vsel %vm1387_vm4, %v3264_v47, %v1451_v41  ;;  %v3580_v62 = vmul.f32 0.2, %v3332_v38  ;;  %v3583_v8 = vmul.f32 0.2, %v3336_v51 }
 0x1d0   :  { %4387 = vst [vmem:[#allocation18_spill] sm:$0xff] %v3571_v30  ;;  %4388 = vst [vmem:[#allocation27_spill] sm:$0xff] %v3576_v14  ;;  %v3586_v7 = vmul.f32 0.2, %v3340_v9  ;;  %v3591_v30 = vsel %vm1388_vm5, %v3268_v22, %v1452_v4  ;;  %vm1400_vm1 = vcmp.ge.f32.partialorder %v3316_v10, 0.0  ;;  %vm1401_vm2 = vcmp.ge.f32.partialorder %v3320_v18, 0.0 }
 0x1d1   :  { %4390 = vst [vmem:[#allocation29_spill] sm:$0xff] %v3591_v30  ;;  %v3595_v47 = vmul.f32 0.2, %v3344_v26  ;;  %v3598_v41 = vmul.f32 0.2, %v3348_v16  ;;  %vm1402_vm3 = vcmp.ge.f32.partialorder %v3324_v33, 0.0 }
 0x1d2   :  { %4389 = vst [vmem:[#allocation28_spill] sm:$0xff] %v3586_v7  ;;  %v3601_v14 = vmul.f32 0.2, %v3352_v45  ;;  %v3606_v7 = vsel %vm1389_vm6, %v3272_v58, %v1453_v28  ;;  %v3610_v22 = vmul.f32 0.2, %v3356_v15  ;;  %vm1405_vm6 = vcmp.ge.f32.partialorder %v3336_v51, 0.0 }
 0x1d3   :  { %4392 = vst [vmem:[#allocation31_spill] sm:$0xff] %v3606_v7  ;;  %v3613_v4 = vmul.f32 0.2, %v3360_v27  ;;  %v3616_v30 = vmul.f32 0.2, %v3364_v42 }
 0x1d4   :  { %4391 = vst [vmem:[#allocation30_spill] sm:$0xff] %v3601_v14  ;;  %v3621_v14 = vsel %vm1390_vm7, %v3276_v32, %v1454_v12  ;;  %v3627_v58 = vmul.f32 0.2, %v3368_v3  ;;  %v3630_v28 = vmul.f32 0.2, %v3372_v63  ;;  %v3638_v32 = vsel %vm1391_vm8, %v3280_v1, %v1455_v6 }
 0x1d5   :  { %4393 = vst [vmem:[#allocation32_spill] sm:$0xff] %v3621_v14  ;;  %v3633_v7 = vmul.f32 0.2, %v3376_v25  ;;  %4395 = vst [vmem:[#allocation34_spill] sm:$0xff] %v3638_v32  ;;  %v3645_v12 = vmul.f32 0.2, %v3380_v23  ;;  %v3656_v1 = vsel %vm1392_vm9, %v3284_v13, %v1456_v21  ;;  %v3674_v13 = vsel %vm1393_vm10, %v3288_v37, %v1457_v56 }
 0x1d6   :  { %v3648_v14 = vmul.f32 0.2, %v3384_v40  ;;  %4397 = vst [vmem:[#allocation36_spill] sm:$0xff] %v3656_v1  ;;  %vm1409_vm8 = vcmp.ge.f32.partialorder %v3352_v45, 0.0  ;;  %v3663_v6 = vmul.f32 0.2, %v3392_v11  ;;  %v3693_v37 = vsel %vm1394_vm11, %v3292_v46, %v3526_v34 }
 0x1d7   :  { %4394 = vst [vmem:[#allocation33_spill] sm:$0xff] %v3633_v7  ;;  %v3651_v7 = vmul.f32 0.2, %v3388_v48  ;;  %v3666_v32 = vmul.f32 0.2, %v3396_v35  ;;  %4399 = vst [vmem:[#allocation38_spill] sm:$0xff] %v3674_v13  ;;  %v3712_v46 = vsel %vm1395_vm12, %v3296_v53, %v3535_v36  ;;  %v3731_v53 = vsel %vm1396_vm13, %v3300_v52, %v3538_v59 }
 0x1d8   :  { %vm1413_vm9 = vcmp.ge.f32.partialorder %v3368_v3, 0.0  ;;  %v3681_v21 = vmul.f32 0.2, %v3404_v0  ;;  %v3684_v1 = vmul.f32 0.2, %v3408_v31  ;;  %4401 = vst [vmem:[#allocation40_spill] sm:$0xff] %v3693_v37 }
 0x1d9   :  { %4396 = vst [vmem:[#allocation35_spill] sm:$0xff] %v3651_v7  ;;  %v3669_v7 = vmul.f32 0.2, %v3400_v39  ;;  %vm1417_vm10 = vcmp.ge.f32.partialorder %v3384_v40, 0.0  ;;  %v3700_v56 = vmul.f32 0.2, %v3416_v20 }
 0x1da   :  { %v3703_v13 = vmul.f32 0.2, %v3420_v43  ;;  %4404 = vst [vmem:[#allocation43_spill] sm:$0xff] %v3712_v46  ;;  %vm1421_vm11 = vcmp.ge.f32.partialorder %v3400_v39, 0.0  ;;  %v3719_v34 = vmul.f32 0.2, %v3428_v44 }
 0x1db   :  { %4398 = vst [vmem:[#allocation37_spill] sm:$0xff] %v3669_v7  ;;  %v3687_v7 = vmul.f32 0.2, %v3412_v29  ;;  %v3722_v37 = vmul.f32 0.2, %v3432_v50  ;;  %4408 = vst [vmem:[#allocation47_spill] sm:$0xff] %v3731_v53 }
 0x1dc   :  { %4402 = vst [vmem:[#allocation41_spill] sm:$0xff] %v3703_v13  ;;  %4405 = vst [vmem:[#allocation44_spill] sm:$0xff] %v3719_v34  ;;  %vm1425_vm12 = vcmp.ge.f32.partialorder %v3416_v20, 0.0  ;;  %v4409_v36 = vld [vmem:[#allocation19_spill] sm:$0xff]  ;;  %v4414_v13 = vld [vmem:[#allocation12_spill] sm:$0xff]  ;;  %vm1429_vm13 = vcmp.ge.f32.partialorder %v3432_v50, 0.0 }
 0x1dd   :  { %4400 = vst [vmem:[#allocation39_spill] sm:$0xff] %v3687_v7  ;;  %v3706_v7 = vmul.f32 0.2, %v3424_v54  ;;  %4406 = vst [vmem:[#allocation45_spill] sm:$0xff] %v3722_v37  ;;  %v3738_v46 = vmul.f32 0.2, %v4409_v36  ;;  %v3750_v52 = vsel %vm1397_vm14, %v3304_v55, %v4414_v13  ;;  %v3769_v55 = vsel %vm1398_vm15, %v3308_v5, %v3550_v24 }
 0x1de   :  { %v3741_v37 = vmul.f32 0.2, %v3443_v60  ;;  %4415 = vst [vmem:[#allocation12_spill] sm:$0xff] %v3750_v52  ;;  %v4416_v59 = vld [vmem:[#allocation25_spill] sm:$0xff]  ;;  %4422 = vst [vmem:[#allocation54_spill] sm:$0xff] %v3769_v55  ;;  %v4423_v13 = vld [vmem:[#allocation22_spill] sm:$0xff]  ;;  %v3782_v5 = vsel %vm1399_vm0, %v3312_v17, %v3553_v57 }
 0x1df   :  { %4403 = vst [vmem:[#allocation42_spill] sm:$0xff] %v3706_v7  ;;  %v3725_v7 = vmul.f32 0.2, %v3436_v19  ;;  %4410 = vst [vmem:[#allocation48_spill] sm:$0xff] %v3738_v46  ;;  %v3757_v53 = vmul.f32 0.2, %v4416_v59 }
 0x1e0   :  { %4411 = vst [vmem:[#allocation49_spill] sm:$0xff] %v3741_v37  ;;  %v4418_v37 = vld [vmem:[#allocation24_spill] sm:$0xff]  ;;  %v1501_v52 = vmul.f32 0.2, %v4423_v13  ;;  %4426 = vst [vmem:[#allocation55_spill] sm:$0xff] %v3782_v5  ;;  %vm1437_vm15 = vcmp.ge.f32.partialorder %v4423_v13, 0.0 }
 0x1e1   :  { %4407 = vst [vmem:[#allocation46_spill] sm:$0xff] %v3725_v7  ;;  %v4412_v7 = vld [vmem:[#allocation23_spill] sm:$0xff]  ;;  %4417 = vst [vmem:[#allocation51_spill] sm:$0xff] %v3757_v53  ;;  %v3760_v46 = vmul.f32 0.2, %v4418_v37  ;;  %v4425_v60 = vld [vmem:[#allocation4_spill] sm:$0xff] }
 0x1e2   :  { %v3744_v34 = vmul.f32 0.2, %v4412_v7  ;;  %vm1433_vm14 = vcmp.ge.f32.partialorder %v4412_v7, 0.0  ;;  %v4427_v24 = vld [vmem:[#allocation7_spill] sm:$0xff]  ;;  %v4429_v59 = vld [vmem:[#allocation17_spill] sm:$0xff]  ;;  %v4430_v36 = vld [vmem:[#allocation14_spill] sm:$0xff] }
 0x1e3   :  { %4419 = vst [vmem:[#allocation52_spill] sm:$0xff] %v3760_v46  ;;  %v4424_v46 = vld [vmem:[#allocation10_spill] sm:$0xff]  ;;  %v1504_v55 = vmul.f32 0.2, %v4427_v24  ;;  %v1506_v7 = vmul.f32 0.2, %v4429_v59  ;;  %v3795_v17 = vsel %vm1400_vm1, %v3316_v10, %v4430_v36  ;;  %v3808_v10 = vsel %vm1401_vm2, %v3320_v18, %v3565_v61 }
 0x1e4   :  { %4413 = vst [vmem:[#allocation50_spill] sm:$0xff] %v3744_v34  ;;  %v4420_v34 = vld [vmem:[#allocation26_spill] sm:$0xff]  ;;  %v1502_v53 = vmul.f32 0.2, %v4424_v46  ;;  %v4432_v57 = vld [vmem:[#allocation11_spill] sm:$0xff]  ;;  %v4434_v46 = vld [vmem:[#allocation5_spill] sm:$0xff]  ;;  %v3835_v61 = vsel %vm1405_vm6, %v3336_v51, %v3583_v8 }
 0x1e5   :  { %v3763_v44 = vmul.f32 0.2, %v4420_v34  ;;  %v4428_v34 = vld [vmem:[#allocation13_spill] sm:$0xff]  ;;  %vm1443_vm4 = vcmp.ge.f32.partialorder %v4432_v57, 0.0  ;;  %v4433_v5 = vld [vmem:[#allocation3_spill] sm:$0xff]  ;;  %vm1445_vm1 = vcmp.ge.f32.partialorder %v4434_v46, 0.0 }
 0x1e6   :  { %v1505_v37 = vmul.f32 0.2, %v4428_v34  ;;  %4431 = vst [vmem:[#allocation13_spill] sm:$0xff] %v3795_v17  ;;  %vm1441_vm0 = vcmp.ge.f32.partialorder %v4428_v34, 0.0  ;;  %v1507_v24 = vmul.f32 0.2, %v4432_v57  ;;  %v3817_v57 = vsel %vm1402_vm3, %v3324_v33, %v3568_v2 }
 0x1e7   :  { %4421 = vst [vmem:[#allocation53_spill] sm:$0xff] %v3763_v44  ;;  %v1503_v44 = vmul.f32 0.2, %v4425_v60  ;;  %v1508_v60 = vmul.f32 0.2, %v4433_v5  ;;  %v4435_v36 = vld [vmem:[#allocation8_spill] sm:$0xff] }
 0x1e8   :  { %v1509_v13 = vmul.f32 0.2, %v4434_v46  ;;  %vm1446_vm5 = vcmp.ge.f32.partialorder %v4435_v36, 0.0  ;;  %v1510_v17 = vmul.f32 0.2, %v4435_v36  ;;  %v4436_v5 = vld [vmem:[#allocation18_spill] sm:$0xff] }
 0x1e9   :  { %vm4437_vm7 = vcmp.ge.f32.partialorder %v3328_v49, 0.0  ;;  %vm4438_vm2 = vcmp.ge.f32.partialorder %v3332_v38, 0.0  ;;  %v4439_v33 = vld [vmem:[#allocation28_spill] sm:$0xff]  ;;  %vm4440_vm3 = vcmp.ge.f32.partialorder %v3340_v9, 0.0  ;;  %v4443_v51 = vld [vmem:[#allocation30_spill] sm:$0xff]  ;;  %vm4444_vm6 = vcmp.ge.f32.partialorder %v3356_v15, 0.0 }
 0x1ea   :  { %v3823_v59 = vsel %vm4437_vm7, %v3328_v49, %v4436_v5  ;;  %v3829_v18 = vsel %vm4438_vm2, %v3332_v38, %v3580_v62  ;;  %v3841_v2 = vsel %vm4440_vm3, %v3340_v9, %v4439_v33  ;;  %vm4441_vm7 = vcmp.ge.f32.partialorder %v3344_v26, 0.0  ;;  %v4477_v5 = vld [vmem:[#allocation23_spill] sm:$0xff] }
 0x1eb   :  { %v3847_v49 = vsel %vm4441_vm7, %v3344_v26, %v3595_v47  ;;  %vm4442_vm2 = vcmp.ge.f32.partialorder %v3348_v16, 0.0  ;;  %v3859_v62 = vsel %vm1409_vm8, %v3352_v45, %v4443_v51  ;;  %v3865_v9 = vsel %vm4444_vm6, %v3356_v15, %v3610_v22  ;;  %v4479_v51 = vld [vmem:[#allocation25_spill] sm:$0xff] }
 0x1ec   :  { %v3853_v38 = vsel %vm4442_vm2, %v3348_v16, %v3598_v41  ;;  %vm4445_vm3 = vcmp.ge.f32.partialorder %v3360_v27, 0.0  ;;  %vm4446_vm7 = vcmp.ge.f32.partialorder %v3364_v42, 0.0  ;;  %v3883_v45 = vsel %vm1413_vm9, %v3368_v3, %v3627_v58 }
 0x1ed   :  { %v3871_v26 = vsel %vm4445_vm3, %v3360_v27, %v3613_v4  ;;  %v3877_v16 = vsel %vm4446_vm7, %v3364_v42, %v3616_v30  ;;  %vm4447_vm8 = vcmp.ge.f32.partialorder %v3372_v63, 0.0  ;;  %v4448_v27 = vld [vmem:[#allocation33_spill] sm:$0xff]  ;;  %vm4449_vm2 = vcmp.ge.f32.partialorder %v3376_v25, 0.0  ;;  %v4465_v4 = vld [vmem:[#allocation20_spill] sm:$0xff] }
 0x1ee   :  { %v3889_v15 = vsel %vm4447_vm8, %v3372_v63, %v3630_v28  ;;  %v3895_v8 = vsel %vm4449_vm2, %v3376_v25, %v4448_v27  ;;  %vm4450_vm6 = vcmp.ge.f32.partialorder %v3380_v23, 0.0  ;;  %v3907_v3 = vsel %vm1417_vm10, %v3384_v40, %v3648_v14  ;;  %v4451_v63 = vld [vmem:[#allocation35_spill] sm:$0xff]  ;;  %v4455_v40 = vld [vmem:[#allocation37_spill] sm:$0xff] }
 0x1ef   :  { %v3901_v42 = vsel %vm4450_vm6, %v3380_v23, %v3645_v12  ;;  %vm4452_vm9 = vcmp.ge.f32.partialorder %v3388_v48, 0.0  ;;  %vm4453_vm3 = vcmp.ge.f32.partialorder %v3392_v11, 0.0  ;;  %vm4454_vm7 = vcmp.ge.f32.partialorder %v3396_v35, 0.0  ;;  %v4471_v12 = vld [vmem:[#allocation19_spill] sm:$0xff] }
 0x1f0   :  { %v3913_v30 = vsel %vm4452_vm9, %v3388_v48, %v4451_v63  ;;  %v3919_v25 = vsel %vm4453_vm3, %v3392_v11, %v3663_v6  ;;  %v3925_v23 = vsel %vm4454_vm7, %v3396_v35, %v3666_v32  ;;  %v3931_v14 = vsel %vm1421_vm11, %v3400_v39, %v4455_v40  ;;  %v4458_v35 = vld [vmem:[#allocation39_spill] sm:$0xff]  ;;  %v4473_v6 = vld [vmem:[#allocation49_spill] sm:$0xff]  ;;  %v4481_v63 = vld [vmem:[#allocation52_spill] sm:$0xff] }
 0x1f1   :  { %vm4456_vm10 = vcmp.ge.f32.partialorder %v3404_v0, 0.0  ;;  %vm4457_vm8 = vcmp.ge.f32.partialorder %v3408_v31, 0.0  ;;  %vm4459_vm2 = vcmp.ge.f32.partialorder %v3412_v29, 0.0  ;;  %v3955_v39 = vsel %vm1425_vm12, %v3416_v20, %v3700_v56  ;;  %v4467_v20 = vld [vmem:[#allocation45_spill] sm:$0xff]  ;;  %v4482_v40 = vld [vmem:[#allocation24_spill] sm:$0xff] }
 0x1f2   :  { %v3937_v48 = vsel %vm4456_vm10, %v3404_v0, %v3681_v21  ;;  %v3943_v11 = vsel %vm4457_vm8, %v3408_v31, %v3684_v1  ;;  %v3949_v47 = vsel %vm4459_vm2, %v3412_v29, %v4458_v35  ;;  %v4460_v0 = vld [vmem:[#allocation41_spill] sm:$0xff]  ;;  %vm4461_vm11 = vcmp.ge.f32.partialorder %v3420_v43, 0.0  ;;  %v4462_v31 = vld [vmem:[#allocation42_spill] sm:$0xff]  ;;  %v4464_v29 = vld [vmem:[#allocation44_spill] sm:$0xff] }
 0x1f3   :  { %v3961_v41 = vsel %vm4461_vm11, %v3420_v43, %v4460_v0  ;;  %vm4463_vm6 = vcmp.ge.f32.partialorder %v3424_v54, 0.0  ;;  %vm4466_vm9 = vcmp.ge.f32.partialorder %v4465_v4, 0.0  ;;  %v3979_v28 = vsel %vm1429_vm13, %v3432_v50, %v4467_v20  ;;  %v4468_v43 = vld [vmem:[#allocation46_spill] sm:$0xff]  ;;  %v4474_v21 = vld [vmem:[#allocation21_spill] sm:$0xff] }
 0x1f4   :  { %v3967_v22 = vsel %vm4463_vm6, %v3424_v54, %v4462_v31  ;;  %v3973_v58 = vsel %vm4466_vm9, %v4465_v4, %v4464_v29  ;;  %vm4469_vm12 = vcmp.ge.f32.partialorder %v3436_v19, 0.0  ;;  %v4470_v54 = vld [vmem:[#allocation48_spill] sm:$0xff]  ;;  %vm4472_vm3 = vcmp.ge.f32.partialorder %v4471_v12, 0.0  ;;  %v4476_v50 = vld [vmem:[#allocation50_spill] sm:$0xff]  ;;  %v4484_v0 = vld [vmem:[#allocation53_spill] sm:$0xff] }
 0x1f5   :  { %v3985_v32 = vsel %vm4469_vm12, %v3436_v19, %v4468_v43  ;;  %v3991_v1 = vsel %vm4472_vm3, %v4471_v12, %v4470_v54  ;;  %vm4475_vm7 = vcmp.ge.f32.partialorder %v4474_v21, 0.0  ;;  %v4003_v33 = vsel %vm1433_vm14, %v4477_v5, %v4476_v50  ;;  %v4478_v19 = vld [vmem:[#allocation51_spill] sm:$0xff]  ;;  %v4485_v31 = vld [vmem:[#allocation26_spill] sm:$0xff]  ;;  %v4490_v12 = vld [vmem:[#allocation4_spill] sm:$0xff] }
 0x1f6   :  { %v3997_v56 = vsel %vm4475_vm7, %v4474_v21, %v4473_v6  ;;  %vm4480_vm13 = vcmp.ge.f32.partialorder %v4479_v51, 0.0  ;;  %vm4483_vm10 = vcmp.ge.f32.partialorder %v4482_v40, 0.0  ;;  %vm4486_vm8 = vcmp.ge.f32.partialorder %v4485_v31, 0.0  ;;  %v4487_v4 = vld [vmem:[#allocation22_spill] sm:$0xff]  ;;  %v4492_v21 = vld [vmem:[#allocation7_spill] sm:$0xff]  ;;  %v4494_v5 = vld [vmem:[#allocation17_spill] sm:$0xff] }
 0x1f7   :  { %v4009_v27 = vsel %vm4480_vm13, %v4479_v51, %v4478_v19  ;;  %v4015_v35 = vsel %vm4483_vm10, %v4482_v40, %v4481_v63  ;;  %v4021_v29 = vsel %vm4486_vm8, %v4485_v31, %v4484_v0  ;;  %v4026_v20 = vsel %vm1437_vm15, %v4487_v4, %v1501_v52  ;;  %v4488_v43 = vld [vmem:[#allocation10_spill] sm:$0xff]  ;;  %v4496_v19 = vld [vmem:[#allocation11_spill] sm:$0xff]  ;;  %v4502_v63 = vld [vmem:[#allocation9_spill] sm:$0xff] }
 0x1f8   :  { %vm4489_vm14 = vcmp.ge.f32.partialorder %v4488_v43, 0.0  ;;  %vm4491_vm2 = vcmp.ge.f32.partialorder %v4490_v12, 0.0  ;;  %vm4493_vm11 = vcmp.ge.f32.partialorder %v4492_v21, 0.0  ;;  %v4046_v52 = vsel %vm1441_vm0, %v4428_v34, %v1505_v37  ;;  %v4497_v51 = vld [vmem:[#allocation3_spill] sm:$0xff]  ;;  %v4501_v34 = vld [vmem:[#allocation6_spill] sm:$0xff]  ;;  %v4504_v0 = vld [vmem:[#allocation16_spill] sm:$0xff] }
 0x1f9   :  { %v4031_v54 = vsel %vm4489_vm14, %v4488_v43, %v1502_v53  ;;  %v4036_v6 = vsel %vm4491_vm2, %v4490_v12, %v1503_v44  ;;  %v4041_v50 = vsel %vm4493_vm11, %v4492_v21, %v1504_v55  ;;  %vm4495_vm15 = vcmp.ge.f32.partialorder %v4494_v5, 0.0  ;;  %v4505_v4 = vld [vmem:[#allocation27_spill] sm:$0xff]  ;;  %v4506_v43 = vld [vmem:[#allocation29_spill] sm:$0xff]  ;;  %v4508_v21 = vld [vmem:[#allocation32_spill] sm:$0xff] }
 0x1fa   :  { %v4051_v53 = vsel %vm4495_vm15, %v4494_v5, %v1506_v7  ;;  %v4056_v44 = vsel %vm1443_vm4, %v4496_v19, %v1507_v24  ;;  %vm4498_vm6 = vcmp.ge.f32.partialorder %v4497_v51, 0.0  ;;  %v4066_v37 = vsel %vm1445_vm1, %v4434_v46, %v1509_v13  ;;  %v4503_v24 = vld [vmem:[#allocation15_spill] sm:$0xff]  ;;  %v4509_v19 = vld [vmem:[#allocation34_spill] sm:$0xff]  ;;  %v4510_v46 = vld [vmem:[#allocation36_spill] sm:$0xff] }
 0x1fb   :  { %v4061_v55 = vsel %vm4498_vm6, %v4497_v51, %v1508_v60  ;;  %4500 = vst [vmem:[#allocation5_spill] sm:$0xff] %v4066_v37  ;;  %v4071_v7 = vsel %vm1446_vm5, %v4435_v36, %v1510_v17  ;;  %v2071_v40 = vpack.c.bf16 %v4502_v63, %v4501_v34  ;;  %v2076_v31 = vpack.c.bf16 %v4504_v0, %v4503_v24  ;;  %v4507_v12 = vld [vmem:[#allocation31_spill] sm:$0xff]  ;;  %v4511_v51 = vld [vmem:[#allocation38_spill] sm:$0xff]  ;;  %v4512_v37 = vld [vmem:[#allocation40_spill] sm:$0xff] }
 0x1fc   :  { %4499 = vst [vmem:[#allocation14_spill] sm:$0xff] %v4061_v55  ;;  %v2081_v60 = vpack.c.bf16 %v4506_v43, %v4505_v4  ;;  %v2086_v5 = vpack.c.bf16 %v4508_v21, %v4507_v12  ;;  %v2091_v13 = vpack.c.bf16 %v4510_v46, %v4509_v19  ;;  %v2096_v55 = vpack.c.bf16 %v4512_v37, %v4511_v51  ;;  %v4513_v17 = vld [vmem:[#allocation43_spill] sm:$0xff]  ;;  %v4515_v63 = vld [vmem:[#allocation12_spill] sm:$0xff]  ;;  %v4516_v24 = vld [vmem:[#allocation54_spill] sm:$0xff] }
 0x1fd   :  { %2072 = vst [vmem:[%s4238_s5] sm:$0xff] %v2071_v40   ;;  %2228 = vst [vmem:[%s4238_s5 + $0x8] sm:$0xff] %v2076_v31   ;;  %v4514_v36 = vld [vmem:[#allocation47_spill] sm:$0xff]  ;;  %v2106_v0 = vpack.c.bf16 %v4516_v24, %v4515_v63  ;;  %v4518_v43 = vld [vmem:[#allocation13_spill] sm:$0xff]  ;;  %v2116_v37 = vpack.c.bf16 %v3817_v57, %v3808_v10  ;;  %v2121_v40 = vpack.c.bf16 %v3829_v18, %v3823_v59 }
 0x1fe   :  { %v2101_v34 = vpack.c.bf16 %v4514_v36, %v4513_v17  ;;  %v4517_v4 = vld [vmem:[#allocation55_spill] sm:$0xff]  ;;  %2229 = vst [vmem:[%s4238_s5 + $0x10] sm:$0xff] %v2081_v60   ;;  %2230 = vst [vmem:[%s4238_s5 + $0x18] sm:$0xff] %v2086_v5   ;;  %v2126_v57 = vpack.c.bf16 %v3841_v2, %v3835_v61  ;;  %v2131_v10 = vpack.c.bf16 %v3853_v38, %v3847_v49 }
 0x1ff   :  { %v2111_v12 = vpack.c.bf16 %v4518_v43, %v4517_v4  ;;  %2231 = vst [vmem:[%s4238_s5 + $0x20] sm:$0xff] %v2091_v13   ;;  %2232 = vst [vmem:[%s4238_s5 + $0x28] sm:$0xff] %v2096_v55   ;;  %v2136_v31 = vpack.c.bf16 %v3865_v9, %v3859_v62  ;;  %v2141_v59 = vpack.c.bf16 %v3877_v16, %v3871_v26 }
 0x200   :  { %2233 = vst [vmem:[%s4238_s5 + $0x30] sm:$0xff] %v2101_v34   ;;  %2234 = vst [vmem:[%s4238_s5 + $0x38] sm:$0xff] %v2106_v0   ;;  %v2146_v18 = vpack.c.bf16 %v3889_v15, %v3883_v45  ;;  %v2151_v61 = vpack.c.bf16 %v3901_v42, %v3895_v8  ;;  %v2156_v2 = vpack.c.bf16 %v3913_v30, %v3907_v3 }
 0x201   :  { %2235 = vst [vmem:[%s4238_s5 + $0x40] sm:$0xff] %v2111_v12   ;;  %2236 = vst [vmem:[%s4238_s5 + $0x48] sm:$0xff] %v2116_v37   ;;  %v2161_v49 = vpack.c.bf16 %v3925_v23, %v3919_v25  ;;  %v2166_v38 = vpack.c.bf16 %v3937_v48, %v3931_v14  ;;  %v2171_v62 = vpack.c.bf16 %v3949_v47, %v3943_v11 }
 0x202   :  { %2237 = vst [vmem:[%s4238_s5 + $0x50] sm:$0xff] %v2121_v40   ;;  %2238 = vst [vmem:[%s4238_s5 + $0x58] sm:$0xff] %v2126_v57   ;;  %v2176_v9 = vpack.c.bf16 %v3961_v41, %v3955_v39  ;;  %v2181_v26 = vpack.c.bf16 %v3973_v58, %v3967_v22  ;;  %v2186_v16 = vpack.c.bf16 %v3985_v32, %v3979_v28  ;;  %v4520_v14 = vld [vmem:[#allocation5_spill] sm:$0xff] }
 0x203   :  { %2239 = vst [vmem:[%s4238_s5 + $0x60] sm:$0xff] %v2131_v10   ;;  %2240 = vst [vmem:[%s4238_s5 + $0x68] sm:$0xff] %v2136_v31   ;;  %v2191_v45 = vpack.c.bf16 %v3997_v56, %v3991_v1  ;;  %v2196_v15 = vpack.c.bf16 %v4009_v27, %v4003_v33  ;;  %v2201_v8 = vpack.c.bf16 %v4021_v29, %v4015_v35  ;;  %v4519_v25 = vld [vmem:[#allocation14_spill] sm:$0xff] }
 0x204   :  { %2241 = vst [vmem:[%s4238_s5 + $0x70] sm:$0xff] %v2141_v59   ;;  %2242 = vst [vmem:[%s4238_s5 + $0x78] sm:$0xff] %v2146_v18   ;;  %v2206_v42 = vpack.c.bf16 %v4031_v54, %v4026_v20  ;;  %v2211_v3 = vpack.c.bf16 %v4041_v50, %v4036_v6  ;;  %v2216_v30 = vpack.c.bf16 %v4051_v53, %v4046_v52 }
 0x205   :  { %2243 = vst [vmem:[%s4238_s5 + $0x80] sm:$0xff] %v2151_v61   ;;  %2244 = vst [vmem:[%s4238_s5 + $0x88] sm:$0xff] %v2156_v2   ;;  %v2221_v23 = vpack.c.bf16 %v4519_v25, %v4056_v44  ;;  %v2226_v48 = vpack.c.bf16 %v4071_v7, %v4520_v14 }
 0x206   :  { %2245 = vst [vmem:[%s4238_s5 + $0x90] sm:$0xff] %v2161_v49   ;;  %2246 = vst [vmem:[%s4238_s5 + $0x98] sm:$0xff] %v2166_v38  }
 0x207   :  { %2247 = vst [vmem:[%s4238_s5 + $0xa0] sm:$0xff] %v2171_v62   ;;  %2248 = vst [vmem:[%s4238_s5 + $0xa8] sm:$0xff] %v2176_v9  }
 0x208   :  { %2249 = vst [vmem:[%s4238_s5 + $0xb0] sm:$0xff] %v2181_v26   ;;  %2250 = vst [vmem:[%s4238_s5 + $0xb8] sm:$0xff] %v2186_v16  }
 0x209   :  { %2251 = vst [vmem:[%s4238_s5 + $0xc0] sm:$0xff] %v2191_v45   ;;  %2252 = vst [vmem:[%s4238_s5 + $0xc8] sm:$0xff] %v2196_v15  }
 0x20a   :  { %2253 = vst [vmem:[%s4238_s5 + $0xd0] sm:$0xff] %v2201_v8   ;;  %2254 = vst [vmem:[%s4238_s5 + $0xd8] sm:$0xff] %v2206_v42  }
 0x20b   :  { %2255 = vst [vmem:[%s4238_s5 + $0xe0] sm:$0xff] %v2211_v3   ;;  %2256 = vst [vmem:[%s4238_s5 + $0xe8] sm:$0xff] %v2216_v30  }
 0x20c   :  { %2257 = vst [vmem:[%s4238_s5 + $0xf0] sm:$0xff] %v2221_v23   ;;  %2258 = vst [vmem:[%s4238_s5 + $0xf8] sm:$0xff] %v2226_v48  }

// kernel: discriminator32_forward.6
= control target key start
LH: loop header
LB: loop body
LE: loop exit
PB: predicated region body
PF: predicated region fallthrough
CT: control target
= control target key end

     0   :  { %s2805_s1 = inlined_call_operand.vmem [shape: bf16[1024,128], index: 1, kind: input, shape index: {}]   ;;  %s2806_s0 = inlined_call_operand.vmem [shape: bf16[128,1024], index: 0, kind: input, shape index: {}]   ;;  %s2807_s2 = inlined_call_operand.vmem [shape: f32[1,128], index: 2, kind: input, shape index: {}]   ;;  %s2808_s3 = inlined_call_operand.vmem [shape: f32[1,128], index: 3, kind: input, shape index: {}]   ;;  %s2809_s4 = inlined_call_operand.vmem [shape: f32[1,128], index: 4, kind: input, shape index: {}]   ;;  %s2810_s5 = inlined_call_operand.vmem [shape: bf16[128,128], index: 5, kind: output, shape index: {}]  }
   0x1   :  { %v2126_v0 = vld [vmem:[%s2805_s1 + $0x40] sm:$0xff]   ;;  %v2130_v4 = vld [vmem:[%s2805_s1 + $0x48] sm:$0xff]   ;;  %v2134_v8 = vld [vmem:[%s2805_s1 + $0x50] sm:$0xff]  }
   0x2   :  { %v2127_v1 = vld [vmem:[%s2805_s1 + $0xc0] sm:$0xff]   ;;  %1870 = vmatprep.subr.bf16.mxu0 %v2126_v0  ;;  %v2131_v5 = vld [vmem:[%s2805_s1 + $0xc8] sm:$0xff]   ;;  %v2135_v9 = vld [vmem:[%s2805_s1 + $0xd0] sm:$0xff]  }
   0x3   :  { %v2128_v2 = vld [vmem:[%s2805_s1] sm:$0xff]   ;;  %1934 = vmatprep.subr.bf16.mxu1 %v2127_v1  ;;  %v2132_v6 = vld [vmem:[%s2805_s1 + $0x8] sm:$0xff]   ;;  %v2136_v10 = vld [vmem:[%s2805_s1 + $0x10] sm:$0xff]  }
   0x4   :  { %v2129_v3 = vld [vmem:[%s2805_s1 + $0x80] sm:$0xff]   ;;  %1871 = vmatpush3.bf16.msra.mxu0 %v2128_v2  ;;  %v2133_v7 = vld [vmem:[%s2805_s1 + $0x88] sm:$0xff]   ;;  %v2137_v11 = vld [vmem:[%s2805_s1 + $0x90] sm:$0xff]  }
   0x5   :  { %1935 = vmatpush3.bf16.msra.mxu1 %v2129_v3  ;;  %1872 = vmatprep.subr.bf16.mxu0 %v2130_v4  ;;  %v2138_v12 = vld [vmem:[%s2805_s1 + $0x58] sm:$0xff]   ;;  %v2142_v16 = vld [vmem:[%s2805_s1 + $0x60] sm:$0xff]   ;;  %v2146_v20 = vld [vmem:[%s2805_s1 + $0x68] sm:$0xff]  }
   0x6   :  { %1936 = vmatprep.subr.bf16.mxu1 %v2131_v5  ;;  %v2139_v13 = vld [vmem:[%s2805_s1 + $0xd8] sm:$0xff]   ;;  %v2143_v17 = vld [vmem:[%s2805_s1 + $0xe0] sm:$0xff]   ;;  %v2147_v21 = vld [vmem:[%s2805_s1 + $0xe8] sm:$0xff]  }
   0x7   :  { %v2140_v14 = vld [vmem:[%s2805_s1 + $0x18] sm:$0xff]   ;;  %v2144_v18 = vld [vmem:[%s2805_s1 + $0x20] sm:$0xff]   ;;  %v2148_v22 = vld [vmem:[%s2805_s1 + $0x28] sm:$0xff]  }
   0x8   :  { %1873 = vmatpush3.bf16.msra.mxu0 %v2132_v6  ;;  %v2141_v15 = vld [vmem:[%s2805_s1 + $0x98] sm:$0xff]   ;;  %v2145_v19 = vld [vmem:[%s2805_s1 + $0xa0] sm:$0xff]   ;;  %v2149_v23 = vld [vmem:[%s2805_s1 + $0xa8] sm:$0xff]  }
   0x9   :  { %1937 = vmatpush3.bf16.msra.mxu1 %v2133_v7  ;;  %1874 = vmatprep.subr.bf16.mxu0 %v2134_v8  ;;  %v2150_v24 = vld [vmem:[%s2805_s1 + $0x70] sm:$0xff]   ;;  %v2154_v28 = vld [vmem:[%s2805_s1 + $0x78] sm:$0xff]   ;;  %v57_v32 = vld [vmem:[%s2806_s0] sm:$0xff] }
   0xa   :  { %1938 = vmatprep.subr.bf16.mxu1 %v2135_v9  ;;  %v2151_v25 = vld [vmem:[%s2805_s1 + $0xf0] sm:$0xff]   ;;  %v2155_v29 = vld [vmem:[%s2805_s1 + $0xf8] sm:$0xff]   ;;  %v61_v33 = vld [vmem:[%s2806_s0 + $0x20] sm:$0xff] }
   0xb   :  { %v2152_v26 = vld [vmem:[%s2805_s1 + $0x30] sm:$0xff]   ;;  %v2156_v30 = vld [vmem:[%s2805_s1 + $0x38] sm:$0xff]   ;;  %v58_v34 = vld [vmem:[%s2806_s0 + $0x8] sm:$0xff]  ;;  %v1662_v35 = vcombine.low %v57_v32, %v61_v33  ;;  %v1663_v36 = vcombine.high %v57_v32, %v61_v33 }
   0xc   :  { %1875 = vmatpush3.bf16.msra.mxu0 %v2136_v10  ;;  %v2153_v27 = vld [vmem:[%s2805_s1 + $0xb0] sm:$0xff]   ;;  %v2157_v31 = vld [vmem:[%s2805_s1 + $0xb8] sm:$0xff]   ;;  %v62_v37 = vld [vmem:[%s2806_s0 + $0x28] sm:$0xff] }
   0xd   :  { %1939 = vmatpush3.bf16.msra.mxu1 %v2137_v11  ;;  %1876 = vmatprep.subr.bf16.mxu0 %v2138_v12  ;;  %v1664_v38 = vcombine.low %v58_v34, %v62_v37  ;;  %v1665_v39 = vcombine.high %v58_v34, %v62_v37  ;;  %v2158_v40 = vld [vmem:[%s2805_s1 + $0x140] sm:$0xff]   ;;  %v66_v47 = vld [vmem:[%s2806_s0 + $0x48] sm:$0xff]  ;;  %v2166_v62 = vld [vmem:[%s2805_s1 + $0x150] sm:$0xff]  }
   0xe   :  { %1940 = vmatprep.subr.bf16.mxu1 %v2139_v13  ;;  %985 = vmatprep.mubr.bf16.mxu0 %v1663_v36  ;;  %v2159_v41 = vld [vmem:[%s2805_s1 + $0x100] sm:$0xff]   ;;  %v70_v48 = vld [vmem:[%s2806_s0 + $0x68] sm:$0xff]  ;;  %v2167_v63 = vld [vmem:[%s2805_s1 + $0x110] sm:$0xff]  }
   0xf   :  { %1082 = vmatprep.mubr.bf16.mxu1 %v1665_v39  ;;  %v2160_v42 = vld [vmem:[%s2805_s1 + $0x1c0] sm:$0xff]   ;;  %v1673_v49 = vcombine.high %v66_v47, %v70_v48  ;;  %v2162_v50 = vld [vmem:[%s2805_s1 + $0x148] sm:$0xff]   ;;  %v1672_v53 = vcombine.low %v66_v47, %v70_v48  ;;  %v2168_v0 = vld [vmem:[%s2805_s1 + $0x1d0] sm:$0xff]  }
  0x10   :  { %1877 = vmatpush3.bf16.msra.mxu0 %v2140_v14  ;;  %v2161_v43 = vld [vmem:[%s2805_s1 + $0x180] sm:$0xff]   ;;  %v2163_v52 = vld [vmem:[%s2805_s1 + $0x108] sm:$0xff]   ;;  %v2169_v1 = vld [vmem:[%s2805_s1 + $0x190] sm:$0xff]  }
  0x11   :  { %1941 = vmatpush3.bf16.msra.mxu1 %v2141_v15  ;;  %1878 = vmatprep.subr.bf16.mxu0 %v2142_v16  ;;  %v65_v44 = vld [vmem:[%s2806_s0 + $0x40] sm:$0xff]  ;;  %v2164_v54 = vld [vmem:[%s2805_s1 + $0x1c8] sm:$0xff]   ;;  %v2170_v10 = vld [vmem:[%s2805_s1 + $0x158] sm:$0xff]  }
  0x12   :  { %1942 = vmatprep.subr.bf16.mxu1 %v2143_v17  ;;  %v69_v45 = vld [vmem:[%s2806_s0 + $0x60] sm:$0xff]  ;;  %v2165_v55 = vld [vmem:[%s2805_s1 + $0x188] sm:$0xff]   ;;  %v2171_v11 = vld [vmem:[%s2805_s1 + $0x118] sm:$0xff]  }
  0x13   :  { %v1671_v46 = vcombine.high %v65_v44, %v69_v45  ;;  %v1670_v51 = vcombine.low %v65_v44, %v69_v45  ;;  %v73_v56 = vld [vmem:[%s2806_s0 + $0x80] sm:$0xff]  ;;  %v74_v58 = vld [vmem:[%s2806_s0 + $0x88] sm:$0xff]  ;;  %v2172_v12 = vld [vmem:[%s2805_s1 + $0x1d8] sm:$0xff]  }
  0x14   :  { %1879 = vmatpush3.bf16.msra.mxu0 %v2144_v18  ;;  %v77_v57 = vld [vmem:[%s2806_s0 + $0xa0] sm:$0xff]  ;;  %v78_v59 = vld [vmem:[%s2806_s0 + $0xa8] sm:$0xff]  ;;  %v2173_v13 = vld [vmem:[%s2805_s1 + $0x198] sm:$0xff]  }
  0x15   :  { %1943 = vmatpush3.bf16.msra.mxu1 %v2145_v19  ;;  %1880 = vmatprep.subr.bf16.mxu0 %v2146_v20  ;;  %v1679_v60 = vcombine.high %v73_v56, %v77_v57  ;;  %v1681_v61 = vcombine.high %v74_v58, %v78_v59  ;;  %v1678_v2 = vcombine.low %v73_v56, %v77_v57  ;;  %v81_v3 = vld [vmem:[%s2806_s0 + $0xc0] sm:$0xff]  ;;  %v82_v5 = vld [vmem:[%s2806_s0 + $0xc8] sm:$0xff]  ;;  %v2183_v39 = vld [vmem:[%s2805_s1 + $0x130] sm:$0xff]  }
  0x16   :  { %1944 = vmatprep.subr.bf16.mxu1 %v2147_v21  ;;  %v85_v4 = vld [vmem:[%s2806_s0 + $0xe0] sm:$0xff]  ;;  %v1680_v6 = vcombine.low %v74_v58, %v78_v59  ;;  %v86_v8 = vld [vmem:[%s2806_s0 + $0xe8] sm:$0xff]  ;;  %v2187_v48 = vld [vmem:[%s2805_s1 + $0x138] sm:$0xff]  }
  0x17   :  { %v1687_v7 = vcombine.high %v81_v3, %v85_v4  ;;  %v1689_v9 = vcombine.high %v82_v5, %v86_v8  ;;  %v89_v14 = vld [vmem:[%s2806_s0 + $0x100] sm:$0xff]  ;;  %v90_v16 = vld [vmem:[%s2806_s0 + $0x108] sm:$0xff]  ;;  %v1686_v19 = vcombine.low %v81_v3, %v85_v4  ;;  %v1688_v21 = vcombine.low %v82_v5, %v86_v8  ;;  %v68_v8 = vld [vmem:[%s2806_s0 + $0x58] sm:$0xff] }
  0x18   :  { %1881 = vmatpush3.bf16.msra.mxu0 %v2148_v22  ;;  %v93_v15 = vld [vmem:[%s2806_s0 + $0x120] sm:$0xff]  ;;  %v94_v17 = vld [vmem:[%s2806_s0 + $0x128] sm:$0xff] }
  0x19   :  { %1945 = vmatpush3.bf16.msra.mxu1 %v2149_v23  ;;  %1882 = vmatprep.subr.bf16.mxu0 %v2150_v24  ;;  %v2174_v18 = vld [vmem:[%s2805_s1 + $0x160] sm:$0xff]   ;;  %v1695_v22 = vcombine.high %v89_v14, %v93_v15  ;;  %v1697_v24 = vcombine.high %v90_v16, %v94_v17  ;;  %v2180_v32 = vld [vmem:[%s2805_s1 + $0x1e8] sm:$0xff]   ;;  %v1694_v34 = vcombine.low %v89_v14, %v93_v15  ;;  %v75_v14 = vld [vmem:[%s2806_s0 + $0x90] sm:$0xff] }
  0x1a   :  { %1946 = vmatprep.subr.bf16.mxu1 %v2151_v25  ;;  %v2175_v20 = vld [vmem:[%s2805_s1 + $0x120] sm:$0xff]   ;;  %v2181_v33 = vld [vmem:[%s2805_s1 + $0x1a8] sm:$0xff]   ;;  %v79_v15 = vld [vmem:[%s2806_s0 + $0xb0] sm:$0xff] }
  0x1b   :  { %v2176_v23 = vld [vmem:[%s2805_s1 + $0x1e0] sm:$0xff]   ;;  %v106_v44 = vld [vmem:[%s2806_s0 + $0x188] sm:$0xff] }
  0x1c   :  { %1883 = vmatpush3.bf16.msra.mxu0 %v2152_v26  ;;  %v2177_v25 = vld [vmem:[%s2805_s1 + $0x1a0] sm:$0xff]   ;;  %v110_v45 = vld [vmem:[%s2806_s0 + $0x1a8] sm:$0xff] }
  0x1d   :  { %1947 = vmatpush3.bf16.msra.mxu1 %v2153_v27  ;;  %1884 = vmatprep.subr.bf16.mxu0 %v2154_v28  ;;  %v97_v26 = vld [vmem:[%s2806_s0 + $0x140] sm:$0xff]  ;;  %v2178_v28 = vld [vmem:[%s2805_s1 + $0x168] sm:$0xff]   ;;  %v1712_v59 = vcombine.low %v106_v44, %v110_v45 }
  0x1e   :  { %1948 = vmatprep.subr.bf16.mxu1 %v2155_v29  ;;  %v101_v27 = vld [vmem:[%s2806_s0 + $0x160] sm:$0xff]  ;;  %v98_v29 = vld [vmem:[%s2806_s0 + $0x148] sm:$0xff] }
  0x1f   :  { %v1703_v36 = vcombine.high %v97_v26, %v101_v27  ;;  %v1702_v47 = vcombine.low %v97_v26, %v101_v27  ;;  %v114_v56 = vld [vmem:[%s2806_s0 + $0x1c8] sm:$0xff]  ;;  %v1682_v26 = vcombine.low %v75_v14, %v79_v15 }
  0x20   :  { %1885 = vmatpush3.bf16.msra.mxu0 %v2156_v30  ;;  %v102_v30 = vld [vmem:[%s2806_s0 + $0x168] sm:$0xff] }
  0x21   :  { %1949 = vmatpush3.bf16.msra.mxu1 %v2157_v31  ;;  %1998 = vmatprep.subr.bf16.mxu0 %v2158_v40  ;;  %v2179_v31 = vld [vmem:[%s2805_s1 + $0x128] sm:$0xff]   ;;  %v1705_v37 = vcombine.high %v98_v29, %v102_v30  ;;  %v2184_v40 = vld [vmem:[%s2805_s1 + $0x1f0] sm:$0xff]  }
  0x22   :  { %2062 = vmatprep.subr.bf16.mxu1 %v2160_v42  ;;  %v109_v42 = vld [vmem:[%s2806_s0 + $0x1a0] sm:$0xff]  ;;  %v118_v57 = vld [vmem:[%s2806_s0 + $0x1e8] sm:$0xff] }
  0x23   :  { %986 = vmatmul.mubr.bf16.vlgmr.msra.gmra.mrb[0].mxu0 %v1662_v35  ;;  %v1696_v35 = vcombine.low %v90_v16, %v94_v17  ;;  %v1720_v3 = vcombine.low %v114_v56, %v118_v57  ;;  %v76_v16 = vld [vmem:[%s2806_s0 + $0x98] sm:$0xff] }
  0x24   :  { %1083 = vmatmul.mubr.bf16.vlgmr.msra.gmra.mrb[0].mxu1 %v1664_v38  ;;  %1999 = vmatpush3.bf16.msra.mxu0 %v2159_v41  ;;  %v2182_v38 = vld [vmem:[%s2805_s1 + $0x170] sm:$0xff]   ;;  %v105_v41 = vld [vmem:[%s2806_s0 + $0x180] sm:$0xff]  ;;  %v80_v17 = vld [vmem:[%s2806_s0 + $0xb8] sm:$0xff] }
  0x25   :  { %2063 = vmatpush3.bf16.msra.mxu1 %v2161_v43  ;;  %993 = vmatprep.mubr.bf16.mxu0 %v1671_v46  ;;  %v2185_v43 = vld [vmem:[%s2805_s1 + $0x1b0] sm:$0xff]   ;;  %v2186_v46 = vld [vmem:[%s2805_s1 + $0x178] sm:$0xff]   ;;  %v1710_v58 = vcombine.low %v105_v41, %v109_v42  ;;  %v1684_v27 = vcombine.low %v76_v16, %v80_v17 }
  0x26   :  { %1090 = vmatprep.mubr.bf16.mxu1 %v1673_v49  ;;  %2000 = vmatprep.subr.bf16.mxu0 %v2162_v50  ;;  %v1704_v49 = vcombine.low %v98_v29, %v102_v30  ;;  %v1711_v50 = vcombine.high %v105_v41, %v109_v42  ;;  %v91_v30 = vld [vmem:[%s2806_s0 + $0x110] sm:$0xff]  ;;  %v104_v41 = vld [vmem:[%s2806_s0 + $0x178] sm:$0xff] }
  0x27   :  { %2064 = vmatprep.subr.bf16.mxu1 %v2164_v54  ;;  %v113_v54 = vld [vmem:[%s2806_s0 + $0x1c0] sm:$0xff] }
  0x28   :  { %2001 = vmatpush3.bf16.msra.mxu0 %v2163_v52  ;;  %v1713_v52 = vcombine.high %v106_v44, %v110_v45 }
  0x29   :  { %2065 = vmatpush3.bf16.msra.mxu1 %v2165_v55  ;;  %2002 = vmatprep.subr.bf16.mxu0 %v2166_v62  ;;  %v117_v55 = vld [vmem:[%s2806_s0 + $0x1e0] sm:$0xff]  ;;  %v59_v62 = vld [vmem:[%s2806_s0 + $0x10] sm:$0xff] }
  0x2a   :  { %2066 = vmatprep.subr.bf16.mxu1 %v2168_v0  ;;  %v60_v0 = vld [vmem:[%s2806_s0 + $0x18] sm:$0xff] }
  0x2b   :  { %994 = vmatmul.mubr.bf16.gmra.mrb[4].mxu0 %v1670_v51  ;;  %v2188_v51 = vld [vmem:[%s2805_s1 + $0x1f8] sm:$0xff]  }
  0x2c   :  { %1091 = vmatmul.mubr.bf16.gmra.mrb[4].mxu1 %v1672_v53  ;;  %1001 = vmatprep.mubr.bf16.mxu0 %v1679_v60  ;;  %v2189_v53 = vld [vmem:[%s2805_s1 + $0x1b8] sm:$0xff]   ;;  %v1719_v60 = vcombine.high %v113_v54, %v117_v55 }
  0x2d   :  { %1098 = vmatprep.mubr.bf16.mxu1 %v1681_v61  ;;  %2003 = vmatpush3.bf16.msra.mxu0 %v2167_v63  ;;  %v1721_v61 = vcombine.high %v114_v56, %v118_v57  ;;  %v63_v63 = vld [vmem:[%s2806_s0 + $0x30] sm:$0xff]  ;;  %v116_v56 = vld [vmem:[%s2806_s0 + $0x1d8] sm:$0xff] }
  0x2e   :  { %2067 = vmatpush3.bf16.msra.mxu1 %v2169_v1  ;;  %2004 = vmatprep.subr.bf16.mxu0 %v2170_v10  ;;  %v64_v1 = vld [vmem:[%s2806_s0 + $0x38] sm:$0xff]  ;;  %v1667_v4 = vcombine.high %v59_v62, %v63_v63  ;;  %v1666_v10 = vcombine.low %v59_v62, %v63_v63 }
  0x2f   :  { %2068 = vmatprep.subr.bf16.mxu1 %v2172_v12  ;;  %v1669_v5 = vcombine.high %v60_v0, %v64_v1  ;;  %v120_v57 = vld [vmem:[%s2806_s0 + $0x1f8] sm:$0xff] }
  0x30   :  { %v1724_v63 = vcombine.low %v116_v56, %v120_v57 }
  0x31   :  { %2005 = vmatpush3.bf16.msra.mxu0 %v2171_v11  ;;  %v1668_v11 = vcombine.low %v60_v0, %v64_v1 }
  0x32   :  { %2069 = vmatpush3.bf16.msra.mxu1 %v2173_v13  ;;  %2006 = vmatprep.subr.bf16.mxu0 %v2174_v18 }
  0x33   :  { %1002 = vmatmul.mubr.bf16.gmra.mrb[8].mxu0 %v1678_v2  ;;  %2070 = vmatprep.subr.bf16.mxu1 %v2176_v23  ;;  %v1718_v2 = vcombine.low %v113_v54, %v117_v55  ;;  %v87_v23 = vld [vmem:[%s2806_s0 + $0xf0] sm:$0xff] }
  0x34   :  { %1099 = vmatmul.mubr.bf16.gmra.mrb[8].mxu1 %v1680_v6  ;;  %1009 = vmatprep.mubr.bf16.mxu0 %v1687_v7  ;;  %v67_v6 = vld [vmem:[%s2806_s0 + $0x50] sm:$0xff] }
  0x35   :  { %1106 = vmatprep.mubr.bf16.mxu1 %v1689_v9  ;;  %2007 = vmatpush3.bf16.msra.mxu0 %v2175_v20  ;;  %v71_v7 = vld [vmem:[%s2806_s0 + $0x70] sm:$0xff]  ;;  %v72_v9 = vld [vmem:[%s2806_s0 + $0x78] sm:$0xff]  ;;  %v1683_v20 = vcombine.high %v75_v14, %v79_v15 }
  0x36   :  { %2071 = vmatpush3.bf16.msra.mxu1 %v2177_v25  ;;  %2008 = vmatprep.subr.bf16.mxu0 %v2178_v28  ;;  %v1675_v12 = vcombine.high %v67_v6, %v71_v7  ;;  %v1677_v13 = vcombine.high %v68_v8, %v72_v9  ;;  %v1674_v18 = vcombine.low %v67_v6, %v71_v7  ;;  %v88_v25 = vld [vmem:[%s2806_s0 + $0xf8] sm:$0xff]  ;;  %v115_v54 = vld [vmem:[%s2806_s0 + $0x1d0] sm:$0xff] }
  0x37   :  { %2072 = vmatprep.subr.bf16.mxu1 %v2180_v32  ;;  %v92_v32 = vld [vmem:[%s2806_s0 + $0x118] sm:$0xff]  ;;  %v119_v55 = vld [vmem:[%s2806_s0 + $0x1f0] sm:$0xff] }
  0x38   :  { %v1722_v62 = vcombine.low %v115_v54, %v119_v55 }
  0x39   :  { %2009 = vmatpush3.bf16.msra.mxu0 %v2179_v31  ;;  %v95_v31 = vld [vmem:[%s2806_s0 + $0x130] sm:$0xff] }
  0x3a   :  { %2073 = vmatpush3.bf16.msra.mxu1 %v2181_v33  ;;  %2010 = vmatprep.subr.bf16.mxu0 %v2182_v38  ;;  %v96_v33 = vld [vmem:[%s2806_s0 + $0x138] sm:$0xff]  ;;  %v99_v38 = vld [vmem:[%s2806_s0 + $0x150] sm:$0xff]  ;;  %v1698_v42 = vcombine.low %v91_v30, %v95_v31 }
  0x3b   :  { %1010 = vmatmul.mubr.bf16.gmra.mrb[12].mxu0 %v1686_v19  ;;  %2074 = vmatprep.subr.bf16.mxu1 %v2184_v40  ;;  %v1676_v19 = vcombine.low %v68_v8, %v72_v9  ;;  %v100_v40 = vld [vmem:[%s2806_s0 + $0x158] sm:$0xff] }
  0x3c   :  { %1107 = vmatmul.mubr.bf16.gmra.mrb[12].mxu1 %v1688_v21  ;;  %1017 = vmatprep.mubr.bf16.mxu0 %v1695_v22  ;;  %v1685_v21 = vcombine.high %v76_v16, %v80_v17  ;;  %v83_v22 = vld [vmem:[%s2806_s0 + $0xd0] sm:$0xff]  ;;  %v1709_v45 = vcombine.high %v100_v40, %v104_v41 }
  0x3d   :  { %1114 = vmatprep.mubr.bf16.mxu1 %v1697_v24  ;;  %2011 = vmatpush3.bf16.msra.mxu0 %v2183_v39  ;;  %v84_v24 = vld [vmem:[%s2806_s0 + $0xd8] sm:$0xff]  ;;  %v1691_v28 = vcombine.high %v83_v22, %v87_v23  ;;  %v103_v39 = vld [vmem:[%s2806_s0 + $0x170] sm:$0xff] }
  0x3e   :  { %2075 = vmatpush3.bf16.msra.mxu1 %v2185_v43  ;;  %2012 = vmatprep.subr.bf16.mxu0 %v2186_v46  ;;  %v1693_v29 = vcombine.high %v84_v24, %v88_v25  ;;  %v1700_v43 = vcombine.low %v92_v32, %v96_v33  ;;  %v1707_v44 = vcombine.high %v99_v38, %v103_v39  ;;  %v107_v46 = vld [vmem:[%s2806_s0 + $0x190] sm:$0xff] }
  0x3f   :  { %2076 = vmatprep.subr.bf16.mxu1 %v2188_v51  ;;  %v1708_v51 = vcombine.low %v100_v40, %v104_v41 }
  0x41   :  { %2013 = vmatpush3.bf16.msra.mxu0 %v2187_v48  ;;  %v108_v48 = vld [vmem:[%s2806_s0 + $0x198] sm:$0xff] }
  0x42   :  { %2077 = vmatpush3.bf16.msra.mxu1 %v2189_v53 }
  0x43   :  { %1018 = vmatmul.mubr.bf16.gmra.mrb[16].mxu0 %v1694_v34  ;;  %v1690_v34 = vcombine.low %v83_v22, %v87_v23 }
  0x44   :  { %1115 = vmatmul.mubr.bf16.gmra.mrb[16].mxu1 %v1696_v35  ;;  %1025 = vmatprep.mubr.bf16.mxu0 %v1703_v36  ;;  %v1692_v35 = vcombine.low %v84_v24, %v88_v25  ;;  %v1699_v36 = vcombine.high %v91_v30, %v95_v31 }
  0x45   :  { %1122 = vmatprep.mubr.bf16.mxu1 %v1705_v37  ;;  %v1701_v37 = vcombine.high %v92_v32, %v96_v33 }
  0x4b   :  { %1026 = vmatmul.mubr.bf16.gmra.mrb[20].mxu0 %v1702_v47  ;;  %v111_v47 = vld [vmem:[%s2806_s0 + $0x1b0] sm:$0xff] }
  0x4c   :  { %1123 = vmatmul.mubr.bf16.gmra.mrb[20].mxu1 %v1704_v49  ;;  %1033 = vmatprep.mubr.bf16.mxu0 %v1711_v50  ;;  %v112_v49 = vld [vmem:[%s2806_s0 + $0x1b8] sm:$0xff]  ;;  %v1706_v50 = vcombine.low %v99_v38, %v103_v39 }
  0x4d   :  { %1130 = vmatprep.mubr.bf16.mxu1 %v1713_v52  ;;  %v1715_v52 = vcombine.high %v107_v46, %v111_v47  ;;  %v1717_v53 = vcombine.high %v108_v48, %v112_v49 }
  0x53   :  { %1034 = vmatmul.mubr.bf16.gmra.mrb[24].mxu0 %v1710_v58  ;;  %v1714_v58 = vcombine.low %v107_v46, %v111_v47 }
  0x54   :  { %1131 = vmatmul.mubr.bf16.gmra.mrb[24].mxu1 %v1712_v59  ;;  %1041 = vmatprep.mubr.bf16.mxu0 %v1719_v60  ;;  %v1716_v59 = vcombine.low %v108_v48, %v112_v49  ;;  %v1723_v60 = vcombine.high %v115_v54, %v119_v55 }
  0x55   :  { %1138 = vmatprep.mubr.bf16.mxu1 %v1721_v61  ;;  %v1725_v61 = vcombine.high %v116_v56, %v120_v57 }
  0x5b   :  { %1042 = vmatmul.mubr.bf16.gmra.mrb[28].mxu0 %v1718_v2 }
  0x5c   :  { %1139 = vmatmul.mubr.bf16.gmra.mrb[28].mxu1 %v1720_v3  ;;  %1179 = vmatprep.mubr.bf16.mxu0 %v1667_v4 }
  0x5d   :  { %1276 = vmatprep.mubr.bf16.mxu1 %v1669_v5 }
  0x63   :  { %1180 = vmatmul.mubr.bf16.vlgmr.msra.gmra.mrb[32].mxu0 %v1666_v10 }
  0x64   :  { %1277 = vmatmul.mubr.bf16.vlgmr.msra.gmra.mrb[32].mxu1 %v1668_v11  ;;  %1187 = vmatprep.mubr.bf16.mxu0 %v1675_v12 }
  0x65   :  { %1284 = vmatprep.mubr.bf16.mxu1 %v1677_v13 }
  0x6b   :  { %1188 = vmatmul.mubr.bf16.gmra.mrb[36].mxu0 %v1674_v18 }
  0x6c   :  { %1285 = vmatmul.mubr.bf16.gmra.mrb[36].mxu1 %v1676_v19  ;;  %1195 = vmatprep.mubr.bf16.mxu0 %v1683_v20 }
  0x6d   :  { %1292 = vmatprep.mubr.bf16.mxu1 %v1685_v21 }
  0x73   :  { %1196 = vmatmul.mubr.bf16.gmra.mrb[40].mxu0 %v1682_v26 }
  0x74   :  { %1293 = vmatmul.mubr.bf16.gmra.mrb[40].mxu1 %v1684_v27  ;;  %1203 = vmatprep.mubr.bf16.mxu0 %v1691_v28 }
  0x75   :  { %1300 = vmatprep.mubr.bf16.mxu1 %v1693_v29 }
  0x7b   :  { %1204 = vmatmul.mubr.bf16.gmra.mrb[44].mxu0 %v1690_v34 }
  0x7c   :  { %1301 = vmatmul.mubr.bf16.gmra.mrb[44].mxu1 %v1692_v35  ;;  %1211 = vmatprep.mubr.bf16.mxu0 %v1699_v36 }
  0x7d   :  { %1308 = vmatprep.mubr.bf16.mxu1 %v1701_v37 }
  0x83   :  { %1212 = vmatmul.mubr.bf16.gmra.mrb[48].mxu0 %v1698_v42 }
  0x84   :  { %1309 = vmatmul.mubr.bf16.gmra.mrb[48].mxu1 %v1700_v43  ;;  %1219 = vmatprep.mubr.bf16.mxu0 %v1707_v44 }
  0x85   :  { %1316 = vmatprep.mubr.bf16.mxu1 %v1709_v45 }
  0x8b   :  { %1220 = vmatmul.mubr.bf16.gmra.mrb[52].mxu0 %v1706_v50 }
  0x8c   :  { %1317 = vmatmul.mubr.bf16.gmra.mrb[52].mxu1 %v1708_v51  ;;  %1227 = vmatprep.mubr.bf16.mxu0 %v1715_v52 }
  0x8d   :  { %1324 = vmatprep.mubr.bf16.mxu1 %v1717_v53 }
  0x93   :  { %1228 = vmatmul.mubr.bf16.gmra.mrb[56].mxu0 %v1714_v58 }
  0x94   :  { %1325 = vmatmul.mubr.bf16.gmra.mrb[56].mxu1 %v1716_v59  ;;  %1235 = vmatprep.mubr.bf16.mxu0 %v1723_v60 }
  0x95   :  { %1332 = vmatprep.mubr.bf16.mxu1 %v1725_v61 }
  0x9b   :  { %1236 = vmatmul.mubr.bf16.gmra.mrb[60].mxu0 %v1722_v62 }
  0x9c   :  { %1333 = vmatmul.mubr.bf16.gmra.mrb[60].mxu1 %v1724_v63 }
  0xf6   :  { %v1886_v0 = vpop.f32.mrb[0].mxu0 }
  0xf7   :  { %v1950_v1 = vpop.f32.mrb[0].mxu1  ;;  %v1887_v2 = vpop.f32.mrb[1].mxu0 }
  0xf8   :  { %v1888_v3 = vadd.f32 %v1887_v2, %v1886_v0  ;;  %v1951_v4 = vpop.f32.mrb[1].mxu1  ;;  %v1889_v5 = vpop.f32.mrb[2].mxu0 }
  0xf9   :  { %v1952_v6 = vadd.f32 %v1951_v4, %v1950_v1  ;;  %v1953_v7 = vpop.f32.mrb[2].mxu1  ;;  %v1890_v8 = vpop.f32.mrb[3].mxu0 }
  0xfa   :  { %v1891_v9 = vadd.f32 %v1890_v8, %v1889_v5  ;;  %v1954_v10 = vpop.f32.mrb[3].mxu1 }
  0xfb   :  { %v2606_v11 = vadd.f32 %v1952_v6, %v1888_v3  ;;  %v1955_v12 = vadd.f32 %v1954_v10, %v1953_v7 }
  0xfd   :  { %v2608_v13 = vadd.f32 %v1955_v12, %v1891_v9 }
  0xfe   :  { %v1892_v14 = vpop.f32.mrb[4].mxu0 }
  0xff   :  { %v1956_v15 = vpop.f32.mrb[4].mxu1  ;;  %v1893_v16 = vpop.f32.mrb[5].mxu0 }
 0x100   :  { %v1894_v17 = vadd.f32 %v1893_v16, %v1892_v14  ;;  %v1957_v18 = vpop.f32.mrb[5].mxu1  ;;  %v1895_v19 = vpop.f32.mrb[6].mxu0 }
 0x101   :  { %v1958_v20 = vadd.f32 %v1957_v18, %v1956_v15  ;;  %v1959_v21 = vpop.f32.mrb[6].mxu1  ;;  %v1896_v22 = vpop.f32.mrb[7].mxu0 }
 0x102   :  { %v1897_v23 = vadd.f32 %v1896_v22, %v1895_v19  ;;  %v1960_v24 = vpop.f32.mrb[7].mxu1 }
 0x103   :  { %v2610_v25 = vadd.f32 %v1958_v20, %v1894_v17  ;;  %v1961_v26 = vadd.f32 %v1960_v24, %v1959_v21 }
 0x105   :  { %v2612_v27 = vadd.f32 %v1961_v26, %v1897_v23 }
 0x106   :  { %v1898_v28 = vpop.f32.mrb[8].mxu0 }
 0x107   :  { %v1962_v29 = vpop.f32.mrb[8].mxu1  ;;  %v1899_v30 = vpop.f32.mrb[9].mxu0 }
 0x108   :  { %v1900_v31 = vadd.f32 %v1899_v30, %v1898_v28  ;;  %v1963_v32 = vpop.f32.mrb[9].mxu1  ;;  %v1901_v33 = vpop.f32.mrb[10].mxu0 }
 0x109   :  { %v1964_v34 = vadd.f32 %v1963_v32, %v1962_v29  ;;  %v1965_v35 = vpop.f32.mrb[10].mxu1  ;;  %v1902_v36 = vpop.f32.mrb[11].mxu0 }
 0x10a   :  { %v1903_v37 = vadd.f32 %v1902_v36, %v1901_v33  ;;  %v1966_v38 = vpop.f32.mrb[11].mxu1 }
 0x10b   :  { %v2614_v39 = vadd.f32 %v1964_v34, %v1900_v31  ;;  %v1967_v40 = vadd.f32 %v1966_v38, %v1965_v35 }
 0x10d   :  { %v2616_v41 = vadd.f32 %v1967_v40, %v1903_v37 }
 0x10e   :  { %v1904_v42 = vpop.f32.mrb[12].mxu0 }
 0x10f   :  { %v1968_v43 = vpop.f32.mrb[12].mxu1  ;;  %v1905_v44 = vpop.f32.mrb[13].mxu0 }
 0x110   :  { %v1906_v45 = vadd.f32 %v1905_v44, %v1904_v42  ;;  %v1969_v46 = vpop.f32.mrb[13].mxu1  ;;  %v1907_v47 = vpop.f32.mrb[14].mxu0 }
 0x111   :  { %v1970_v48 = vadd.f32 %v1969_v46, %v1968_v43  ;;  %v1971_v49 = vpop.f32.mrb[14].mxu1  ;;  %v1908_v50 = vpop.f32.mrb[15].mxu0 }
 0x112   :  { %v1909_v51 = vadd.f32 %v1908_v50, %v1907_v47  ;;  %v1972_v52 = vpop.f32.mrb[15].mxu1 }
 0x113   :  { %v2618_v53 = vadd.f32 %v1970_v48, %v1906_v45  ;;  %v1973_v54 = vadd.f32 %v1972_v52, %v1971_v49 }
 0x115   :  { %v2620_v55 = vadd.f32 %v1973_v54, %v1909_v51 }
 0x116   :  { %v1910_v56 = vpop.f32.mrb[16].mxu0 }
 0x117   :  { %v1974_v57 = vpop.f32.mrb[16].mxu1  ;;  %v1911_v58 = vpop.f32.mrb[17].mxu0 }
 0x118   :  { %v1912_v59 = vadd.f32 %v1911_v58, %v1910_v56  ;;  %v1975_v60 = vpop.f32.mrb[17].mxu1  ;;  %v1913_v61 = vpop.f32.mrb[18].mxu0 }
 0x119   :  { %v1976_v62 = vadd.f32 %v1975_v60, %v1974_v57  ;;  %v1977_v63 = vpop.f32.mrb[18].mxu1  ;;  %v1914_v0 = vpop.f32.mrb[19].mxu0 }
 0x11a   :  { %v1915_v1 = vadd.f32 %v1914_v0, %v1913_v61  ;;  %v1978_v2 = vpop.f32.mrb[19].mxu1 }
 0x11b   :  { %v2622_v3 = vadd.f32 %v1976_v62, %v1912_v59  ;;  %v1979_v4 = vadd.f32 %v1978_v2, %v1977_v63 }
 0x11d   :  { %v2624_v5 = vadd.f32 %v1979_v4, %v1915_v1 }
 0x11e   :  { %v1916_v6 = vpop.f32.mrb[20].mxu0 }
 0x11f   :  { %v1980_v7 = vpop.f32.mrb[20].mxu1  ;;  %v1917_v8 = vpop.f32.mrb[21].mxu0 }
 0x120   :  { %v1918_v9 = vadd.f32 %v1917_v8, %v1916_v6  ;;  %v1981_v10 = vpop.f32.mrb[21].mxu1  ;;  %v1919_v12 = vpop.f32.mrb[22].mxu0 }
 0x121   :  { %v1982_v14 = vadd.f32 %v1981_v10, %v1980_v7  ;;  %v1983_v15 = vpop.f32.mrb[22].mxu1  ;;  %v1920_v16 = vpop.f32.mrb[23].mxu0 }
 0x122   :  { %v1921_v17 = vadd.f32 %v1920_v16, %v1919_v12  ;;  %v1984_v18 = vpop.f32.mrb[23].mxu1 }
 0x123   :  { %v2626_v19 = vadd.f32 %v1982_v14, %v1918_v9  ;;  %v1985_v20 = vadd.f32 %v1984_v18, %v1983_v15  ;;  %v2643_v15 = vld [vmem:[%s2807_s2] ss:$0 sm:$0xff] }
 0x125   :  { %v2628_v21 = vadd.f32 %v1985_v20, %v1921_v17 }
 0x126   :  { %v1922_v22 = vpop.f32.mrb[24].mxu0 }
 0x127   :  { %v1986_v23 = vpop.f32.mrb[24].mxu1  ;;  %v1923_v24 = vpop.f32.mrb[25].mxu0 }
 0x128   :  { %v1924_v26 = vadd.f32 %v1923_v24, %v1922_v22  ;;  %v1987_v28 = vpop.f32.mrb[25].mxu1  ;;  %v1925_v29 = vpop.f32.mrb[26].mxu0 }
 0x129   :  { %v1988_v30 = vadd.f32 %v1987_v28, %v1986_v23  ;;  %v1989_v31 = vpop.f32.mrb[26].mxu1  ;;  %v1926_v32 = vpop.f32.mrb[27].mxu0 }
 0x12a   :  { %v1927_v33 = vadd.f32 %v1926_v32, %v1925_v29  ;;  %v1990_v34 = vpop.f32.mrb[27].mxu1 }
 0x12b   :  { %v2630_v35 = vadd.f32 %v1988_v30, %v1924_v26  ;;  %v1991_v36 = vadd.f32 %v1990_v34, %v1989_v31 }
 0x12d   :  { %v2632_v37 = vadd.f32 %v1991_v36, %v1927_v33 }
 0x12e   :  { %v1928_v38 = vpop.f32.mrb[28].mxu0 }
 0x12f   :  { %v1992_v40 = vpop.f32.mrb[28].mxu1  ;;  %v1929_v42 = vpop.f32.mrb[29].mxu0 }
 0x130   :  { %v1930_v43 = vadd.f32 %v1929_v42, %v1928_v38  ;;  %v1993_v44 = vpop.f32.mrb[29].mxu1  ;;  %v1931_v45 = vpop.f32.mrb[30].mxu0 }
 0x131   :  { %v1994_v46 = vadd.f32 %v1993_v44, %v1992_v40  ;;  %v1995_v47 = vpop.f32.mrb[30].mxu1  ;;  %v1932_v48 = vpop.f32.mrb[31].mxu0 }
 0x132   :  { %v1933_v49 = vadd.f32 %v1932_v48, %v1931_v45  ;;  %v1996_v50 = vpop.f32.mrb[31].mxu1 }
 0x133   :  { %v2634_v51 = vadd.f32 %v1994_v46, %v1930_v43  ;;  %v1997_v52 = vadd.f32 %v1996_v50, %v1995_v47 }
 0x135   :  { %v2636_v54 = vadd.f32 %v1997_v52, %v1933_v49 }
 0x136   :  { %v2014_v56 = vpop.f32.mrb[32].mxu0 }
 0x137   :  { %v2078_v57 = vpop.f32.mrb[32].mxu1  ;;  %v2015_v58 = vpop.f32.mrb[33].mxu0 }
 0x138   :  { %v2016_v59 = vadd.f32 %v2015_v58, %v2014_v56  ;;  %v2079_v60 = vpop.f32.mrb[33].mxu1  ;;  %v2017_v61 = vpop.f32.mrb[34].mxu0 }
 0x139   :  { %v2080_v62 = vadd.f32 %v2079_v60, %v2078_v57  ;;  %v2081_v63 = vpop.f32.mrb[34].mxu1  ;;  %v2018_v0 = vpop.f32.mrb[35].mxu0 }
 0x13a   :  { %v1182_v1 = vadd.f32 %v2016_v59, %v2606_v11  ;;  %v2019_v2 = vadd.f32 %v2018_v0, %v2017_v61  ;;  %v2082_v4 = vpop.f32.mrb[35].mxu1 }
 0x13b   :  { %v2083_v6 = vadd.f32 %v2082_v4, %v2081_v63 }
 0x13c   :  { %v1279_v7 = vadd.f32 %v2080_v62, %v1182_v1  ;;  %v1185_v8 = vadd.f32 %v2019_v2, %v2608_v13 }
 0x13e   :  { %v1282_v9 = vadd.f32 %v2083_v6, %v1185_v8  ;;  %v2020_v10 = vpop.f32.mrb[36].mxu0  ;;  %v2650_v28 = vadd.f32 %v2643_v15, %v1279_v7 }
 0x13f   :  { %v2084_v12 = vpop.f32.mrb[36].mxu1  ;;  %v2021_v14 = vpop.f32.mrb[37].mxu0 }
 0x140   :  { %v2022_v16 = vadd.f32 %v2021_v14, %v2020_v10  ;;  %v2085_v17 = vpop.f32.mrb[37].mxu1  ;;  %v2023_v18 = vpop.f32.mrb[38].mxu0  ;;  %v2646_v23 = vadd.f32 %v2643_v15, %v1282_v9 }
 0x141   :  { %v2086_v20 = vadd.f32 %v2085_v17, %v2084_v12  ;;  %v2087_v11 = vpop.f32.mrb[38].mxu1  ;;  %v2024_v22 = vpop.f32.mrb[39].mxu0 }
 0x142   :  { %v1190_v13 = vadd.f32 %v2022_v16, %v2610_v25  ;;  %v2025_v24 = vadd.f32 %v2024_v22, %v2023_v18  ;;  %v2088_v26 = vpop.f32.mrb[39].mxu1  ;;  %v1439_v32 = vmul.f32 %v2646_v23, %v2646_v23  ;;  %v1438_v25 = vmul.f32 %v2650_v28, %v2650_v28 }
 0x143   :  { %v2089_v29 = vadd.f32 %v2088_v26, %v2087_v11  ;;  %v1415_v42 = vadd.f32 %v2646_v23, %v2650_v28 }
 0x144   :  { %v1287_v30 = vadd.f32 %v2086_v20, %v1190_v13  ;;  %v1193_v31 = vadd.f32 %v2025_v24, %v2612_v27  ;;  %v1454_v50 = vadd.f32 %v1439_v32, %v1438_v25 }
 0x146   :  { %v2656_v33 = vadd.f32 %v2643_v15, %v1287_v30  ;;  %v1290_v34 = vadd.f32 %v2089_v29, %v1193_v31  ;;  %v2026_v36 = vpop.f32.mrb[40].mxu0 }
 0x147   :  { %v2090_v38 = vpop.f32.mrb[40].mxu1  ;;  %v2027_v40 = vpop.f32.mrb[41].mxu0 }
 0x148   :  { %v1440_v43 = vmul.f32 %v2656_v33, %v2656_v33  ;;  %v2665_v27 = vadd.f32 %v2643_v15, %v1290_v34  ;;  %v2028_v44 = vadd.f32 %v2027_v40, %v2026_v36  ;;  %v2091_v45 = vpop.f32.mrb[41].mxu1  ;;  %v2029_v46 = vpop.f32.mrb[42].mxu0  ;;  %v1416_v52 = vadd.f32 %v1415_v42, %v2656_v33 }
 0x149   :  { %v2092_v47 = vadd.f32 %v2091_v45, %v2090_v38  ;;  %v2093_v48 = vpop.f32.mrb[42].mxu1  ;;  %v2030_v49 = vpop.f32.mrb[43].mxu0 }
 0x14a   :  { %v1198_v56 = vadd.f32 %v2028_v44, %v2614_v39  ;;  %v2094_v57 = vpop.f32.mrb[43].mxu1  ;;  %v2031_v58 = vadd.f32 %v2030_v49, %v2029_v46  ;;  %v1455_v60 = vadd.f32 %v1454_v50, %v1440_v43  ;;  %v1441_v61 = vmul.f32 %v2665_v27, %v2665_v27 }
 0x14b   :  { %v2095_v59 = vadd.f32 %v2094_v57, %v2093_v48  ;;  %v1417_v0 = vadd.f32 %v1416_v52, %v2665_v27 }
 0x14c   :  { %v1295_v62 = vadd.f32 %v2092_v47, %v1198_v56  ;;  %v1201_v63 = vadd.f32 %v2031_v58, %v2616_v41  ;;  %v1456_v39 = vadd.f32 %v1455_v60, %v1441_v61 }
 0x14e   :  { %v2674_v1 = vadd.f32 %v2643_v15, %v1295_v62  ;;  %v2032_v2 = vpop.f32.mrb[44].mxu0  ;;  %v1298_v4 = vadd.f32 %v2095_v59, %v1201_v63 }
 0x14f   :  { %v2096_v6 = vpop.f32.mrb[44].mxu1  ;;  %v2033_v7 = vpop.f32.mrb[45].mxu0 }
 0x150   :  { %v1418_v8 = vadd.f32 %v1417_v0, %v2674_v1  ;;  %v1442_v9 = vmul.f32 %v2674_v1, %v2674_v1  ;;  %v2034_v10 = vadd.f32 %v2033_v7, %v2032_v2  ;;  %v2097_v12 = vpop.f32.mrb[45].mxu1  ;;  %v2035_v14 = vpop.f32.mrb[46].mxu0  ;;  %v2680_v41 = vadd.f32 %v2643_v15, %v1298_v4 }
 0x151   :  { %v2098_v16 = vadd.f32 %v2097_v12, %v2096_v6  ;;  %v2099_v17 = vpop.f32.mrb[46].mxu1  ;;  %v2036_v18 = vpop.f32.mrb[47].mxu0 }
 0x152   :  { %v1457_v20 = vadd.f32 %v1456_v39, %v1442_v9  ;;  %v1206_v11 = vadd.f32 %v2034_v10, %v2618_v53  ;;  %v2037_v22 = vadd.f32 %v2036_v18, %v2035_v14  ;;  %v2100_v13 = vpop.f32.mrb[47].mxu1  ;;  %v1419_v24 = vadd.f32 %v1418_v8, %v2680_v41 }
 0x153   :  { %v1443_v26 = vmul.f32 %v2680_v41, %v2680_v41  ;;  %v2101_v29 = vadd.f32 %v2100_v13, %v2099_v17 }
 0x154   :  { %v1303_v30 = vadd.f32 %v2098_v16, %v1206_v11  ;;  %v1209_v31 = vadd.f32 %v2037_v22, %v2620_v55 }
 0x155   :  { %v1458_v32 = vadd.f32 %v1457_v20, %v1443_v26 }
 0x156   :  { %v2688_v34 = vadd.f32 %v2643_v15, %v1303_v30  ;;  %v1306_v36 = vadd.f32 %v2101_v29, %v1209_v31  ;;  %v2038_v25 = vpop.f32.mrb[48].mxu0 }
 0x157   :  { %v2102_v38 = vpop.f32.mrb[48].mxu1  ;;  %v2039_v40 = vpop.f32.mrb[49].mxu0 }
 0x158   :  { %v1420_v53 = vadd.f32 %v1419_v24, %v2688_v34  ;;  %v1444_v42 = vmul.f32 %v2688_v34, %v2688_v34  ;;  %v2694_v43 = vadd.f32 %v2643_v15, %v1306_v36  ;;  %v2040_v44 = vadd.f32 %v2039_v40, %v2038_v25  ;;  %v2103_v45 = vpop.f32.mrb[49].mxu1  ;;  %v2041_v46 = vpop.f32.mrb[50].mxu0 }
 0x159   :  { %v2104_v55 = vadd.f32 %v2103_v45, %v2102_v38  ;;  %v2105_v47 = vpop.f32.mrb[50].mxu1  ;;  %v2042_v48 = vpop.f32.mrb[51].mxu0 }
 0x15a   :  { %v1459_v49 = vadd.f32 %v1458_v32, %v1444_v42  ;;  %v1421_v50 = vadd.f32 %v1420_v53, %v2694_v43  ;;  %v1445_v52 = vmul.f32 %v2694_v43, %v2694_v43  ;;  %v1214_v56 = vadd.f32 %v2040_v44, %v2622_v3  ;;  %v2106_v57 = vpop.f32.mrb[51].mxu1 }
 0x15b   :  { %v2043_v58 = vadd.f32 %v2042_v48, %v2041_v46  ;;  %v2107_v59 = vadd.f32 %v2106_v57, %v2105_v47 }
 0x15c   :  { %v1460_v60 = vadd.f32 %v1459_v49, %v1445_v52  ;;  %v1311_v61 = vadd.f32 %v2104_v55, %v1214_v56 }
 0x15d   :  { %v1217_v62 = vadd.f32 %v2043_v58, %v2624_v5 }
 0x15e   :  { %v2702_v63 = vadd.f32 %v2643_v15, %v1311_v61  ;;  %v2044_v0 = vpop.f32.mrb[52].mxu0 }
 0x15f   :  { %v1314_v2 = vadd.f32 %v2107_v59, %v1217_v62  ;;  %v2108_v4 = vpop.f32.mrb[52].mxu1  ;;  %v2045_v6 = vpop.f32.mrb[53].mxu0 }
 0x160   :  { %v1422_v7 = vadd.f32 %v1421_v50, %v2702_v63  ;;  %v1446_v39 = vmul.f32 %v2702_v63, %v2702_v63  ;;  %v2046_v3 = vadd.f32 %v2045_v6, %v2044_v0  ;;  %v2109_v8 = vpop.f32.mrb[53].mxu1  ;;  %v2047_v9 = vpop.f32.mrb[54].mxu0 }
 0x161   :  { %v2708_v10 = vadd.f32 %v2643_v15, %v1314_v2  ;;  %v2110_v12 = vadd.f32 %v2109_v8, %v2108_v4  ;;  %v2111_v5 = vpop.f32.mrb[54].mxu1  ;;  %v2048_v14 = vpop.f32.mrb[55].mxu0 }
 0x162   :  { %v1461_v16 = vadd.f32 %v1460_v60, %v1446_v39  ;;  %v1222_v17 = vadd.f32 %v2046_v3, %v2626_v19  ;;  %v2049_v18 = vadd.f32 %v2048_v14, %v2047_v9  ;;  %v2112_v20 = vpop.f32.mrb[55].mxu1 }
 0x163   :  { %v1423_v11 = vadd.f32 %v1422_v7, %v2708_v10  ;;  %v1447_v22 = vmul.f32 %v2708_v10, %v2708_v10  ;;  %v2113_v13 = vadd.f32 %v2112_v20, %v2111_v5 }
 0x164   :  { %v1319_v24 = vadd.f32 %v2110_v12, %v1222_v17  ;;  %v1225_v26 = vadd.f32 %v2049_v18, %v2628_v21 }
 0x165   :  { %v1462_v29 = vadd.f32 %v1461_v16, %v1447_v22 }
 0x166   :  { %v2716_v30 = vadd.f32 %v2643_v15, %v1319_v24  ;;  %v1322_v31 = vadd.f32 %v2113_v13, %v1225_v26  ;;  %v2050_v32 = vpop.f32.mrb[56].mxu0 }
 0x167   :  { %v2114_v36 = vpop.f32.mrb[56].mxu1  ;;  %v2051_v25 = vpop.f32.mrb[57].mxu0 }
 0x168   :  { %v1424_v19 = vadd.f32 %v1423_v11, %v2716_v30  ;;  %v1448_v38 = vmul.f32 %v2716_v30, %v2716_v30  ;;  %v2722_v40 = vadd.f32 %v2643_v15, %v1322_v31  ;;  %v2052_v53 = vadd.f32 %v2051_v25, %v2050_v32  ;;  %v2115_v42 = vpop.f32.mrb[57].mxu1  ;;  %v2053_v44 = vpop.f32.mrb[58].mxu0 }
 0x169   :  { %v2116_v21 = vadd.f32 %v2115_v42, %v2114_v36  ;;  %v2117_v45 = vpop.f32.mrb[58].mxu1  ;;  %v2054_v46 = vpop.f32.mrb[59].mxu0 }
 0x16a   :  { %v1463_v55 = vadd.f32 %v1462_v29, %v1448_v38  ;;  %v1425_v47 = vadd.f32 %v1424_v19, %v2722_v40  ;;  %v1449_v48 = vmul.f32 %v2722_v40, %v2722_v40  ;;  %v1230_v49 = vadd.f32 %v2052_v53, %v2630_v35  ;;  %v2118_v50 = vpop.f32.mrb[59].mxu1 }
 0x16b   :  { %v2055_v52 = vadd.f32 %v2054_v46, %v2053_v44  ;;  %v2119_v56 = vadd.f32 %v2118_v50, %v2117_v45 }
 0x16c   :  { %v1464_v57 = vadd.f32 %v1463_v55, %v1449_v48  ;;  %v1327_v58 = vadd.f32 %v2116_v21, %v1230_v49 }
 0x16d   :  { %v1233_v59 = vadd.f32 %v2055_v52, %v2632_v37 }
 0x16e   :  { %v2730_v60 = vadd.f32 %v2643_v15, %v1327_v58  ;;  %v2056_v61 = vpop.f32.mrb[60].mxu0 }
 0x16f   :  { %v1330_v62 = vadd.f32 %v2119_v56, %v1233_v59  ;;  %v2120_v0 = vpop.f32.mrb[60].mxu1  ;;  %v2057_v2 = vpop.f32.mrb[61].mxu0  ;;  %v1487_v59 = vlaneseq }
 0x170   :  { %v1426_v4 = vadd.f32 %v1425_v47, %v2730_v60  ;;  %v1450_v6 = vmul.f32 %v2730_v60, %v2730_v60  ;;  %v2058_v35 = vadd.f32 %v2057_v2, %v2056_v61  ;;  %v2121_v7 = vpop.f32.mrb[61].mxu1  ;;  %v2059_v39 = vpop.f32.mrb[62].mxu0 }
 0x171   :  { %v2736_v3 = vadd.f32 %v2643_v15, %v1330_v62  ;;  %v2122_v8 = vadd.f32 %v2121_v7, %v2120_v0  ;;  %v2123_v37 = vpop.f32.mrb[62].mxu1  ;;  %v2060_v9 = vpop.f32.mrb[63].mxu0  ;;  %v1488_v61 = vshrl.u32 %v1487_v59, 7  ;;  %v1479_v62 = vld [vmem:[%s2808_s3] sm:$0x1] }
 0x172   :  { %v1465_v12 = vadd.f32 %v1464_v57, %v1450_v6  ;;  %v1238_v5 = vadd.f32 %v2058_v35, %v2634_v51  ;;  %v2061_v14 = vadd.f32 %v2060_v9, %v2059_v39  ;;  %v2124_v16 = vpop.f32.mrb[63].mxu1  ;;  %v1483_v6 = vld [vmem:[%s2809_s4] sm:$0x1] }
 0x173   :  { %v1427_v17 = vadd.f32 %v1426_v4, %v2736_v3  ;;  %v1451_v18 = vmul.f32 %v2736_v3, %v2736_v3  ;;  %v2125_v20 = vadd.f32 %v2124_v16, %v2123_v37  ;;  %v1489_v0 = vsub.s32 0, %v1488_v61 }
 0x174   :  { %v1335_v11 = vadd.f32 %v2122_v8, %v1238_v5  ;;  %v1241_v22 = vadd.f32 %v2061_v14, %v2636_v54 }
 0x175   :  { %v1466_v13 = vadd.f32 %v1465_v12, %v1451_v18 }
 0x176   :  { %v1413_v24 = vadd.f32 %v2643_v15, %v1335_v11  ;;  %v1338_v26 = vadd.f32 %v2125_v20, %v1241_v22 }
 0x178   :  { %v1428_v29 = vadd.f32 %v1427_v17, %v1413_v24  ;;  %v1452_v31 = vmul.f32 %v1413_v24, %v1413_v24  ;;  %v1414_v32 = vadd.f32 %v2643_v15, %v1338_v26 }
 0x17a   :  { %v1467_v51 = vadd.f32 %v1466_v13, %v1452_v31  ;;  %v1429_v36 = vadd.f32 %v1428_v29, %v1414_v32  ;;  %v1453_v25 = vmul.f32 %v1414_v32, %v1414_v32 }
 0x17c   :  { %v1430_v19 = vrot.slane %v1429_v36, 4  ;;  %v1468_v38 = vadd.f32 %v1467_v51, %v1453_v25 }
 0x17e   :  { %v1431_v53 = vadd.f32 %v1430_v19, %v1429_v36  ;;  %v1469_v42 = vrot.slane %v1468_v38, 4 }
 0x180   :  { %v1432_v44 = vrot.slane %v1431_v53, 2  ;;  %v1470_v21 = vadd.f32 %v1469_v42, %v1468_v38 }
 0x182   :  { %v1433_v45 = vadd.f32 %v1432_v44, %v1431_v53  ;;  %v1471_v46 = vrot.slane %v1470_v21, 2 }
 0x184   :  { %v1434_v54 = vrot.slane %v1433_v45, 1  ;;  %v1472_v55 = vadd.f32 %v1471_v46, %v1470_v21 }
 0x186   :  { %v1435_v47 = vadd.f32 %v1434_v54, %v1433_v45  ;;  %v1473_v48 = vrot.slane %v1472_v55, 1 }
 0x188   :  { %v1437_v49 = vmul.f32 0.0078125, %v1435_v47  ;;  %v1474_v50 = vadd.f32 %v1473_v48, %v1472_v55 }
 0x18a   :  { %v1475_v52 = vmul.f32 0.0078125, %v1474_v50  ;;  %v1476_v56 = vmul.f32 %v1437_v49, %v1437_v49 }
 0x18c   :  { %v1477_v15 = vsub.f32 %v1475_v52, %v1476_v56 }
 0x18e   :  { %v1478_v57 = vmax.f32 %v1477_v15, 0.0 }
 0x190   :  { %v1480_v58 = vadd.f32 1e-05, %v1478_v57 }
 0x192   :  { %2190 = vrsqrt.f32 %v1480_v58 }
 0x19c   :  { %v2191_v2 = vpop.eup %2190 }
 0x19d   :  { %v1482_v4 = vmul.f32 %v2191_v2, %v1479_v62 }
 0x19f   :  { %v1484_v35 = vmul.f32 %v1482_v4, %v1437_v49  ;;  %v1490_v7 = vrot.slane %v1482_v4, %v1489_v0 }
 0x1a1   :  { %v1485_v39 = vsub.f32 %v1483_v6, %v1484_v35  ;;  %v1492_v8 = vmul.f32 %v1490_v7, %v2650_v28  ;;  %v1493_v37 = vmul.f32 %v1490_v7, %v2646_v23  ;;  %v1496_v9 = vmul.f32 %v1490_v7, %v2674_v1 }
 0x1a2   :  { %v1497_v12 = vmul.f32 %v1490_v7, %v2680_v41  ;;  %v1498_v5 = vmul.f32 %v1490_v7, %v2688_v34  ;;  %v1499_v14 = vmul.f32 %v1490_v7, %v2694_v43  ;;  %v1500_v16 = vmul.f32 %v1490_v7, %v2702_v63 }
 0x1a3   :  { %v1501_v17 = vmul.f32 %v1490_v7, %v2708_v10  ;;  %v1502_v18 = vmul.f32 %v1490_v7, %v2716_v30  ;;  %v1503_v20 = vmul.f32 %v1490_v7, %v2722_v40  ;;  %v1504_v28 = vmul.f32 %v1490_v7, %v2730_v60 }
 0x1a4   :  { %v1505_v23 = vmul.f32 %v1490_v7, %v2736_v3  ;;  %v1506_v11 = vmul.f32 %v1490_v7, %v1413_v24  ;;  %v1494_v1 = vmul.f32 %v1490_v7, %v2656_v33  ;;  %v1495_v41 = vmul.f32 %v1490_v7, %v2665_v27 }
 0x1a5   :  { %v1507_v34 = vmul.f32 %v1490_v7, %v1414_v32  ;;  %v1512_v22 = vrot.slane %v1485_v39, %v1489_v0 }
 0x1a7   :  { %v1514_v43 = vadd.f32 %v1512_v22, %v1492_v8  ;;  %v1515_v13 = vadd.f32 %v1512_v22, %v1493_v37  ;;  %v1516_v63 = vadd.f32 %v1512_v22, %v1494_v1  ;;  %v1517_v26 = vadd.f32 %v1512_v22, %v1495_v41 }
 0x1a8   :  { %v1518_v10 = vadd.f32 %v1512_v22, %v1496_v9  ;;  %v1519_v29 = vadd.f32 %v1512_v22, %v1497_v12  ;;  %v1520_v30 = vadd.f32 %v1512_v22, %v1498_v5  ;;  %v1521_v31 = vadd.f32 %v1512_v22, %v1499_v14 }
 0x1a9   :  { %v1522_v40 = vadd.f32 %v1512_v22, %v1500_v16  ;;  %v1523_v51 = vadd.f32 %v1512_v22, %v1501_v17  ;;  %v1524_v60 = vadd.f32 %v1512_v22, %v1502_v18  ;;  %v1525_v36 = vadd.f32 %v1512_v22, %v1503_v20 }
 0x1aa   :  { %v1526_v3 = vadd.f32 %v1512_v22, %v1504_v28  ;;  %v1527_v24 = vadd.f32 %v1512_v22, %v1505_v23  ;;  %v1528_v25 = vadd.f32 %v1512_v22, %v1506_v11  ;;  %v1529_v33 = vadd.f32 %v1512_v22, %v1507_v34 }
 0x1ab   :  { %vm1530_vm0 = vcmp.ge.f32.partialorder %v1514_v43, 0.0  ;;  %vm1531_vm1 = vcmp.ge.f32.partialorder %v1515_v13, 0.0  ;;  %vm1532_vm2 = vcmp.ge.f32.partialorder %v1516_v63, 0.0  ;;  %vm1533_vm3 = vcmp.ge.f32.partialorder %v1517_v26, 0.0 }
 0x1ac   :  { %vm1534_vm4 = vcmp.ge.f32.partialorder %v1518_v10, 0.0  ;;  %vm1535_vm5 = vcmp.ge.f32.partialorder %v1519_v29, 0.0  ;;  %vm1536_vm6 = vcmp.ge.f32.partialorder %v1520_v30, 0.0  ;;  %vm1537_vm7 = vcmp.ge.f32.partialorder %v1521_v31, 0.0 }
 0x1ad   :  { %vm1538_vm8 = vcmp.ge.f32.partialorder %v1522_v40, 0.0  ;;  %vm1539_vm9 = vcmp.ge.f32.partialorder %v1523_v51, 0.0  ;;  %vm1540_vm10 = vcmp.ge.f32.partialorder %v1524_v60, 0.0  ;;  %vm1541_vm11 = vcmp.ge.f32.partialorder %v1525_v36, 0.0 }
 0x1ae   :  { %vm1542_vm12 = vcmp.ge.f32.partialorder %v1526_v3, 0.0  ;;  %vm1543_vm13 = vcmp.ge.f32.partialorder %v1527_v24, 0.0  ;;  %vm1544_vm14 = vcmp.ge.f32.partialorder %v1528_v25, 0.0  ;;  %vm1545_vm15 = vcmp.ge.f32.partialorder %v1529_v33, 0.0 }
 0x1af   :  { %v1546_v27 = vmul.f32 0.2, %v1514_v43  ;;  %v1547_v32 = vmul.f32 0.2, %v1515_v13  ;;  %v1548_v19 = vmul.f32 0.2, %v1516_v63 }
 0x1b0   :  { %v1549_v38 = vmul.f32 0.2, %v1517_v26  ;;  %v1550_v53 = vmul.f32 0.2, %v1518_v10  ;;  %v1551_v42 = vmul.f32 0.2, %v1519_v29 }
 0x1b1   :  { %v1552_v44 = vmul.f32 0.2, %v1520_v30  ;;  %v1553_v21 = vmul.f32 0.2, %v1521_v31  ;;  %v1554_v45 = vmul.f32 0.2, %v1522_v40  ;;  %v1562_v46 = vsel %vm1530_vm0, %v1514_v43, %v1546_v27 }
 0x1b2   :  { %v1555_v54 = vmul.f32 0.2, %v1523_v51  ;;  %v1556_v55 = vmul.f32 0.2, %v1524_v60  ;;  %v1557_v47 = vmul.f32 0.2, %v1525_v36  ;;  %v1563_v48 = vsel %vm1531_vm1, %v1515_v13, %v1547_v32 }
 0x1b3   :  { %v1558_v49 = vmul.f32 0.2, %v1526_v3  ;;  %v1559_v50 = vmul.f32 0.2, %v1527_v24  ;;  %v1560_v52 = vmul.f32 0.2, %v1528_v25  ;;  %v1564_v56 = vsel %vm1532_vm2, %v1516_v63, %v1548_v19 }
 0x1b4   :  { %v1561_v15 = vmul.f32 0.2, %v1529_v33  ;;  %v1565_v57 = vsel %vm1533_vm3, %v1517_v26, %v1549_v38  ;;  %v1566_v58 = vsel %vm1534_vm4, %v1518_v10, %v1550_v53  ;;  %v1567_v59 = vsel %vm1535_vm5, %v1519_v29, %v1551_v42 }
 0x1b5   :  { %v1568_v61 = vsel %vm1536_vm6, %v1520_v30, %v1552_v44  ;;  %v1569_v62 = vsel %vm1537_vm7, %v1521_v31, %v1553_v21  ;;  %v1570_v0 = vsel %vm1538_vm8, %v1522_v40, %v1554_v45  ;;  %v1571_v2 = vsel %vm1539_vm9, %v1523_v51, %v1555_v54 }
 0x1b6   :  { %v1572_v4 = vsel %vm1540_vm10, %v1524_v60, %v1556_v55  ;;  %v1573_v6 = vsel %vm1541_vm11, %v1525_v36, %v1557_v47  ;;  %v1574_v35 = vsel %vm1542_vm12, %v1526_v3, %v1558_v49  ;;  %v1575_v7 = vsel %vm1543_vm13, %v1527_v24, %v1559_v50 }
 0x1b7   :  { %v1576_v39 = vsel %vm1544_vm14, %v1528_v25, %v1560_v52  ;;  %v1577_v8 = vsel %vm1545_vm15, %v1529_v33, %v1561_v15  ;;  %v1826_v37 = vpack.c.bf16 %v1563_v48, %v1562_v46  ;;  %v1831_v9 = vpack.c.bf16 %v1565_v57, %v1564_v56 }
 0x1b8   :  { %v1836_v12 = vpack.c.bf16 %v1567_v59, %v1566_v58  ;;  %v1841_v5 = vpack.c.bf16 %v1569_v62, %v1568_v61  ;;  %v1846_v14 = vpack.c.bf16 %v1571_v2, %v1570_v0  ;;  %v1851_v16 = vpack.c.bf16 %v1573_v6, %v1572_v4 }
 0x1b9   :  { %1827 = vst [vmem:[%s2810_s5] sm:$0xff] %v1826_v37   ;;  %1863 = vst [vmem:[%s2810_s5 + $0x8] sm:$0xff] %v1831_v9   ;;  %v1856_v17 = vpack.c.bf16 %v1575_v7, %v1574_v35  ;;  %v1861_v18 = vpack.c.bf16 %v1577_v8, %v1576_v39 }
 0x1ba   :  { %1864 = vst [vmem:[%s2810_s5 + $0x10] sm:$0xff] %v1836_v12   ;;  %1865 = vst [vmem:[%s2810_s5 + $0x18] sm:$0xff] %v1841_v5  }
 0x1bb   :  { %1866 = vst [vmem:[%s2810_s5 + $0x20] sm:$0xff] %v1846_v14   ;;  %1867 = vst [vmem:[%s2810_s5 + $0x28] sm:$0xff] %v1851_v16  }
 0x1bc   :  { %1868 = vst [vmem:[%s2810_s5 + $0x30] sm:$0xff] %v1856_v17   ;;  %1869 = vst [vmem:[%s2810_s5 + $0x38] sm:$0xff] %v1861_v18  }

// kernel: discriminator32_forward.7
= control target key start
LH: loop header
LB: loop body
LE: loop exit
PB: predicated region body
PF: predicated region fallthrough
CT: control target
= control target key end

     0   :  { %s3075_s0 = inlined_call_operand.vmem [shape: bf16[32,2048], index: 0, kind: input, shape index: {}]   ;;  %s3076_s1 = inlined_call_operand.vmem [shape: bf16[2048,256], index: 1, kind: input, shape index: {}]   ;;  %s3077_s2 = inlined_call_operand.vmem [shape: f32[1,256], index: 2, kind: input, shape index: {}]   ;;  %s3078_s3 = inlined_call_operand.vmem [shape: f32[1,256], index: 3, kind: input, shape index: {}]   ;;  %s3079_s4 = inlined_call_operand.vmem [shape: f32[1,256], index: 4, kind: input, shape index: {}]   ;;  %s3080_s5 = inlined_call_operand.vmem [shape: bf16[32,256], index: 5, kind: output, shape index: {}]  }
   0x1   :  { %3084 = sst [smem:[#allocation9_spill]] %s3075_s0 }
   0x2   :  { %3085 = sst [smem:[#allocation10_spill]] %s3076_s1 }
   0x3   :  { %s2514_s18 = smov 0   ;;  %s2516_s19 = smov 0  }
   0x4   :  { %s2518_s20 = smov 0   ;;  %s2520_s21 = smov 0  }
   0x5   :  { %s2522_s22 = smov 0   ;;  %s2524_s23 = smov 0  }
   0x6   :  { %s2526_s24 = smov 0   ;;  %s2528_s25 = smov 0  }
   0x7   :  { %s2530_s26 = smov 0   ;;  %s2532_s27 = smov 0  }
   0x8   :  { %s2534_s28 = smov 0  }
   0x9 LB: > { %3086 = sst [smem:[#allocation6_spill]] %s2477_s27  ;;  %s2005_s29 = sadd.s32 4294967295, %s2481_s28   ;;  %s2481_s28 = sphi %s2534_s28, %s15_s28   ;;  %s2477_s27 = sphi %s2532_s27, %s3096_s27   ;;  %s2473_s26 = sphi %s2530_s26, %s3104_s26   ;;  %s2469_s25 = sphi %s2528_s25, %s3094_s25   ;;  %s2465_s24 = sphi %s2526_s24, %s3103_s24   ;;  %s2461_s23 = sphi %s2524_s23, %s3102_s23   ;;  %s2457_s22 = sphi %s2522_s22, %s3101_s22   ;;  %s2453_s21 = sphi %s2520_s21, %s3100_s21   ;;  %s2449_s20 = sphi %s2518_s20, %s3099_s20   ;;  %s2445_s19 = sphi %s2516_s19, %s3098_s19   ;;  %s2441_s18 = sphi %s2514_s18, %s3097_s18  }
   0xa   : > { %s24_s30 = sadd.s32 1, %s2473_s26  ;;  %s27_s6 = sadd.s32 1, %s2477_s27 }
   0xb   : > { %p25_p0 = scmp.ge.s32.totalorder %s24_s30, 2  ;;  %s34_s7 = sadd.s32 1, %s2461_s23 }
   0xc   : > { %p41_p1 = scmp.ne.s32.totalorder %s2461_s23, %s2457_s22  ;;  %p42_p2 = scmp.eq.s32.totalorder %s2481_s28, 0 }
   0xd   : > { %s3106_s30 = smov (%p25_p0, %s24_s30), 0  ;;  %s3108_s6 = smov (!%p25_p0, %s27_s6), %s2477_s27 }
   0xe   : > { %3087 = sst [smem:[#allocation7_spill]] %s3106_s30  ;;  %s31_s8 = ssub.s32 %s2473_s26, %s3106_s30 }
   0xf   : > { %p29_p3 = scmp.ge.s32.totalorder %s3108_s6, 2  ;;  %p32_p4 = scmp.eq.s32.totalorder %s31_s8, 0 }
  0x10   : > { %p2581_p5 = por %p42_p2, %p41_p1  ;;  %s62_s10 = sadd.s32 1, %s2453_s21 }
  0x11   : > { %s3110_s6 = smov (%p29_p3, %s3108_s6), 0  ;;  %p69_p6 = scmp.ne.s32.totalorder %s2453_s21, %s2449_s20 }
  0x12   : > { %3089 = sst [smem:[#allocation8_spill]] %s3110_s6  ;;  %s58_s12 = ssub.s32 %s2477_s27, %s3110_s6 }
  0x13   : > { %s2589_s11 = scalar_select %p32_p4, %s2461_s23, %s34_s7  }
  0x14   : > { %s59_s13 = sor.u32 %s58_s12, %s31_s8  ;;  %p164_p7 = scmp.eq.s32.totalorder %s58_s12, 0 }
  0x15   : > { %p60_p8 = scmp.eq.s32.totalorder %s59_s13, 0  ;;  %p2595_p9 = por %p69_p6, %p42_p2 }
  0x16   : > { %s166_s15 = sadd.s32 1, %s2445_s19  ;;  %p176_p10 = scmp.ne.s32.totalorder %s2445_s19, %s2441_s18 }
  0x17   : > { %s2603_s16 = scalar_select %p60_p8, %s2453_s21, %s62_s10  }
  0x18   : > { %s2606_s17 = scalar_select %p164_p7, %s2445_s19, %s166_s15  }
  0x19   : > { %p177_p11 = scmp.eq.s32.totalorder %s2005_s29, 3  ;;  %p2008_p13 = scmp.ge.s32.totalorder %s2481_s28, 4 }
  0x1b   : > { %p2608_p12 = por %p177_p11, %p176_p10  ;;  %199 = sbr.rel (%p2008_p13) target bundleno = 147 (0x93), region = 16 }
  0x22   : > { %202 = sbr.rel (!%p2581_p5) target bundleno = 52 (0x34), region = 20  ;;  %s204_s7 = sand.u32 (%p2581_p5), 1, %s2461_s23  }
  0x23   : > { %s2111_s8 = sshll.u32 (%p2581_p5), %s2473_s26, 5  ;;  %s2009_s12 = sshll.u32 (%p2581_p5), %s204_s7, 7 }
  0x24   : > { %s3092_s0 = sld [smem:[#allocation9_spill]] (%p2581_p5)  ;;  %s206_s29 = scalar_lea.vmem (%p2581_p5), [#allocation3], %s2009_s12 }
  0x2a   : > { %s2620_s15 = scalar_lea.vmem %s3092_s0, %s2111_s8 }
  0x2b   : > { %v222_v0 = vld [vmem:[%s2620_s15] sm:$0xff]  ;;  %v224_v1 = vld [vmem:[%s2620_s15 + $0x8] sm:$0xff]  ;;  %v226_v2 = vld [vmem:[%s2620_s15 + $0x10] sm:$0xff] }
  0x2c   : > { %223 = vst [vmem:[%s206_s29] sm:$0xff] %v222_v0  ;;  %225 = vst [vmem:[%s206_s29 + $0x8] sm:$0xff] %v224_v1  ;;  %v228_v3 = vld [vmem:[%s2620_s15 + $0x18] sm:$0xff]  ;;  %v230_v4 = vld [vmem:[%s2620_s15 + $0x40] sm:$0xff] }
  0x2d   : > { %227 = vst [vmem:[%s206_s29 + $0x10] sm:$0xff] %v226_v2  ;;  %v232_v5 = vld [vmem:[%s2620_s15 + $0x48] sm:$0xff]  ;;  %229 = vst [vmem:[%s206_s29 + $0x18] sm:$0xff] %v228_v3  ;;  %v234_v6 = vld [vmem:[%s2620_s15 + $0x50] sm:$0xff] }
  0x2e   : > { %231 = vst [vmem:[%s206_s29 + $0x20] sm:$0xff] %v230_v4  ;;  %233 = vst [vmem:[%s206_s29 + $0x28] sm:$0xff] %v232_v5  ;;  %v236_v7 = vld [vmem:[%s2620_s15 + $0x58] sm:$0xff]  ;;  %v238_v8 = vld [vmem:[%s2620_s15 + $0x80] sm:$0xff] }
  0x2f   : > { %235 = vst [vmem:[%s206_s29 + $0x30] sm:$0xff] %v234_v6  ;;  %237 = vst [vmem:[%s206_s29 + $0x38] sm:$0xff] %v236_v7  ;;  %v240_v9 = vld [vmem:[%s2620_s15 + $0x88] sm:$0xff]  ;;  %v242_v10 = vld [vmem:[%s2620_s15 + $0x90] sm:$0xff] }
  0x30   : > { %239 = vst [vmem:[%s206_s29 + $0x40] sm:$0xff] %v238_v8  ;;  %v244_v11 = vld [vmem:[%s2620_s15 + $0x98] sm:$0xff]  ;;  %241 = vst [vmem:[%s206_s29 + $0x48] sm:$0xff] %v240_v9  ;;  %v246_v12 = vld [vmem:[%s2620_s15 + $0xc0] sm:$0xff] }
  0x31   : > { %243 = vst [vmem:[%s206_s29 + $0x50] sm:$0xff] %v242_v10  ;;  %245 = vst [vmem:[%s206_s29 + $0x58] sm:$0xff] %v244_v11  ;;  %v248_v13 = vld [vmem:[%s2620_s15 + $0xc8] sm:$0xff]  ;;  %v250_v14 = vld [vmem:[%s2620_s15 + $0xd0] sm:$0xff] }
  0x32   : > { %247 = vst [vmem:[%s206_s29 + $0x60] sm:$0xff] %v246_v12  ;;  %249 = vst [vmem:[%s206_s29 + $0x68] sm:$0xff] %v248_v13  ;;  %v252_v15 = vld [vmem:[%s2620_s15 + $0xd8] sm:$0xff] }
  0x33   : > { %251 = vst [vmem:[%s206_s29 + $0x70] sm:$0xff] %v250_v14  ;;  %253 = vst [vmem:[%s206_s29 + $0x78] sm:$0xff] %v252_v15 }
  0x34 PF: > { %259 = sbr.rel (!%p2595_p9) target bundleno = 147 (0x93), region = 43  ;;  %s261_s9 = sand.u32 (%p2595_p9), 1, %s2453_s21  }
  0x35   : > { %s2112_s7 = sshll.u32 (%p2595_p9), %s2473_s26, 8  ;;  %s2012_s8 = sshll.u32 (%p2595_p9), %s261_s9, 9 }
  0x36   : > { %s266_s12 = sadd.s32 (%p2595_p9), %s2477_s27, %s2112_s7  ;;  %s3093_s1 = sld [smem:[#allocation10_spill]] (%p2595_p9) }
  0x37   : > { %s2015_s10 = sshll.u32 (%p2595_p9), %s266_s12, 2  ;;  %s2651_s14 = scalar_lea.vmem (%p2595_p9), [#allocation4], %s2012_s8 }
  0x3c   : > { %s2646_s6 = scalar_lea.vmem %s3093_s1, %s2015_s10 }
  0x3d   : > { %v284_v16 = vld [vmem:[%s2646_s6] sm:$0xf]  ;;  %v286_v17 = vld [vmem:[%s2646_s6 + $0x8] sm:$0xf]  ;;  %v288_v18 = vld [vmem:[%s2646_s6 + $0x10] sm:$0xf] }
  0x3e   : > { %285 = vst [vmem:[%s2651_s14] sm:$0xf] %v284_v16  ;;  %287 = vst [vmem:[%s2651_s14 + $0x4] sm:$0xf] %v286_v17  ;;  %v290_v19 = vld [vmem:[%s2646_s6 + $0x18] sm:$0xf] }
  0x3f   : > { %289 = vst [vmem:[%s2651_s14 + $0x8] sm:$0xf] %v288_v18  ;;  %v292_v20 = vld [vmem:[%s2646_s6 + $0x20] sm:$0xf]  ;;  %v294_v21 = vld [vmem:[%s2646_s6 + $0x28] sm:$0xf] }
  0x40   : > { %291 = vst [vmem:[%s2651_s14 + $0xc] sm:$0xf] %v290_v19  ;;  %293 = vst [vmem:[%s2651_s14 + $0x10] sm:$0xf] %v292_v20  ;;  %v296_v22 = vld [vmem:[%s2646_s6 + $0x30] sm:$0xf] }
  0x41   : > { %295 = vst [vmem:[%s2651_s14 + $0x14] sm:$0xf] %v294_v21  ;;  %v298_v23 = vld [vmem:[%s2646_s6 + $0x38] sm:$0xf]  ;;  %v300_v24 = vld [vmem:[%s2646_s6 + $0x40] sm:$0xf] }
  0x42   : > { %297 = vst [vmem:[%s2651_s14 + $0x18] sm:$0xf] %v296_v22  ;;  %299 = vst [vmem:[%s2651_s14 + $0x1c] sm:$0xf] %v298_v23  ;;  %v302_v25 = vld [vmem:[%s2646_s6 + $0x48] sm:$0xf] }
  0x43   : > { %301 = vst [vmem:[%s2651_s14 + $0x20] sm:$0xf] %v300_v24  ;;  %v304_v26 = vld [vmem:[%s2646_s6 + $0x50] sm:$0xf]  ;;  %v306_v27 = vld [vmem:[%s2646_s6 + $0x58] sm:$0xf] }
  0x44   : > { %303 = vst [vmem:[%s2651_s14 + $0x24] sm:$0xf] %v302_v25  ;;  %305 = vst [vmem:[%s2651_s14 + $0x28] sm:$0xf] %v304_v26  ;;  %v308_v28 = vld [vmem:[%s2646_s6 + $0x60] sm:$0xf] }
  0x45   : > { %307 = vst [vmem:[%s2651_s14 + $0x2c] sm:$0xf] %v306_v27  ;;  %v310_v29 = vld [vmem:[%s2646_s6 + $0x68] sm:$0xf]  ;;  %v312_v30 = vld [vmem:[%s2646_s6 + $0x70] sm:$0xf] }
  0x46   : > { %309 = vst [vmem:[%s2651_s14 + $0x30] sm:$0xf] %v308_v28  ;;  %311 = vst [vmem:[%s2651_s14 + $0x34] sm:$0xf] %v310_v29  ;;  %v314_v31 = vld [vmem:[%s2646_s6 + $0x78] sm:$0xf] }
  0x47   : > { %313 = vst [vmem:[%s2651_s14 + $0x38] sm:$0xf] %v312_v30  ;;  %v316_v32 = vld [vmem:[%s2646_s6 + $0x80] sm:$0xf]  ;;  %v318_v33 = vld [vmem:[%s2646_s6 + $0x88] sm:$0xf] }
  0x48   : > { %315 = vst [vmem:[%s2651_s14 + $0x3c] sm:$0xf] %v314_v31  ;;  %317 = vst [vmem:[%s2651_s14 + $0x40] sm:$0xf] %v316_v32  ;;  %v320_v34 = vld [vmem:[%s2646_s6 + $0x90] sm:$0xf] }
  0x49   : > { %319 = vst [vmem:[%s2651_s14 + $0x44] sm:$0xf] %v318_v33  ;;  %v322_v35 = vld [vmem:[%s2646_s6 + $0x98] sm:$0xf]  ;;  %v324_v36 = vld [vmem:[%s2646_s6 + $0xa0] sm:$0xf] }
  0x4a   : > { %321 = vst [vmem:[%s2651_s14 + $0x48] sm:$0xf] %v320_v34  ;;  %323 = vst [vmem:[%s2651_s14 + $0x4c] sm:$0xf] %v322_v35  ;;  %v326_v37 = vld [vmem:[%s2646_s6 + $0xa8] sm:$0xf] }
  0x4b   : > { %325 = vst [vmem:[%s2651_s14 + $0x50] sm:$0xf] %v324_v36  ;;  %v328_v38 = vld [vmem:[%s2646_s6 + $0xb0] sm:$0xf]  ;;  %v330_v39 = vld [vmem:[%s2646_s6 + $0xb8] sm:$0xf] }
  0x4c   : > { %327 = vst [vmem:[%s2651_s14 + $0x54] sm:$0xf] %v326_v37  ;;  %329 = vst [vmem:[%s2651_s14 + $0x58] sm:$0xf] %v328_v38  ;;  %v332_v40 = vld [vmem:[%s2646_s6 + $0xc0] sm:$0xf] }
  0x4d   : > { %331 = vst [vmem:[%s2651_s14 + $0x5c] sm:$0xf] %v330_v39  ;;  %v334_v41 = vld [vmem:[%s2646_s6 + $0xc8] sm:$0xf]  ;;  %v336_v42 = vld [vmem:[%s2646_s6 + $0xd0] sm:$0xf] }
  0x4e   : > { %333 = vst [vmem:[%s2651_s14 + $0x60] sm:$0xf] %v332_v40  ;;  %335 = vst [vmem:[%s2651_s14 + $0x64] sm:$0xf] %v334_v41  ;;  %v338_v43 = vld [vmem:[%s2646_s6 + $0xd8] sm:$0xf] }
  0x4f   : > { %337 = vst [vmem:[%s2651_s14 + $0x68] sm:$0xf] %v336_v42  ;;  %v340_v44 = vld [vmem:[%s2646_s6 + $0xe0] sm:$0xf]  ;;  %v342_v45 = vld [vmem:[%s2646_s6 + $0xe8] sm:$0xf] }
  0x50   : > { %339 = vst [vmem:[%s2651_s14 + $0x6c] sm:$0xf] %v338_v43  ;;  %341 = vst [vmem:[%s2651_s14 + $0x70] sm:$0xf] %v340_v44  ;;  %v344_v46 = vld [vmem:[%s2646_s6 + $0xf0] sm:$0xf] }
  0x51   : > { %343 = vst [vmem:[%s2651_s14 + $0x74] sm:$0xf] %v342_v45  ;;  %v346_v47 = vld [vmem:[%s2646_s6 + $0xf8] sm:$0xf]  ;;  %v348_v48 = vld [vmem:[%s2646_s6 + $0x100] sm:$0xf] }
  0x52   : > { %345 = vst [vmem:[%s2651_s14 + $0x78] sm:$0xf] %v344_v46  ;;  %347 = vst [vmem:[%s2651_s14 + $0x7c] sm:$0xf] %v346_v47  ;;  %v350_v49 = vld [vmem:[%s2646_s6 + $0x108] sm:$0xf] }
  0x53   : > { %349 = vst [vmem:[%s2651_s14 + $0x80] sm:$0xf] %v348_v48  ;;  %v352_v50 = vld [vmem:[%s2646_s6 + $0x110] sm:$0xf]  ;;  %v354_v51 = vld [vmem:[%s2646_s6 + $0x118] sm:$0xf] }
  0x54   : > { %351 = vst [vmem:[%s2651_s14 + $0x84] sm:$0xf] %v350_v49  ;;  %353 = vst [vmem:[%s2651_s14 + $0x88] sm:$0xf] %v352_v50  ;;  %v356_v52 = vld [vmem:[%s2646_s6 + $0x120] sm:$0xf] }
  0x55   : > { %355 = vst [vmem:[%s2651_s14 + $0x8c] sm:$0xf] %v354_v51  ;;  %v358_v53 = vld [vmem:[%s2646_s6 + $0x128] sm:$0xf]  ;;  %v360_v54 = vld [vmem:[%s2646_s6 + $0x130] sm:$0xf] }
  0x56   : > { %357 = vst [vmem:[%s2651_s14 + $0x90] sm:$0xf] %v356_v52  ;;  %359 = vst [vmem:[%s2651_s14 + $0x94] sm:$0xf] %v358_v53  ;;  %v362_v55 = vld [vmem:[%s2646_s6 + $0x138] sm:$0xf] }
  0x57   : > { %361 = vst [vmem:[%s2651_s14 + $0x98] sm:$0xf] %v360_v54  ;;  %v364_v56 = vld [vmem:[%s2646_s6 + $0x140] sm:$0xf]  ;;  %v366_v57 = vld [vmem:[%s2646_s6 + $0x148] sm:$0xf] }
  0x58   : > { %363 = vst [vmem:[%s2651_s14 + $0x9c] sm:$0xf] %v362_v55  ;;  %365 = vst [vmem:[%s2651_s14 + $0xa0] sm:$0xf] %v364_v56  ;;  %v368_v58 = vld [vmem:[%s2646_s6 + $0x150] sm:$0xf] }
  0x59   : > { %367 = vst [vmem:[%s2651_s14 + $0xa4] sm:$0xf] %v366_v57  ;;  %v370_v59 = vld [vmem:[%s2646_s6 + $0x158] sm:$0xf]  ;;  %v372_v60 = vld [vmem:[%s2646_s6 + $0x160] sm:$0xf] }
  0x5a   : > { %369 = vst [vmem:[%s2651_s14 + $0xa8] sm:$0xf] %v368_v58  ;;  %371 = vst [vmem:[%s2651_s14 + $0xac] sm:$0xf] %v370_v59  ;;  %v374_v61 = vld [vmem:[%s2646_s6 + $0x168] sm:$0xf] }
  0x5b   : > { %373 = vst [vmem:[%s2651_s14 + $0xb0] sm:$0xf] %v372_v60  ;;  %v376_v62 = vld [vmem:[%s2646_s6 + $0x170] sm:$0xf]  ;;  %v378_v63 = vld [vmem:[%s2646_s6 + $0x178] sm:$0xf] }
  0x5c   : > { %375 = vst [vmem:[%s2651_s14 + $0xb4] sm:$0xf] %v374_v61  ;;  %377 = vst [vmem:[%s2651_s14 + $0xb8] sm:$0xf] %v376_v62  ;;  %v380_v0 = vld [vmem:[%s2646_s6 + $0x180] sm:$0xf] }
  0x5d   : > { %379 = vst [vmem:[%s2651_s14 + $0xbc] sm:$0xf] %v378_v63  ;;  %v382_v1 = vld [vmem:[%s2646_s6 + $0x188] sm:$0xf]  ;;  %v384_v2 = vld [vmem:[%s2646_s6 + $0x190] sm:$0xf] }
  0x5e   : > { %381 = vst [vmem:[%s2651_s14 + $0xc0] sm:$0xf] %v380_v0  ;;  %383 = vst [vmem:[%s2651_s14 + $0xc4] sm:$0xf] %v382_v1  ;;  %v386_v3 = vld [vmem:[%s2646_s6 + $0x198] sm:$0xf] }
  0x5f   : > { %385 = vst [vmem:[%s2651_s14 + $0xc8] sm:$0xf] %v384_v2  ;;  %v388_v4 = vld [vmem:[%s2646_s6 + $0x1a0] sm:$0xf]  ;;  %v390_v5 = vld [vmem:[%s2646_s6 + $0x1a8] sm:$0xf] }
  0x60   : > { %387 = vst [vmem:[%s2651_s14 + $0xcc] sm:$0xf] %v386_v3  ;;  %389 = vst [vmem:[%s2651_s14 + $0xd0] sm:$0xf] %v388_v4  ;;  %v392_v6 = vld [vmem:[%s2646_s6 + $0x1b0] sm:$0xf] }
  0x61   : > { %391 = vst [vmem:[%s2651_s14 + $0xd4] sm:$0xf] %v390_v5  ;;  %v394_v7 = vld [vmem:[%s2646_s6 + $0x1b8] sm:$0xf]  ;;  %v396_v8 = vld [vmem:[%s2646_s6 + $0x1c0] sm:$0xf] }
  0x62   : > { %393 = vst [vmem:[%s2651_s14 + $0xd8] sm:$0xf] %v392_v6  ;;  %395 = vst [vmem:[%s2651_s14 + $0xdc] sm:$0xf] %v394_v7  ;;  %v398_v9 = vld [vmem:[%s2646_s6 + $0x1c8] sm:$0xf] }
  0x63   : > { %397 = vst [vmem:[%s2651_s14 + $0xe0] sm:$0xf] %v396_v8  ;;  %v400_v10 = vld [vmem:[%s2646_s6 + $0x1d0] sm:$0xf]  ;;  %v402_v11 = vld [vmem:[%s2646_s6 + $0x1d8] sm:$0xf] }
  0x64   : > { %399 = vst [vmem:[%s2651_s14 + $0xe4] sm:$0xf] %v398_v9  ;;  %401 = vst [vmem:[%s2651_s14 + $0xe8] sm:$0xf] %v400_v10  ;;  %v404_v12 = vld [vmem:[%s2646_s6 + $0x1e0] sm:$0xf] }
  0x65   : > { %403 = vst [vmem:[%s2651_s14 + $0xec] sm:$0xf] %v402_v11  ;;  %v406_v13 = vld [vmem:[%s2646_s6 + $0x1e8] sm:$0xf]  ;;  %v408_v14 = vld [vmem:[%s2646_s6 + $0x1f0] sm:$0xf] }
  0x66   : > { %405 = vst [vmem:[%s2651_s14 + $0xf0] sm:$0xf] %v404_v12  ;;  %407 = vst [vmem:[%s2651_s14 + $0xf4] sm:$0xf] %v406_v13  ;;  %v410_v15 = vld [vmem:[%s2646_s6 + $0x1f8] sm:$0xf] }
  0x67   : > { %409 = vst [vmem:[%s2651_s14 + $0xf8] sm:$0xf] %v408_v14  ;;  %v412_v16 = vld [vmem:[%s2646_s6 + $0x200] sm:$0xf]  ;;  %v414_v17 = vld [vmem:[%s2646_s6 + $0x208] sm:$0xf] }
  0x68   : > { %411 = vst [vmem:[%s2651_s14 + $0xfc] sm:$0xf] %v410_v15  ;;  %413 = vst [vmem:[%s2651_s14 + $0x100] sm:$0xf] %v412_v16  ;;  %v416_v18 = vld [vmem:[%s2646_s6 + $0x210] sm:$0xf] }
  0x69   : > { %415 = vst [vmem:[%s2651_s14 + $0x104] sm:$0xf] %v414_v17  ;;  %v418_v19 = vld [vmem:[%s2646_s6 + $0x218] sm:$0xf]  ;;  %v420_v20 = vld [vmem:[%s2646_s6 + $0x220] sm:$0xf] }
  0x6a   : > { %417 = vst [vmem:[%s2651_s14 + $0x108] sm:$0xf] %v416_v18  ;;  %419 = vst [vmem:[%s2651_s14 + $0x10c] sm:$0xf] %v418_v19  ;;  %v422_v21 = vld [vmem:[%s2646_s6 + $0x228] sm:$0xf] }
  0x6b   : > { %421 = vst [vmem:[%s2651_s14 + $0x110] sm:$0xf] %v420_v20  ;;  %v424_v22 = vld [vmem:[%s2646_s6 + $0x230] sm:$0xf]  ;;  %v426_v23 = vld [vmem:[%s2646_s6 + $0x238] sm:$0xf] }
  0x6c   : > { %423 = vst [vmem:[%s2651_s14 + $0x114] sm:$0xf] %v422_v21  ;;  %425 = vst [vmem:[%s2651_s14 + $0x118] sm:$0xf] %v424_v22  ;;  %v428_v24 = vld [vmem:[%s2646_s6 + $0x240] sm:$0xf] }
  0x6d   : > { %427 = vst [vmem:[%s2651_s14 + $0x11c] sm:$0xf] %v426_v23  ;;  %v430_v25 = vld [vmem:[%s2646_s6 + $0x248] sm:$0xf]  ;;  %v432_v26 = vld [vmem:[%s2646_s6 + $0x250] sm:$0xf] }
  0x6e   : > { %429 = vst [vmem:[%s2651_s14 + $0x120] sm:$0xf] %v428_v24  ;;  %431 = vst [vmem:[%s2651_s14 + $0x124] sm:$0xf] %v430_v25  ;;  %v434_v27 = vld [vmem:[%s2646_s6 + $0x258] sm:$0xf] }
  0x6f   : > { %433 = vst [vmem:[%s2651_s14 + $0x128] sm:$0xf] %v432_v26  ;;  %v436_v28 = vld [vmem:[%s2646_s6 + $0x260] sm:$0xf]  ;;  %v438_v29 = vld [vmem:[%s2646_s6 + $0x268] sm:$0xf] }
  0x70   : > { %435 = vst [vmem:[%s2651_s14 + $0x12c] sm:$0xf] %v434_v27  ;;  %437 = vst [vmem:[%s2651_s14 + $0x130] sm:$0xf] %v436_v28  ;;  %v440_v30 = vld [vmem:[%s2646_s6 + $0x270] sm:$0xf] }
  0x71   : > { %439 = vst [vmem:[%s2651_s14 + $0x134] sm:$0xf] %v438_v29  ;;  %v442_v31 = vld [vmem:[%s2646_s6 + $0x278] sm:$0xf]  ;;  %v444_v32 = vld [vmem:[%s2646_s6 + $0x280] sm:$0xf] }
  0x72   : > { %441 = vst [vmem:[%s2651_s14 + $0x138] sm:$0xf] %v440_v30  ;;  %443 = vst [vmem:[%s2651_s14 + $0x13c] sm:$0xf] %v442_v31  ;;  %v446_v33 = vld [vmem:[%s2646_s6 + $0x288] sm:$0xf] }
  0x73   : > { %445 = vst [vmem:[%s2651_s14 + $0x140] sm:$0xf] %v444_v32  ;;  %v448_v34 = vld [vmem:[%s2646_s6 + $0x290] sm:$0xf]  ;;  %v450_v35 = vld [vmem:[%s2646_s6 + $0x298] sm:$0xf] }
  0x74   : > { %447 = vst [vmem:[%s2651_s14 + $0x144] sm:$0xf] %v446_v33  ;;  %449 = vst [vmem:[%s2651_s14 + $0x148] sm:$0xf] %v448_v34  ;;  %v452_v36 = vld [vmem:[%s2646_s6 + $0x2a0] sm:$0xf] }
  0x75   : > { %451 = vst [vmem:[%s2651_s14 + $0x14c] sm:$0xf] %v450_v35  ;;  %v454_v37 = vld [vmem:[%s2646_s6 + $0x2a8] sm:$0xf]  ;;  %v456_v38 = vld [vmem:[%s2646_s6 + $0x2b0] sm:$0xf] }
  0x76   : > { %453 = vst [vmem:[%s2651_s14 + $0x150] sm:$0xf] %v452_v36  ;;  %455 = vst [vmem:[%s2651_s14 + $0x154] sm:$0xf] %v454_v37  ;;  %v458_v39 = vld [vmem:[%s2646_s6 + $0x2b8] sm:$0xf] }
  0x77   : > { %457 = vst [vmem:[%s2651_s14 + $0x158] sm:$0xf] %v456_v38  ;;  %v460_v40 = vld [vmem:[%s2646_s6 + $0x2c0] sm:$0xf]  ;;  %v462_v41 = vld [vmem:[%s2646_s6 + $0x2c8] sm:$0xf] }
  0x78   : > { %459 = vst [vmem:[%s2651_s14 + $0x15c] sm:$0xf] %v458_v39  ;;  %461 = vst [vmem:[%s2651_s14 + $0x160] sm:$0xf] %v460_v40  ;;  %v464_v42 = vld [vmem:[%s2646_s6 + $0x2d0] sm:$0xf] }
  0x79   : > { %463 = vst [vmem:[%s2651_s14 + $0x164] sm:$0xf] %v462_v41  ;;  %v466_v43 = vld [vmem:[%s2646_s6 + $0x2d8] sm:$0xf]  ;;  %v468_v44 = vld [vmem:[%s2646_s6 + $0x2e0] sm:$0xf] }
  0x7a   : > { %465 = vst [vmem:[%s2651_s14 + $0x168] sm:$0xf] %v464_v42  ;;  %467 = vst [vmem:[%s2651_s14 + $0x16c] sm:$0xf] %v466_v43  ;;  %v470_v45 = vld [vmem:[%s2646_s6 + $0x2e8] sm:$0xf] }
  0x7b   : > { %469 = vst [vmem:[%s2651_s14 + $0x170] sm:$0xf] %v468_v44  ;;  %v472_v46 = vld [vmem:[%s2646_s6 + $0x2f0] sm:$0xf]  ;;  %v474_v47 = vld [vmem:[%s2646_s6 + $0x2f8] sm:$0xf] }
  0x7c   : > { %471 = vst [vmem:[%s2651_s14 + $0x174] sm:$0xf] %v470_v45  ;;  %473 = vst [vmem:[%s2651_s14 + $0x178] sm:$0xf] %v472_v46  ;;  %v476_v48 = vld [vmem:[%s2646_s6 + $0x300] sm:$0xf] }
  0x7d   : > { %475 = vst [vmem:[%s2651_s14 + $0x17c] sm:$0xf] %v474_v47  ;;  %v478_v49 = vld [vmem:[%s2646_s6 + $0x308] sm:$0xf]  ;;  %v480_v50 = vld [vmem:[%s2646_s6 + $0x310] sm:$0xf] }
  0x7e   : > { %477 = vst [vmem:[%s2651_s14 + $0x180] sm:$0xf] %v476_v48  ;;  %479 = vst [vmem:[%s2651_s14 + $0x184] sm:$0xf] %v478_v49  ;;  %v482_v51 = vld [vmem:[%s2646_s6 + $0x318] sm:$0xf] }
  0x7f   : > { %481 = vst [vmem:[%s2651_s14 + $0x188] sm:$0xf] %v480_v50  ;;  %v484_v52 = vld [vmem:[%s2646_s6 + $0x320] sm:$0xf]  ;;  %v486_v53 = vld [vmem:[%s2646_s6 + $0x328] sm:$0xf] }
  0x80   : > { %483 = vst [vmem:[%s2651_s14 + $0x18c] sm:$0xf] %v482_v51  ;;  %485 = vst [vmem:[%s2651_s14 + $0x190] sm:$0xf] %v484_v52  ;;  %v488_v54 = vld [vmem:[%s2646_s6 + $0x330] sm:$0xf] }
  0x81   : > { %487 = vst [vmem:[%s2651_s14 + $0x194] sm:$0xf] %v486_v53  ;;  %v490_v55 = vld [vmem:[%s2646_s6 + $0x338] sm:$0xf]  ;;  %v492_v56 = vld [vmem:[%s2646_s6 + $0x340] sm:$0xf] }
  0x82   : > { %489 = vst [vmem:[%s2651_s14 + $0x198] sm:$0xf] %v488_v54  ;;  %491 = vst [vmem:[%s2651_s14 + $0x19c] sm:$0xf] %v490_v55  ;;  %v494_v57 = vld [vmem:[%s2646_s6 + $0x348] sm:$0xf] }
  0x83   : > { %493 = vst [vmem:[%s2651_s14 + $0x1a0] sm:$0xf] %v492_v56  ;;  %v496_v58 = vld [vmem:[%s2646_s6 + $0x350] sm:$0xf]  ;;  %v498_v59 = vld [vmem:[%s2646_s6 + $0x358] sm:$0xf] }
  0x84   : > { %495 = vst [vmem:[%s2651_s14 + $0x1a4] sm:$0xf] %v494_v57  ;;  %497 = vst [vmem:[%s2651_s14 + $0x1a8] sm:$0xf] %v496_v58  ;;  %v500_v60 = vld [vmem:[%s2646_s6 + $0x360] sm:$0xf] }
  0x85   : > { %499 = vst [vmem:[%s2651_s14 + $0x1ac] sm:$0xf] %v498_v59  ;;  %v502_v61 = vld [vmem:[%s2646_s6 + $0x368] sm:$0xf]  ;;  %v504_v62 = vld [vmem:[%s2646_s6 + $0x370] sm:$0xf] }
  0x86   : > { %501 = vst [vmem:[%s2651_s14 + $0x1b0] sm:$0xf] %v500_v60  ;;  %503 = vst [vmem:[%s2651_s14 + $0x1b4] sm:$0xf] %v502_v61  ;;  %v506_v63 = vld [vmem:[%s2646_s6 + $0x378] sm:$0xf] }
  0x87   : > { %505 = vst [vmem:[%s2651_s14 + $0x1b8] sm:$0xf] %v504_v62  ;;  %v508_v0 = vld [vmem:[%s2646_s6 + $0x380] sm:$0xf]  ;;  %v510_v1 = vld [vmem:[%s2646_s6 + $0x388] sm:$0xf] }
  0x88   : > { %507 = vst [vmem:[%s2651_s14 + $0x1bc] sm:$0xf] %v506_v63  ;;  %509 = vst [vmem:[%s2651_s14 + $0x1c0] sm:$0xf] %v508_v0  ;;  %v512_v2 = vld [vmem:[%s2646_s6 + $0x390] sm:$0xf] }
  0x89   : > { %511 = vst [vmem:[%s2651_s14 + $0x1c4] sm:$0xf] %v510_v1  ;;  %v514_v3 = vld [vmem:[%s2646_s6 + $0x398] sm:$0xf]  ;;  %v516_v4 = vld [vmem:[%s2646_s6 + $0x3a0] sm:$0xf] }
  0x8a   : > { %513 = vst [vmem:[%s2651_s14 + $0x1c8] sm:$0xf] %v512_v2  ;;  %515 = vst [vmem:[%s2651_s14 + $0x1cc] sm:$0xf] %v514_v3  ;;  %v518_v5 = vld [vmem:[%s2646_s6 + $0x3a8] sm:$0xf] }
  0x8b   : > { %517 = vst [vmem:[%s2651_s14 + $0x1d0] sm:$0xf] %v516_v4  ;;  %v520_v6 = vld [vmem:[%s2646_s6 + $0x3b0] sm:$0xf]  ;;  %v522_v7 = vld [vmem:[%s2646_s6 + $0x3b8] sm:$0xf] }
  0x8c   : > { %519 = vst [vmem:[%s2651_s14 + $0x1d4] sm:$0xf] %v518_v5  ;;  %521 = vst [vmem:[%s2651_s14 + $0x1d8] sm:$0xf] %v520_v6  ;;  %v524_v8 = vld [vmem:[%s2646_s6 + $0x3c0] sm:$0xf] }
  0x8d   : > { %523 = vst [vmem:[%s2651_s14 + $0x1dc] sm:$0xf] %v522_v7  ;;  %v526_v9 = vld [vmem:[%s2646_s6 + $0x3c8] sm:$0xf]  ;;  %v528_v10 = vld [vmem:[%s2646_s6 + $0x3d0] sm:$0xf] }
  0x8e   : > { %525 = vst [vmem:[%s2651_s14 + $0x1e0] sm:$0xf] %v524_v8  ;;  %527 = vst [vmem:[%s2651_s14 + $0x1e4] sm:$0xf] %v526_v9  ;;  %v530_v11 = vld [vmem:[%s2646_s6 + $0x3d8] sm:$0xf] }
  0x8f   : > { %529 = vst [vmem:[%s2651_s14 + $0x1e8] sm:$0xf] %v528_v10  ;;  %v532_v12 = vld [vmem:[%s2646_s6 + $0x3e0] sm:$0xf]  ;;  %v534_v13 = vld [vmem:[%s2646_s6 + $0x3e8] sm:$0xf] }
  0x90   : > { %531 = vst [vmem:[%s2651_s14 + $0x1ec] sm:$0xf] %v530_v11  ;;  %533 = vst [vmem:[%s2651_s14 + $0x1f0] sm:$0xf] %v532_v12  ;;  %v536_v14 = vld [vmem:[%s2646_s6 + $0x3f0] sm:$0xf] }
  0x91   : > { %535 = vst [vmem:[%s2651_s14 + $0x1f4] sm:$0xf] %v534_v13  ;;  %v538_v15 = vld [vmem:[%s2646_s6 + $0x3f8] sm:$0xf]  ;;  %537 = vst [vmem:[%s2651_s14 + $0x1f8] sm:$0xf] %v536_v14 }
  0x92   : > { %539 = vst [vmem:[%s2651_s14 + $0x1fc] sm:$0xf] %v538_v15 }
  0x93 PF: > { %p2016_p0 = scmp.ge.s32.totalorder %s2481_s28, 1  ;;  %p835_p1 = scmp.lt.s32.totalorder %s2481_s28, 5 }
  0x95   : > { %p836_p2 = pnand %p2016_p0, %p835_p1 }
  0x96   : > { %s842_s0 = sand.u32 (!%p836_p2), 1, %s2457_s22   ;;  %s849_s15 = sand.u32 (!%p836_p2), 1, %s2449_s20  }
  0x97   : > { %839 = sbr.rel (%p836_p2) target bundleno = 534 (0x216), region = 96  ;;  %s2017_s29 = sshll.u32 (!%p836_p2), %s842_s0, 7 }
  0x98   : > { %s2018_s9 = sshll.u32 (!%p836_p2), %s849_s15, 9  ;;  %s885_s6 = sand.u32 (!%p836_p2), 1, %s2441_s18  }
  0x99   : > { %p890_p3 = scmp.lt.s32.totalorder (!%p836_p2), %s2469_s25, 1  ;;  %s2019_s7 = sshll.u32 (!%p836_p2), %s885_s6, 4 }
  0x9a   : > { %s2927_s18 = scalar_lea.vmem (!%p836_p2), [#allocation3], %s2017_s29  ;;  %s2929_s15 = scalar_lea.vmem (!%p836_p2), [#allocation4], %s2018_s9 }
  0x9b   : > { %s2931_s6 = scalar_lea.vmem (!%p836_p2), [#allocation5], %s2019_s7  ;;  %p2020_p4 = scmp.ne.s32.totalorder (!%p836_p2), %s2465_s24, 0 }
  0x9e   : > { %s2913_s8 = scalar_select %p890_p3, %s2469_s25, 1 }
  0x9f   : > { %903 = sbr.rel (%p2020_p4) target bundleno = 166 (0xa6), region = 108  ;;  %v2483_v16 = vmov (!%p2020_p4), 0.0  }
  0xa0   : > { %s892_s13 = scalar_lea.vmem %s3077_s2, %s2913_s8  ;;  %s895_s27 = scalar_lea.vmem %s3078_s3, %s2913_s8  ;;  %904 = vst [vmem:[#allocation2] sm:$0xff] (!%p2020_p4), %v2483_v16  ;;  %905 = vst [vmem:[#allocation2 + $0x8] sm:$0xff] (!%p2020_p4), %v2483_v16 }
  0xa1   : > { %s898_s0 = scalar_lea.vmem %s3079_s4, %s2913_s8  ;;  %906 = vst [vmem:[#allocation2 + $0x10] sm:$0xff] (!%p2020_p4), %v2483_v16  ;;  %907 = vst [vmem:[#allocation2 + $0x18] sm:$0xff] (!%p2020_p4), %v2483_v16 }
  0xa6 PF: > { %v2329_v17 = vld [vmem:[%s2929_s15 + $0x40] sm:$0xff]   ;;  %v2333_v21 = vld [vmem:[%s2929_s15 + $0x48] sm:$0xff]   ;;  %v2337_v25 = vld [vmem:[%s2929_s15 + $0x50] sm:$0xff]   ;;  %p2101_p5 = scmp.ne.s32.totalorder %s2465_s24, 1 }
  0xa7   : > { %v2330_v18 = vld [vmem:[%s2929_s15 + $0xc0] sm:$0xff]   ;;  %2128 = vmatprep.subr.bf16.mxu0 %v2329_v17  ;;  %v2334_v22 = vld [vmem:[%s2929_s15 + $0xc8] sm:$0xff]   ;;  %v2338_v26 = vld [vmem:[%s2929_s15 + $0xd0] sm:$0xff]  }
  0xa8   : > { %v2331_v19 = vld [vmem:[%s2929_s15] sm:$0xff]   ;;  %2156 = vmatprep.subr.bf16.mxu1 %v2330_v18  ;;  %v2335_v23 = vld [vmem:[%s2929_s15 + $0x8] sm:$0xff]   ;;  %v2339_v27 = vld [vmem:[%s2929_s15 + $0x10] sm:$0xff]  }
  0xa9   : > { %v2332_v20 = vld [vmem:[%s2929_s15 + $0x80] sm:$0xff]   ;;  %2129 = vmatpush3.bf16.msra.mxu0 %v2331_v19  ;;  %v2336_v24 = vld [vmem:[%s2929_s15 + $0x88] sm:$0xff]   ;;  %v2340_v28 = vld [vmem:[%s2929_s15 + $0x90] sm:$0xff]  }
  0xaa   : > { %2157 = vmatpush3.bf16.msra.mxu1 %v2332_v20  ;;  %2130 = vmatprep.subr.bf16.mxu0 %v2333_v21  ;;  %v2341_v29 = vld [vmem:[%s2929_s15 + $0x58] sm:$0xff]   ;;  %v2345_v33 = vld [vmem:[%s2929_s15 + $0x60] sm:$0xff]   ;;  %v2349_v37 = vld [vmem:[%s2929_s15 + $0x68] sm:$0xff]  }
  0xab   : > { %2158 = vmatprep.subr.bf16.mxu1 %v2334_v22  ;;  %v2342_v30 = vld [vmem:[%s2929_s15 + $0xd8] sm:$0xff]   ;;  %v2346_v34 = vld [vmem:[%s2929_s15 + $0xe0] sm:$0xff]   ;;  %v2350_v38 = vld [vmem:[%s2929_s15 + $0xe8] sm:$0xff]  }
  0xac   : > { %v2343_v31 = vld [vmem:[%s2929_s15 + $0x18] sm:$0xff]   ;;  %v2347_v35 = vld [vmem:[%s2929_s15 + $0x20] sm:$0xff]   ;;  %v2351_v39 = vld [vmem:[%s2929_s15 + $0x28] sm:$0xff]  }
  0xad   : > { %2131 = vmatpush3.bf16.msra.mxu0 %v2335_v23  ;;  %v2344_v32 = vld [vmem:[%s2929_s15 + $0x98] sm:$0xff]   ;;  %v2348_v36 = vld [vmem:[%s2929_s15 + $0xa0] sm:$0xff]   ;;  %v2352_v40 = vld [vmem:[%s2929_s15 + $0xa8] sm:$0xff]  }
  0xae   : > { %2159 = vmatpush3.bf16.msra.mxu1 %v2336_v24  ;;  %2132 = vmatprep.subr.bf16.mxu0 %v2337_v25  ;;  %v2353_v41 = vld [vmem:[%s2929_s15 + $0x70] sm:$0xff]   ;;  %v2357_v45 = vld [vmem:[%s2929_s15 + $0x78] sm:$0xff]   ;;  %v912_v49 = vld [vmem:[%s2927_s18] sm:$0xff] }
  0xaf   : > { %2160 = vmatprep.subr.bf16.mxu1 %v2338_v26  ;;  %v2354_v42 = vld [vmem:[%s2929_s15 + $0xf0] sm:$0xff]   ;;  %v2358_v46 = vld [vmem:[%s2929_s15 + $0xf8] sm:$0xff]   ;;  %v916_v50 = vld [vmem:[%s2927_s18 + $0x20] sm:$0xff] }
  0xb0   : > { %v2355_v43 = vld [vmem:[%s2929_s15 + $0x30] sm:$0xff]   ;;  %v2359_v47 = vld [vmem:[%s2929_s15 + $0x38] sm:$0xff]   ;;  %v913_v51 = vld [vmem:[%s2927_s18 + $0x8] sm:$0xff]  ;;  %v2021_v52 = vcombine.low %v912_v49, %v916_v50  ;;  %v2022_v53 = vcombine.high %v912_v49, %v916_v50 }
  0xb1   : > { %2133 = vmatpush3.bf16.msra.mxu0 %v2339_v27  ;;  %v2356_v44 = vld [vmem:[%s2929_s15 + $0xb0] sm:$0xff]   ;;  %v2360_v48 = vld [vmem:[%s2929_s15 + $0xb8] sm:$0xff]   ;;  %v917_v54 = vld [vmem:[%s2927_s18 + $0x28] sm:$0xff] }
  0xb2   : > { %2161 = vmatpush3.bf16.msra.mxu1 %v2340_v28  ;;  %2134 = vmatprep.subr.bf16.mxu0 %v2341_v29  ;;  %v2023_v55 = vcombine.low %v913_v51, %v917_v54  ;;  %v2024_v56 = vcombine.high %v913_v51, %v917_v54  ;;  %v2361_v57 = vld [vmem:[%s2929_s15 + $0x140] sm:$0xff]   ;;  %v2365_v61 = vld [vmem:[%s2929_s15 + $0x148] sm:$0xff]   ;;  %v2369_v1 = vld [vmem:[%s2929_s15 + $0x150] sm:$0xff]  }
  0xb3   : > { %2162 = vmatprep.subr.bf16.mxu1 %v2342_v30  ;;  %1552 = vmatprep.mubr.bf16.mxu0 %v2022_v53  ;;  %v2362_v58 = vld [vmem:[%s2929_s15 + $0x1c0] sm:$0xff]   ;;  %v2366_v62 = vld [vmem:[%s2929_s15 + $0x1c8] sm:$0xff]   ;;  %v2370_v2 = vld [vmem:[%s2929_s15 + $0x1d0] sm:$0xff]  }
  0xb4   : > { %1601 = vmatprep.mubr.bf16.mxu1 %v2024_v56  ;;  %v2363_v59 = vld [vmem:[%s2929_s15 + $0x100] sm:$0xff]   ;;  %v2367_v63 = vld [vmem:[%s2929_s15 + $0x108] sm:$0xff]   ;;  %v2371_v3 = vld [vmem:[%s2929_s15 + $0x110] sm:$0xff]  }
  0xb5   : > { %2135 = vmatpush3.bf16.msra.mxu0 %v2343_v31  ;;  %v2364_v60 = vld [vmem:[%s2929_s15 + $0x180] sm:$0xff]   ;;  %v2368_v0 = vld [vmem:[%s2929_s15 + $0x188] sm:$0xff]   ;;  %v2372_v4 = vld [vmem:[%s2929_s15 + $0x190] sm:$0xff]  }
  0xb6   : > { %2163 = vmatpush3.bf16.msra.mxu1 %v2344_v32  ;;  %2136 = vmatprep.subr.bf16.mxu0 %v2345_v33  ;;  %v2373_v5 = vld [vmem:[%s2929_s15 + $0x158] sm:$0xff]   ;;  %v2377_v9 = vld [vmem:[%s2929_s15 + $0x160] sm:$0xff]   ;;  %v921_v16 = vld [vmem:[%s2927_s18 + $0x48] sm:$0xff] }
  0xb7   : > { %2164 = vmatprep.subr.bf16.mxu1 %v2346_v34  ;;  %v2374_v6 = vld [vmem:[%s2929_s15 + $0x1d8] sm:$0xff]   ;;  %v2378_v10 = vld [vmem:[%s2929_s15 + $0x1e0] sm:$0xff]   ;;  %v925_v17 = vld [vmem:[%s2927_s18 + $0x68] sm:$0xff] }
  0xb8   : > { %v2375_v7 = vld [vmem:[%s2929_s15 + $0x118] sm:$0xff]   ;;  %v2379_v11 = vld [vmem:[%s2929_s15 + $0x120] sm:$0xff]   ;;  %v2032_v19 = vcombine.high %v921_v16, %v925_v17  ;;  %v2381_v20 = vld [vmem:[%s2929_s15 + $0x168] sm:$0xff]   ;;  %v2031_v21 = vcombine.low %v921_v16, %v925_v17 }
  0xb9   : > { %2137 = vmatpush3.bf16.msra.mxu0 %v2347_v35  ;;  %v2376_v8 = vld [vmem:[%s2929_s15 + $0x198] sm:$0xff]   ;;  %v2380_v12 = vld [vmem:[%s2929_s15 + $0x1a0] sm:$0xff]   ;;  %v2382_v22 = vld [vmem:[%s2929_s15 + $0x1e8] sm:$0xff]  }
  0xba   : > { %2165 = vmatpush3.bf16.msra.mxu1 %v2348_v36  ;;  %2138 = vmatprep.subr.bf16.mxu0 %v2349_v37  ;;  %v920_v13 = vld [vmem:[%s2927_s18 + $0x40] sm:$0xff]  ;;  %v2383_v23 = vld [vmem:[%s2929_s15 + $0x128] sm:$0xff]   ;;  %v2385_v25 = vld [vmem:[%s2929_s15 + $0x170] sm:$0xff]  }
  0xbb   : > { %2166 = vmatprep.subr.bf16.mxu1 %v2350_v38  ;;  %v924_v14 = vld [vmem:[%s2927_s18 + $0x60] sm:$0xff]  ;;  %v2384_v24 = vld [vmem:[%s2929_s15 + $0x1a8] sm:$0xff]   ;;  %v2386_v26 = vld [vmem:[%s2929_s15 + $0x1f0] sm:$0xff]  }
  0xbc   : > { %v2030_v15 = vcombine.high %v920_v13, %v924_v14  ;;  %v2029_v18 = vcombine.low %v920_v13, %v924_v14  ;;  %v2387_v27 = vld [vmem:[%s2929_s15 + $0x130] sm:$0xff]   ;;  %v2389_v29 = vld [vmem:[%s2929_s15 + $0x178] sm:$0xff]  }
  0xbd   : > { %2139 = vmatpush3.bf16.msra.mxu0 %v2351_v39  ;;  %v2388_v28 = vld [vmem:[%s2929_s15 + $0x1b0] sm:$0xff]   ;;  %v2390_v30 = vld [vmem:[%s2929_s15 + $0x1f8] sm:$0xff]  }
  0xbe   : > { %2167 = vmatpush3.bf16.msra.mxu1 %v2352_v40  ;;  %2140 = vmatprep.subr.bf16.mxu0 %v2353_v41  ;;  %v2391_v31 = vld [vmem:[%s2929_s15 + $0x138] sm:$0xff]   ;;  %v914_v33 = vld [vmem:[%s2927_s18 + $0x10] sm:$0xff] }
  0xbf   : > { %2168 = vmatprep.subr.bf16.mxu1 %v2354_v42  ;;  %v2392_v32 = vld [vmem:[%s2929_s15 + $0x1b8] sm:$0xff]   ;;  %v918_v34 = vld [vmem:[%s2927_s18 + $0x30] sm:$0xff] }
  0xc0   : > { %v915_v35 = vld [vmem:[%s2927_s18 + $0x18] sm:$0xff]  ;;  %v2025_v37 = vcombine.low %v914_v33, %v918_v34  ;;  %v2026_v38 = vcombine.high %v914_v33, %v918_v34  ;;  %v922_v41 = vld [vmem:[%s2927_s18 + $0x50] sm:$0xff] }
  0xc1   : > { %2141 = vmatpush3.bf16.msra.mxu0 %v2355_v43  ;;  %v919_v36 = vld [vmem:[%s2927_s18 + $0x38] sm:$0xff]  ;;  %v926_v42 = vld [vmem:[%s2927_s18 + $0x70] sm:$0xff] }
  0xc2   : > { %2169 = vmatpush3.bf16.msra.mxu1 %v2356_v44  ;;  %2142 = vmatprep.subr.bf16.mxu0 %v2357_v45  ;;  %v2027_v39 = vcombine.low %v915_v35, %v919_v36  ;;  %v2028_v40 = vcombine.high %v915_v35, %v919_v36  ;;  %v923_v43 = vld [vmem:[%s2927_s18 + $0x58] sm:$0xff]  ;;  %v2034_v44 = vcombine.high %v922_v41, %v926_v42 }
  0xc3   : > { %2170 = vmatprep.subr.bf16.mxu1 %v2358_v46  ;;  %v927_v45 = vld [vmem:[%s2927_s18 + $0x78] sm:$0xff] }
  0xc4   : > { %v2036_v46 = vcombine.high %v923_v43, %v927_v45 }
  0xc5   : > { %2143 = vmatpush3.bf16.msra.mxu0 %v2359_v47  ;;  %v2033_v47 = vcombine.low %v922_v41, %v926_v42 }
  0xc6   : > { %2171 = vmatpush3.bf16.msra.mxu1 %v2360_v48  ;;  %2184 = vmatprep.subr.bf16.mxu0 %v2361_v57  ;;  %v2035_v48 = vcombine.low %v923_v43, %v927_v45 }
  0xc7   : > { %2212 = vmatprep.subr.bf16.mxu1 %v2362_v58 }
  0xc8   : > { %1553 = vmatmul.mubr.bf16.vlgmr.msra.gmra.mrb[0].mxu0 %v2021_v52 }
  0xc9   : > { %1602 = vmatmul.mubr.bf16.vlgmr.msra.gmra.mrb[0].mxu1 %v2023_v55  ;;  %2185 = vmatpush3.bf16.msra.mxu0 %v2363_v59 }
  0xca   : > { %2213 = vmatpush3.bf16.msra.mxu1 %v2364_v60  ;;  %2186 = vmatprep.subr.bf16.mxu0 %v2365_v61 }
  0xcb   : > { %2214 = vmatprep.subr.bf16.mxu1 %v2366_v62  ;;  %1560 = vmatprep.mubr.bf16.mxu0 %v2030_v15 }
  0xcc   : > { %1609 = vmatprep.mubr.bf16.mxu1 %v2032_v19 }
  0xcd   : > { %2187 = vmatpush3.bf16.msra.mxu0 %v2367_v63 }
  0xce   : > { %2215 = vmatpush3.bf16.msra.mxu1 %v2368_v0  ;;  %2188 = vmatprep.subr.bf16.mxu0 %v2369_v1 }
  0xcf   : > { %2216 = vmatprep.subr.bf16.mxu1 %v2370_v2 }
  0xd0   : > { %1561 = vmatmul.mubr.bf16.gmra.mrb[4].mxu0 %v2029_v18 }
  0xd1   : > { %2189 = vmatpush3.bf16.msra.mxu0 %v2371_v3  ;;  %1610 = vmatmul.mubr.bf16.gmra.mrb[4].mxu1 %v2031_v21 }
  0xd2   : > { %2217 = vmatpush3.bf16.msra.mxu1 %v2372_v4  ;;  %2190 = vmatprep.subr.bf16.mxu0 %v2373_v5 }
  0xd3   : > { %2218 = vmatprep.subr.bf16.mxu1 %v2374_v6  ;;  %1650 = vmatprep.mubr.bf16.mxu0 %v2026_v38 }
  0xd4   : > { %1699 = vmatprep.mubr.bf16.mxu1 %v2028_v40 }
  0xd5   : > { %2191 = vmatpush3.bf16.msra.mxu0 %v2375_v7 }
  0xd6   : > { %2219 = vmatpush3.bf16.msra.mxu1 %v2376_v8  ;;  %2192 = vmatprep.subr.bf16.mxu0 %v2377_v9 }
  0xd7   : > { %2220 = vmatprep.subr.bf16.mxu1 %v2378_v10 }
  0xd9   : > { %2193 = vmatpush3.bf16.msra.mxu0 %v2379_v11 }
  0xda   : > { %2221 = vmatpush3.bf16.msra.mxu1 %v2380_v12  ;;  %2194 = vmatprep.subr.bf16.mxu0 %v2381_v20 }
  0xdb   : > { %2222 = vmatprep.subr.bf16.mxu1 %v2382_v22 }
  0xdd   : > { %2195 = vmatpush3.bf16.msra.mxu0 %v2383_v23 }
  0xde   : > { %2223 = vmatpush3.bf16.msra.mxu1 %v2384_v24  ;;  %2196 = vmatprep.subr.bf16.mxu0 %v2385_v25 }
  0xdf   : > { %2224 = vmatprep.subr.bf16.mxu1 %v2386_v26  ;;  %v908_v26 = vld [vmem:[#allocation2] sm:$0xff] }
  0xe1   : > { %2197 = vmatpush3.bf16.msra.mxu0 %v2387_v27 }
  0xe2   : > { %2225 = vmatpush3.bf16.msra.mxu1 %v2388_v28  ;;  %2198 = vmatprep.subr.bf16.mxu0 %v2389_v29  ;;  %v909_v29 = vld [vmem:[#allocation2 + $0x8] sm:$0xff] }
  0xe3   : > { %2226 = vmatprep.subr.bf16.mxu1 %v2390_v30 }
  0xe5   : > { %2199 = vmatpush3.bf16.msra.mxu0 %v2391_v31 }
  0xe6   : > { %2227 = vmatpush3.bf16.msra.mxu1 %v2392_v32 }
  0xe8   : > { %1651 = vmatmul.mubr.bf16.vlgmr.msra.gmra.mrb[8].mxu0 %v2025_v37 }
  0xe9   : > { %1700 = vmatmul.mubr.bf16.vlgmr.msra.gmra.mrb[8].mxu1 %v2027_v39  ;;  %1658 = vmatprep.mubr.bf16.mxu0 %v2034_v44 }
  0xea   : > { %1707 = vmatprep.mubr.bf16.mxu1 %v2036_v46  ;;  %v910_v46 = vld [vmem:[#allocation2 + $0x10] sm:$0xff] }
  0xf0   : > { %1659 = vmatmul.mubr.bf16.gmra.mrb[12].mxu0 %v2033_v47 }
  0xf1   : > { %1708 = vmatmul.mubr.bf16.gmra.mrb[12].mxu1 %v2035_v48 }
 0x19b   : > { %v2144_v49 = vpop.f32.mrb[0].mxu0 }
 0x19c   : > { %v2172_v50 = vpop.f32.mrb[0].mxu1  ;;  %v2145_v51 = vpop.f32.mrb[1].mxu0 }
 0x19d   : > { %v2146_v52 = vadd.f32 %v2145_v51, %v2144_v49  ;;  %v2173_v53 = vpop.f32.mrb[1].mxu1  ;;  %v2147_v54 = vpop.f32.mrb[2].mxu0  ;;  %v911_v49 = vld [vmem:[#allocation2 + $0x18] sm:$0xff] }
 0x19e   : > { %v2174_v55 = vadd.f32 %v2173_v53, %v2172_v50  ;;  %v2175_v56 = vpop.f32.mrb[2].mxu1  ;;  %v2148_v57 = vpop.f32.mrb[3].mxu0 }
 0x19f   : > { %v2149_v58 = vadd.f32 %v2148_v57, %v2147_v54  ;;  %v2176_v59 = vpop.f32.mrb[3].mxu1  ;;  %v2102_v57 = vld [vmem:[%s892_s13] ss:$0 sm:$0xff] (!%p2101_p5) }
 0x1a0   : > { %v1604_v60 = vadd.f32 %v2174_v55, %v2146_v52  ;;  %v2177_v61 = vadd.f32 %v2176_v59, %v2175_v56 }
 0x1a2   : > { %v1607_v62 = vadd.f32 %v2177_v61, %v2149_v58 }
 0x1a3   : > { %v2150_v63 = vpop.f32.mrb[4].mxu0 }
 0x1a4   : > { %v2178_v0 = vpop.f32.mrb[4].mxu1  ;;  %v2151_v1 = vpop.f32.mrb[5].mxu0 }
 0x1a5   : > { %v2152_v2 = vadd.f32 %v2151_v1, %v2150_v63  ;;  %v2179_v3 = vpop.f32.mrb[5].mxu1  ;;  %v2153_v4 = vpop.f32.mrb[6].mxu0 }
 0x1a6   : > { %v2180_v5 = vadd.f32 %v2179_v3, %v2178_v0  ;;  %v2181_v6 = vpop.f32.mrb[6].mxu1  ;;  %v2154_v7 = vpop.f32.mrb[7].mxu0 }
 0x1a7   : > { %v2155_v8 = vadd.f32 %v2154_v7, %v2153_v4  ;;  %v2182_v9 = vpop.f32.mrb[7].mxu1 }
 0x1a8   : > { %v1612_v10 = vadd.f32 %v2180_v5, %v2152_v2  ;;  %v2183_v11 = vadd.f32 %v2182_v9, %v2181_v6 }
 0x1aa   : > { %v1615_v12 = vadd.f32 %v2183_v11, %v2155_v8 }
 0x1bb   : > { %v2200_v13 = vpop.f32.mrb[8].mxu0 }
 0x1bc   : > { %v2228_v14 = vpop.f32.mrb[8].mxu1  ;;  %v2201_v15 = vpop.f32.mrb[9].mxu0 }
 0x1bd   : > { %v2229_v16 = vpop.f32.mrb[9].mxu1  ;;  %v2202_v17 = vadd.f32 %v2201_v15, %v2200_v13  ;;  %v2203_v19 = vpop.f32.mrb[10].mxu0 }
 0x1be   : > { %v2230_v18 = vadd.f32 %v2229_v16, %v2228_v14  ;;  %v2231_v20 = vpop.f32.mrb[10].mxu1  ;;  %v2204_v21 = vpop.f32.mrb[11].mxu0 }
 0x1bf   : > { %v2232_v22 = vpop.f32.mrb[11].mxu1  ;;  %v1653_v23 = vadd.f32 %v2202_v17, %v1604_v60  ;;  %v2205_v24 = vadd.f32 %v2204_v21, %v2203_v19 }
 0x1c0   : > { %v2233_v25 = vadd.f32 %v2232_v22, %v2231_v20 }
 0x1c1   : > { %v1702_v27 = vadd.f32 %v2230_v18, %v1653_v23  ;;  %v1656_v28 = vadd.f32 %v2205_v24, %v1607_v62 }
 0x1c3   : > { %v1716_v30 = vadd.f32 %v1702_v27, %v908_v26  ;;  %v1705_v31 = vadd.f32 %v2233_v25, %v1656_v28  ;;  %v2206_v32 = vpop.f32.mrb[12].mxu0  ;;  %v1779_v26 = vlaneseq (!%p2101_p5)  ;;  %v1771_v28 = vld [vmem:[%s895_s27] sm:$0x1] (!%p2101_p5) }
 0x1c4   : > { %v2234_v33 = vpop.f32.mrb[12].mxu1  ;;  %v2207_v34 = vpop.f32.mrb[13].mxu0 }
 0x1c5   : > { %v2235_v35 = vpop.f32.mrb[13].mxu1  ;;  %1720 = vst [vmem:[#allocation2] sm:$0xff] %v1716_v30  ;;  %v1717_v36 = vadd.f32 %v1705_v31, %v909_v29  ;;  %v2208_v37 = vadd.f32 %v2207_v34, %v2206_v32  ;;  %v2209_v39 = vpop.f32.mrb[14].mxu0  ;;  %v1780_v27 = vshrl.u32 (!%p2101_p5), %v1779_v26, 7  ;;  %v1775_v32 = vld [vmem:[%s898_s0] sm:$0x1] (!%p2101_p5) }
 0x1c6   : > { %v2236_v38 = vadd.f32 %v2235_v35, %v2234_v33  ;;  %v2237_v40 = vpop.f32.mrb[14].mxu1  ;;  %v2210_v41 = vpop.f32.mrb[15].mxu0 }
 0x1c7   : > { %v2238_v42 = vpop.f32.mrb[15].mxu1  ;;  %1721 = vst [vmem:[#allocation2 + $0x8] sm:$0xff] %v1717_v36  ;;  %v1661_v43 = vadd.f32 %v2208_v37, %v1612_v10  ;;  %v2211_v44 = vadd.f32 %v2210_v41, %v2209_v39  ;;  %v1781_v29 = vsub.s32 (!%p2101_p5), 0, %v1780_v27 }
 0x1c8   : > { %v2239_v45 = vadd.f32 %v2238_v42, %v2237_v40 }
 0x1c9   : > { %v1710_v47 = vadd.f32 %v2236_v38, %v1661_v43  ;;  %v1664_v48 = vadd.f32 %v2211_v44, %v1615_v12  ;;  %1727 = sbr.rel (%p2101_p5) target bundleno = 525 (0x20d), region = 112 }
 0x1cb   : > { %v1718_v50 = vadd.f32 %v1710_v47, %v910_v46  ;;  %v1713_v51 = vadd.f32 %v2239_v45, %v1664_v48 }
 0x1cc   : > { %v1728_v53 = vld [vmem:[#allocation2] sm:$0xff] (!%p2101_p5) }
 0x1cd   : > { %1722 = vst [vmem:[#allocation2 + $0x10] sm:$0xff] %v1718_v50  ;;  %v1719_v52 = vadd.f32 %v1713_v51, %v911_v49  ;;  %v1739_v58 = vadd.f32 (!%p2101_p5), %v2102_v57, %v1728_v53 }
 0x1ce   : > { %v1729_v54 = vld [vmem:[#allocation2 + $0x8] sm:$0xff] (!%p2101_p5) }
 0x1cf   : > { %1723 = vst [vmem:[#allocation2 + $0x18] sm:$0xff] %v1719_v52  ;;  %v1740_v59 = vadd.f32 (!%p2101_p5), %v2102_v57, %v1729_v54  ;;  %v1754_v63 = vmul.f32 (!%p2101_p5), %v1739_v58, %v1739_v58 }
 0x1d1   : > { %v1743_v62 = vadd.f32 %v1740_v59, %v1739_v58  ;;  %v1755_v0 = vmul.f32 %v1740_v59, %v1740_v59 }
 0x1d3   : > { %v1758_v4 = vadd.f32 %v1755_v0, %v1754_v63 }
 0x1d4   : > { %v1730_v55 = vld [vmem:[#allocation2 + $0x10] sm:$0xff] }
 0x1d5   : > { %v1741_v60 = vadd.f32 %v2102_v57, %v1730_v55 }
 0x1d6   : > { %v1731_v56 = vld [vmem:[#allocation2 + $0x18] sm:$0xff] }
 0x1d7   : > { %v1742_v61 = vadd.f32 %v2102_v57, %v1731_v56  ;;  %v1756_v1 = vmul.f32 %v1741_v60, %v1741_v60  ;;  %v1744_v2 = vadd.f32 %v1743_v62, %v1741_v60 }
 0x1d9   : > { %v1757_v3 = vmul.f32 %v1742_v61, %v1742_v61  ;;  %v1745_v5 = vadd.f32 %v1744_v2, %v1742_v61  ;;  %v1759_v6 = vadd.f32 %v1758_v4, %v1756_v1 }
 0x1db   : > { %v1746_v7 = vrot.slane %v1745_v5, 4  ;;  %v1760_v8 = vadd.f32 %v1759_v6, %v1757_v3 }
 0x1dd   : > { %v1747_v9 = vadd.f32 %v1746_v7, %v1745_v5  ;;  %v1761_v10 = vrot.slane %v1760_v8, 4 }
 0x1df   : > { %v1748_v11 = vrot.slane %v1747_v9, 2  ;;  %v1762_v12 = vadd.f32 %v1761_v10, %v1760_v8 }
 0x1e1   : > { %v1749_v13 = vadd.f32 %v1748_v11, %v1747_v9  ;;  %v1763_v14 = vrot.slane %v1762_v12, 2 }
 0x1e3   : > { %v1750_v15 = vrot.slane %v1749_v13, 1  ;;  %v1764_v16 = vadd.f32 %v1763_v14, %v1762_v12 }
 0x1e5   : > { %v1751_v17 = vadd.f32 %v1750_v15, %v1749_v13  ;;  %v1765_v18 = vrot.slane %v1764_v16, 1 }
 0x1e7   : > { %v1753_v19 = vmul.f32 0.03125, %v1751_v17  ;;  %v1766_v20 = vadd.f32 %v1765_v18, %v1764_v16 }
 0x1e9   : > { %v1767_v21 = vmul.f32 0.03125, %v1766_v20  ;;  %v1768_v22 = vmul.f32 %v1753_v19, %v1753_v19 }
 0x1eb   : > { %v1769_v23 = vsub.f32 %v1767_v21, %v1768_v22 }
 0x1ed   : > { %v1770_v24 = vmax.f32 %v1769_v23, 0.0 }
 0x1ef   : > { %v1772_v25 = vadd.f32 1e-05, %v1770_v24 }
 0x1f1   : > { %2393 = vrsqrt.f32 %v1772_v25 }
 0x1fb   : > { %v2394_v30 = vpop.eup %2393 }
 0x1fc   : > { %v1774_v31 = vmul.f32 %v2394_v30, %v1771_v28 }
 0x1fe   : > { %v1776_v33 = vmul.f32 %v1774_v31, %v1753_v19  ;;  %v1782_v34 = vrot.slane %v1774_v31, %v1781_v29 }
 0x200   : > { %v1777_v35 = vsub.f32 %v1775_v32, %v1776_v33  ;;  %v1784_v36 = vmul.f32 %v1782_v34, %v1739_v58  ;;  %v1785_v37 = vmul.f32 %v1782_v34, %v1740_v59  ;;  %v1786_v38 = vmul.f32 %v1782_v34, %v1741_v60 }
 0x201   : > { %v1787_v39 = vmul.f32 %v1782_v34, %v1742_v61 }
 0x202   : > { %v1792_v40 = vrot.slane %v1777_v35, %v1781_v29 }
 0x204   : > { %v1794_v41 = vadd.f32 %v1792_v40, %v1784_v36  ;;  %v1795_v42 = vadd.f32 %v1792_v40, %v1785_v37  ;;  %v1796_v43 = vadd.f32 %v1792_v40, %v1786_v38  ;;  %v1797_v44 = vadd.f32 %v1792_v40, %v1787_v39 }
 0x206   : > { %vm1798_vm0 = vcmp.ge.f32.partialorder %v1794_v41, 0.0  ;;  %vm1799_vm1 = vcmp.ge.f32.partialorder %v1795_v42, 0.0  ;;  %v1802_v45 = vmul.f32 0.2, %v1794_v41  ;;  %v1803_v46 = vmul.f32 0.2, %v1795_v42 }
 0x207   : > { %vm1800_vm2 = vcmp.ge.f32.partialorder %v1796_v43, 0.0  ;;  %vm1801_vm3 = vcmp.ge.f32.partialorder %v1797_v44, 0.0  ;;  %v1804_v47 = vmul.f32 0.2, %v1796_v43  ;;  %v1805_v48 = vmul.f32 0.2, %v1797_v44 }
 0x208   : > { %v1806_v49 = vsel %vm1798_vm0, %v1794_v41, %v1802_v45  ;;  %v1807_v50 = vsel %vm1799_vm1, %v1795_v42, %v1803_v46 }
 0x209   : > { %v2120_v51 = vpack.c.bf16 %v1807_v50, %v1806_v49  ;;  %v1808_v52 = vsel %vm1800_vm2, %v1796_v43, %v1804_v47  ;;  %v1809_v53 = vsel %vm1801_vm3, %v1797_v44, %v1805_v48 }
 0x20a   : > { %v2125_v54 = vpack.c.bf16 %v1809_v53, %v1808_v52 }
 0x20b   : > { %2121 = vst [vmem:[%s2931_s6] sm:$0xff] %v2120_v51  }
 0x20c   : > { %2127 = vst [vmem:[%s2931_s6 + $0x8] sm:$0xff] %v2125_v54  }
 0x20d PF: > { %1836 = sbr.rel (!%p2608_p12) target bundleno = 534 (0x216), region = 116  ;;  %s2108_s27 = sshll.u32 (%p2608_p12), %s2469_s25, 2 }
 0x20e   : > { %s1838_s13 = scalar_lea.vmem (%p2608_p12), %s3080_s5, %s2108_s27 }
 0x212   : > { %v1854_v55 = vld [vmem:[%s2931_s6] sm:$0xf] (%p2608_p12)  ;;  %v1856_v56 = vld [vmem:[%s2931_s6 + $0x4] sm:$0xf] (%p2608_p12) }
 0x213   : > { %v1858_v57 = vld [vmem:[%s2931_s6 + $0x8] sm:$0xf] (%p2608_p12)  ;;  %v1860_v58 = vld [vmem:[%s2931_s6 + $0xc] sm:$0xf] (%p2608_p12)  ;;  %1855 = vst [vmem:[%s1838_s13] sm:$0xf] (%p2608_p12), %v1854_v55 }
 0x214   : > { %1857 = vst [vmem:[%s1838_s13 + $0x8] sm:$0xf] %v1856_v56  ;;  %1859 = vst [vmem:[%s1838_s13 + $0x10] sm:$0xf] %v1858_v57 }
 0x215   : > { %1861 = vst [vmem:[%s1838_s13 + $0x18] sm:$0xf] %v1860_v58 }
 0x216 PF: > { %s15_s28 = sadd.s32 1, %s2481_s28   ;;  %s3094_s25 = sld [smem:[#allocation6_spill]] }
 0x217   : > { %p12_p6 = scmp.ge.s32.totalorder %s15_s28, 6   ;;  %s3095_s30 = sld [smem:[#allocation7_spill]] }
 0x218   : > { %s3096_s27 = sld [smem:[#allocation8_spill]]  ;;  %s3097_s18 = smov %s2445_s19 }
 0x219   : > { %s3098_s19 = smov %s2606_s17  ;;  %s3099_s20 = smov %s2453_s21 }
 0x21a   : > { %s3100_s21 = smov %s2603_s16  ;;  %s3101_s22 = smov %s2461_s23 }
 0x21b   : > { %s3102_s23 = smov %s2589_s11  ;;  %s3103_s24 = smov %s2473_s26 }
 0x21c   :  { %14 = sbr.rel (!%p12_p6) target bundleno = 9 (0x9), region = 205 }
 0x21d   : > { %s3104_s26 = smov %s3095_s30 }

// kernel: discriminator32_forward.8
= control target key start
LH: loop header
LB: loop body
LE: loop exit
PB: predicated region body
PF: predicated region fallthrough
CT: control target
= control target key end

     0   :  { %s2604_s0 = inlined_call_operand.vmem [shape: bf16[32,2304], index: 0, kind: input, shape index: {}]   ;;  %s2605_s1 = inlined_call_operand.vmem [shape: bf16[2304,512], index: 1, kind: input, shape index: {}]   ;;  %s2606_s2 = inlined_call_operand.vmem [shape: f32[1,512], index: 2, kind: input, shape index: {}]   ;;  %s2607_s3 = inlined_call_operand.vmem [shape: f32[1,512], index: 3, kind: input, shape index: {}]   ;;  %s2608_s4 = inlined_call_operand.vmem [shape: f32[1,512], index: 4, kind: input, shape index: {}]   ;;  %s2609_s5 = inlined_call_operand.vmem [shape: bf16[32,512], index: 5, kind: output, shape index: {}]  }
   0x1   :  { %2613 = sst [smem:[#allocation9_spill]] %s2604_s0 }
   0x2   :  { %2614 = sst [smem:[#allocation10_spill]] %s2605_s1 }
   0x3   :  { %s2145_s18 = smov 0   ;;  %s2147_s19 = smov 0  }
   0x4   :  { %s2149_s20 = smov 0   ;;  %s2151_s21 = smov 0  }
   0x5   :  { %s2153_s22 = smov 0   ;;  %s2155_s23 = smov 0  }
   0x6   :  { %s2157_s24 = smov 0   ;;  %s2159_s25 = smov 0  }
   0x7   :  { %s2161_s26 = smov 0   ;;  %s2163_s27 = smov 0  }
   0x8   :  { %s2165_s28 = smov 0  }
   0x9 LB: > { %2615 = sst [smem:[#allocation6_spill]] %s2108_s27  ;;  %s1668_s29 = sadd.s32 4294967295, %s2112_s28   ;;  %s2112_s28 = sphi %s2165_s28, %s15_s28   ;;  %s2108_s27 = sphi %s2163_s27, %s2625_s27   ;;  %s2104_s26 = sphi %s2161_s26, %s2633_s26   ;;  %s2100_s25 = sphi %s2159_s25, %s2623_s25   ;;  %s2096_s24 = sphi %s2157_s24, %s2632_s24   ;;  %s2092_s23 = sphi %s2155_s23, %s2631_s23   ;;  %s2088_s22 = sphi %s2153_s22, %s2630_s22   ;;  %s2084_s21 = sphi %s2151_s21, %s2629_s21   ;;  %s2080_s20 = sphi %s2149_s20, %s2628_s20   ;;  %s2076_s19 = sphi %s2147_s19, %s2627_s19   ;;  %s2072_s18 = sphi %s2145_s18, %s2626_s18  }
   0xa   : > { %s24_s30 = sadd.s32 1, %s2104_s26  ;;  %s27_s6 = sadd.s32 1, %s2108_s27 }
   0xb   : > { %p25_p0 = scmp.ge.s32.totalorder %s24_s30, 3  ;;  %s34_s7 = sadd.s32 1, %s2092_s23 }
   0xc   : > { %p41_p1 = scmp.ne.s32.totalorder %s2092_s23, %s2088_s22  ;;  %p42_p2 = scmp.eq.s32.totalorder %s2112_s28, 0 }
   0xd   : > { %s2635_s30 = smov (%p25_p0, %s24_s30), 0  ;;  %s2637_s6 = smov (!%p25_p0, %s27_s6), %s2108_s27 }
   0xe   : > { %2616 = sst [smem:[#allocation7_spill]] %s2635_s30  ;;  %s31_s8 = ssub.s32 %s2104_s26, %s2635_s30 }
   0xf   : > { %p29_p3 = scmp.ge.s32.totalorder %s2637_s6, 4  ;;  %p32_p4 = scmp.eq.s32.totalorder %s31_s8, 0 }
  0x10   : > { %p2212_p5 = por %p42_p2, %p41_p1  ;;  %s62_s10 = sadd.s32 1, %s2084_s21 }
  0x11   : > { %s2639_s6 = smov (%p29_p3, %s2637_s6), 0  ;;  %p69_p6 = scmp.ne.s32.totalorder %s2084_s21, %s2080_s20 }
  0x12   : > { %2618 = sst [smem:[#allocation8_spill]] %s2639_s6  ;;  %s58_s12 = ssub.s32 %s2108_s27, %s2639_s6 }
  0x13   : > { %s2220_s11 = scalar_select %p32_p4, %s2092_s23, %s34_s7  }
  0x14   : > { %s59_s13 = sor.u32 %s58_s12, %s31_s8  ;;  %p164_p7 = scmp.eq.s32.totalorder %s58_s12, 0 }
  0x15   : > { %p60_p8 = scmp.eq.s32.totalorder %s59_s13, 0  ;;  %p2226_p9 = por %p69_p6, %p42_p2 }
  0x16   : > { %s166_s15 = sadd.s32 1, %s2076_s19  ;;  %p176_p10 = scmp.ne.s32.totalorder %s2076_s19, %s2072_s18 }
  0x17   : > { %s2234_s16 = scalar_select %p60_p8, %s2084_s21, %s62_s10  }
  0x18   : > { %s2237_s17 = scalar_select %p164_p7, %s2076_s19, %s166_s15  }
  0x19   : > { %p177_p11 = scmp.eq.s32.totalorder %s1668_s29, 11  ;;  %p1671_p13 = scmp.ge.s32.totalorder %s2112_s28, 12 }
  0x1b   : > { %p2239_p12 = por %p177_p11, %p176_p10  ;;  %199 = sbr.rel (%p1671_p13) target bundleno = 122 (0x7a), region = 16 }
  0x22   : > { %202 = sbr.rel (!%p2212_p5) target bundleno = 49 (0x31), region = 20  ;;  %s204_s7 = sand.u32 (%p2212_p5), 1, %s2092_s23  }
  0x23   : > { %s1748_s8 = smul.u32 (%p2212_p5), 24, %s2104_s26  ;;  %s2621_s0 = sld [smem:[#allocation9_spill]] (%p2212_p5) }
  0x24   : > { %s1865_s12 = smul.u32 (%p2212_p5), 96, %s204_s7 }
  0x26   : > { %s206_s29 = scalar_lea.vmem (%p2212_p5), [#allocation3], %s1865_s12 }
  0x29   : > { %s209_s15 = scalar_lea.vmem %s2621_s0, %s1748_s8 }
  0x2a   : > { %v222_v0 = vld [vmem:[%s209_s15] sm:$0xff]  ;;  %v224_v1 = vld [vmem:[%s209_s15 + $0x8] sm:$0xff]  ;;  %v226_v2 = vld [vmem:[%s209_s15 + $0x10] sm:$0xff] }
  0x2b   : > { %223 = vst [vmem:[%s206_s29] sm:$0xff] %v222_v0  ;;  %225 = vst [vmem:[%s206_s29 + $0x8] sm:$0xff] %v224_v1  ;;  %v228_v3 = vld [vmem:[%s209_s15 + $0x48] sm:$0xff]  ;;  %v230_v4 = vld [vmem:[%s209_s15 + $0x50] sm:$0xff] }
  0x2c   : > { %227 = vst [vmem:[%s206_s29 + $0x10] sm:$0xff] %v226_v2  ;;  %v232_v5 = vld [vmem:[%s209_s15 + $0x58] sm:$0xff]  ;;  %229 = vst [vmem:[%s206_s29 + $0x18] sm:$0xff] %v228_v3  ;;  %v234_v6 = vld [vmem:[%s209_s15 + $0x90] sm:$0xff] }
  0x2d   : > { %231 = vst [vmem:[%s206_s29 + $0x20] sm:$0xff] %v230_v4  ;;  %233 = vst [vmem:[%s206_s29 + $0x28] sm:$0xff] %v232_v5  ;;  %v236_v7 = vld [vmem:[%s209_s15 + $0x98] sm:$0xff]  ;;  %v238_v8 = vld [vmem:[%s209_s15 + $0xa0] sm:$0xff] }
  0x2e   : > { %235 = vst [vmem:[%s206_s29 + $0x30] sm:$0xff] %v234_v6  ;;  %237 = vst [vmem:[%s206_s29 + $0x38] sm:$0xff] %v236_v7  ;;  %v240_v9 = vld [vmem:[%s209_s15 + $0xd8] sm:$0xff]  ;;  %v242_v10 = vld [vmem:[%s209_s15 + $0xe0] sm:$0xff] }
  0x2f   : > { %239 = vst [vmem:[%s206_s29 + $0x40] sm:$0xff] %v238_v8  ;;  %v244_v11 = vld [vmem:[%s209_s15 + $0xe8] sm:$0xff]  ;;  %241 = vst [vmem:[%s206_s29 + $0x48] sm:$0xff] %v240_v9 }
  0x30   : > { %243 = vst [vmem:[%s206_s29 + $0x50] sm:$0xff] %v242_v10  ;;  %245 = vst [vmem:[%s206_s29 + $0x58] sm:$0xff] %v244_v11 }
  0x31 PF: > { %251 = sbr.rel (!%p2226_p9) target bundleno = 122 (0x7a), region = 43  ;;  %s253_s9 = sand.u32 (%p2226_p9), 1, %s2084_s21  }
  0x32   : > { %s1749_s7 = smul.u32 (%p2226_p9), 384, %s2104_s26  ;;  %s2622_s1 = sld [smem:[#allocation10_spill]] (%p2226_p9) }
  0x33   : > { %s1866_s8 = smul.u32 (%p2226_p9), 384, %s253_s9 }
  0x34   : > { %s258_s12 = sadd.s32 (%p2226_p9), %s2108_s27, %s1749_s7 }
  0x35   : > { %s1674_s10 = sshll.u32 (%p2226_p9), %s258_s12, 2  ;;  %s2264_s14 = scalar_lea.vmem (%p2226_p9), [#allocation4], %s1866_s8 }
  0x38   : > { %s2259_s6 = scalar_lea.vmem %s2622_s1, %s1674_s10 }
  0x39   : > { %v276_v12 = vld [vmem:[%s2259_s6] sm:$0xf]  ;;  %v278_v13 = vld [vmem:[%s2259_s6 + $0x10] sm:$0xf] }
  0x3a   : > { %v280_v14 = vld [vmem:[%s2259_s6 + $0x20] sm:$0xf]  ;;  %277 = vst [vmem:[%s2264_s14] sm:$0xf] %v276_v12  ;;  %279 = vst [vmem:[%s2264_s14 + $0x4] sm:$0xf] %v278_v13 }
  0x3b   : > { %281 = vst [vmem:[%s2264_s14 + $0x8] sm:$0xf] %v280_v14  ;;  %v282_v15 = vld [vmem:[%s2259_s6 + $0x30] sm:$0xf]  ;;  %v284_v16 = vld [vmem:[%s2259_s6 + $0x40] sm:$0xf] }
  0x3c   : > { %v286_v17 = vld [vmem:[%s2259_s6 + $0x50] sm:$0xf]  ;;  %283 = vst [vmem:[%s2264_s14 + $0xc] sm:$0xf] %v282_v15  ;;  %285 = vst [vmem:[%s2264_s14 + $0x10] sm:$0xf] %v284_v16 }
  0x3d   : > { %287 = vst [vmem:[%s2264_s14 + $0x14] sm:$0xf] %v286_v17  ;;  %v288_v18 = vld [vmem:[%s2259_s6 + $0x60] sm:$0xf]  ;;  %v290_v19 = vld [vmem:[%s2259_s6 + $0x70] sm:$0xf] }
  0x3e   : > { %v292_v20 = vld [vmem:[%s2259_s6 + $0x80] sm:$0xf]  ;;  %289 = vst [vmem:[%s2264_s14 + $0x18] sm:$0xf] %v288_v18  ;;  %291 = vst [vmem:[%s2264_s14 + $0x1c] sm:$0xf] %v290_v19 }
  0x3f   : > { %293 = vst [vmem:[%s2264_s14 + $0x20] sm:$0xf] %v292_v20  ;;  %v294_v21 = vld [vmem:[%s2259_s6 + $0x90] sm:$0xf]  ;;  %v296_v22 = vld [vmem:[%s2259_s6 + $0xa0] sm:$0xf] }
  0x40   : > { %v298_v23 = vld [vmem:[%s2259_s6 + $0xb0] sm:$0xf]  ;;  %295 = vst [vmem:[%s2264_s14 + $0x24] sm:$0xf] %v294_v21  ;;  %297 = vst [vmem:[%s2264_s14 + $0x28] sm:$0xf] %v296_v22 }
  0x41   : > { %299 = vst [vmem:[%s2264_s14 + $0x2c] sm:$0xf] %v298_v23  ;;  %v300_v24 = vld [vmem:[%s2259_s6 + $0xc0] sm:$0xf]  ;;  %v302_v25 = vld [vmem:[%s2259_s6 + $0xd0] sm:$0xf] }
  0x42   : > { %v304_v26 = vld [vmem:[%s2259_s6 + $0xe0] sm:$0xf]  ;;  %301 = vst [vmem:[%s2264_s14 + $0x30] sm:$0xf] %v300_v24  ;;  %303 = vst [vmem:[%s2264_s14 + $0x34] sm:$0xf] %v302_v25 }
  0x43   : > { %305 = vst [vmem:[%s2264_s14 + $0x38] sm:$0xf] %v304_v26  ;;  %v306_v27 = vld [vmem:[%s2259_s6 + $0xf0] sm:$0xf]  ;;  %v308_v28 = vld [vmem:[%s2259_s6 + $0x100] sm:$0xf] }
  0x44   : > { %v310_v29 = vld [vmem:[%s2259_s6 + $0x110] sm:$0xf]  ;;  %307 = vst [vmem:[%s2264_s14 + $0x3c] sm:$0xf] %v306_v27  ;;  %309 = vst [vmem:[%s2264_s14 + $0x40] sm:$0xf] %v308_v28 }
  0x45   : > { %311 = vst [vmem:[%s2264_s14 + $0x44] sm:$0xf] %v310_v29  ;;  %v312_v30 = vld [vmem:[%s2259_s6 + $0x120] sm:$0xf]  ;;  %v314_v31 = vld [vmem:[%s2259_s6 + $0x130] sm:$0xf] }
  0x46   : > { %v316_v32 = vld [vmem:[%s2259_s6 + $0x140] sm:$0xf]  ;;  %313 = vst [vmem:[%s2264_s14 + $0x48] sm:$0xf] %v312_v30  ;;  %315 = vst [vmem:[%s2264_s14 + $0x4c] sm:$0xf] %v314_v31 }
  0x47   : > { %317 = vst [vmem:[%s2264_s14 + $0x50] sm:$0xf] %v316_v32  ;;  %v318_v33 = vld [vmem:[%s2259_s6 + $0x150] sm:$0xf]  ;;  %v320_v34 = vld [vmem:[%s2259_s6 + $0x160] sm:$0xf] }
  0x48   : > { %v322_v35 = vld [vmem:[%s2259_s6 + $0x170] sm:$0xf]  ;;  %319 = vst [vmem:[%s2264_s14 + $0x54] sm:$0xf] %v318_v33  ;;  %321 = vst [vmem:[%s2264_s14 + $0x58] sm:$0xf] %v320_v34 }
  0x49   : > { %323 = vst [vmem:[%s2264_s14 + $0x5c] sm:$0xf] %v322_v35  ;;  %v324_v36 = vld [vmem:[%s2259_s6 + $0x180] sm:$0xf]  ;;  %v326_v37 = vld [vmem:[%s2259_s6 + $0x190] sm:$0xf] }
  0x4a   : > { %v328_v38 = vld [vmem:[%s2259_s6 + $0x1a0] sm:$0xf]  ;;  %325 = vst [vmem:[%s2264_s14 + $0x60] sm:$0xf] %v324_v36  ;;  %327 = vst [vmem:[%s2264_s14 + $0x64] sm:$0xf] %v326_v37 }
  0x4b   : > { %329 = vst [vmem:[%s2264_s14 + $0x68] sm:$0xf] %v328_v38  ;;  %v330_v39 = vld [vmem:[%s2259_s6 + $0x1b0] sm:$0xf]  ;;  %v332_v40 = vld [vmem:[%s2259_s6 + $0x1c0] sm:$0xf] }
  0x4c   : > { %v334_v41 = vld [vmem:[%s2259_s6 + $0x1d0] sm:$0xf]  ;;  %331 = vst [vmem:[%s2264_s14 + $0x6c] sm:$0xf] %v330_v39  ;;  %333 = vst [vmem:[%s2264_s14 + $0x70] sm:$0xf] %v332_v40 }
  0x4d   : > { %335 = vst [vmem:[%s2264_s14 + $0x74] sm:$0xf] %v334_v41  ;;  %v336_v42 = vld [vmem:[%s2259_s6 + $0x1e0] sm:$0xf]  ;;  %v338_v43 = vld [vmem:[%s2259_s6 + $0x1f0] sm:$0xf] }
  0x4e   : > { %v340_v44 = vld [vmem:[%s2259_s6 + $0x200] sm:$0xf]  ;;  %337 = vst [vmem:[%s2264_s14 + $0x78] sm:$0xf] %v336_v42  ;;  %339 = vst [vmem:[%s2264_s14 + $0x7c] sm:$0xf] %v338_v43 }
  0x4f   : > { %341 = vst [vmem:[%s2264_s14 + $0x80] sm:$0xf] %v340_v44  ;;  %v342_v45 = vld [vmem:[%s2259_s6 + $0x210] sm:$0xf]  ;;  %v344_v46 = vld [vmem:[%s2259_s6 + $0x220] sm:$0xf] }
  0x50   : > { %v346_v47 = vld [vmem:[%s2259_s6 + $0x230] sm:$0xf]  ;;  %343 = vst [vmem:[%s2264_s14 + $0x84] sm:$0xf] %v342_v45  ;;  %345 = vst [vmem:[%s2264_s14 + $0x88] sm:$0xf] %v344_v46 }
  0x51   : > { %347 = vst [vmem:[%s2264_s14 + $0x8c] sm:$0xf] %v346_v47  ;;  %v348_v48 = vld [vmem:[%s2259_s6 + $0x240] sm:$0xf]  ;;  %v350_v49 = vld [vmem:[%s2259_s6 + $0x250] sm:$0xf] }
  0x52   : > { %v352_v50 = vld [vmem:[%s2259_s6 + $0x260] sm:$0xf]  ;;  %349 = vst [vmem:[%s2264_s14 + $0x90] sm:$0xf] %v348_v48  ;;  %351 = vst [vmem:[%s2264_s14 + $0x94] sm:$0xf] %v350_v49 }
  0x53   : > { %353 = vst [vmem:[%s2264_s14 + $0x98] sm:$0xf] %v352_v50  ;;  %v354_v51 = vld [vmem:[%s2259_s6 + $0x270] sm:$0xf]  ;;  %v356_v52 = vld [vmem:[%s2259_s6 + $0x280] sm:$0xf] }
  0x54   : > { %v358_v53 = vld [vmem:[%s2259_s6 + $0x290] sm:$0xf]  ;;  %355 = vst [vmem:[%s2264_s14 + $0x9c] sm:$0xf] %v354_v51  ;;  %357 = vst [vmem:[%s2264_s14 + $0xa0] sm:$0xf] %v356_v52 }
  0x55   : > { %359 = vst [vmem:[%s2264_s14 + $0xa4] sm:$0xf] %v358_v53  ;;  %v360_v54 = vld [vmem:[%s2259_s6 + $0x2a0] sm:$0xf]  ;;  %v362_v55 = vld [vmem:[%s2259_s6 + $0x2b0] sm:$0xf] }
  0x56   : > { %v364_v56 = vld [vmem:[%s2259_s6 + $0x2c0] sm:$0xf]  ;;  %361 = vst [vmem:[%s2264_s14 + $0xa8] sm:$0xf] %v360_v54  ;;  %363 = vst [vmem:[%s2264_s14 + $0xac] sm:$0xf] %v362_v55 }
  0x57   : > { %365 = vst [vmem:[%s2264_s14 + $0xb0] sm:$0xf] %v364_v56  ;;  %v366_v57 = vld [vmem:[%s2259_s6 + $0x2d0] sm:$0xf]  ;;  %v368_v58 = vld [vmem:[%s2259_s6 + $0x2e0] sm:$0xf] }
  0x58   : > { %v370_v59 = vld [vmem:[%s2259_s6 + $0x2f0] sm:$0xf]  ;;  %367 = vst [vmem:[%s2264_s14 + $0xb4] sm:$0xf] %v366_v57  ;;  %369 = vst [vmem:[%s2264_s14 + $0xb8] sm:$0xf] %v368_v58 }
  0x59   : > { %371 = vst [vmem:[%s2264_s14 + $0xbc] sm:$0xf] %v370_v59  ;;  %v372_v60 = vld [vmem:[%s2259_s6 + $0x300] sm:$0xf]  ;;  %v374_v61 = vld [vmem:[%s2259_s6 + $0x310] sm:$0xf] }
  0x5a   : > { %v376_v62 = vld [vmem:[%s2259_s6 + $0x320] sm:$0xf]  ;;  %373 = vst [vmem:[%s2264_s14 + $0xc0] sm:$0xf] %v372_v60  ;;  %375 = vst [vmem:[%s2264_s14 + $0xc4] sm:$0xf] %v374_v61 }
  0x5b   : > { %377 = vst [vmem:[%s2264_s14 + $0xc8] sm:$0xf] %v376_v62  ;;  %v378_v63 = vld [vmem:[%s2259_s6 + $0x330] sm:$0xf]  ;;  %v380_v0 = vld [vmem:[%s2259_s6 + $0x340] sm:$0xf] }
  0x5c   : > { %v382_v1 = vld [vmem:[%s2259_s6 + $0x350] sm:$0xf]  ;;  %379 = vst [vmem:[%s2264_s14 + $0xcc] sm:$0xf] %v378_v63  ;;  %381 = vst [vmem:[%s2264_s14 + $0xd0] sm:$0xf] %v380_v0 }
  0x5d   : > { %383 = vst [vmem:[%s2264_s14 + $0xd4] sm:$0xf] %v382_v1  ;;  %v384_v2 = vld [vmem:[%s2259_s6 + $0x360] sm:$0xf]  ;;  %v386_v3 = vld [vmem:[%s2259_s6 + $0x370] sm:$0xf] }
  0x5e   : > { %v388_v4 = vld [vmem:[%s2259_s6 + $0x380] sm:$0xf]  ;;  %385 = vst [vmem:[%s2264_s14 + $0xd8] sm:$0xf] %v384_v2  ;;  %387 = vst [vmem:[%s2264_s14 + $0xdc] sm:$0xf] %v386_v3 }
  0x5f   : > { %389 = vst [vmem:[%s2264_s14 + $0xe0] sm:$0xf] %v388_v4  ;;  %v390_v5 = vld [vmem:[%s2259_s6 + $0x390] sm:$0xf]  ;;  %v392_v6 = vld [vmem:[%s2259_s6 + $0x3a0] sm:$0xf] }
  0x60   : > { %v394_v7 = vld [vmem:[%s2259_s6 + $0x3b0] sm:$0xf]  ;;  %391 = vst [vmem:[%s2264_s14 + $0xe4] sm:$0xf] %v390_v5  ;;  %393 = vst [vmem:[%s2264_s14 + $0xe8] sm:$0xf] %v392_v6 }
  0x61   : > { %395 = vst [vmem:[%s2264_s14 + $0xec] sm:$0xf] %v394_v7  ;;  %v396_v8 = vld [vmem:[%s2259_s6 + $0x3c0] sm:$0xf]  ;;  %v398_v9 = vld [vmem:[%s2259_s6 + $0x3d0] sm:$0xf] }
  0x62   : > { %v400_v10 = vld [vmem:[%s2259_s6 + $0x3e0] sm:$0xf]  ;;  %397 = vst [vmem:[%s2264_s14 + $0xf0] sm:$0xf] %v396_v8  ;;  %399 = vst [vmem:[%s2264_s14 + $0xf4] sm:$0xf] %v398_v9 }
  0x63   : > { %401 = vst [vmem:[%s2264_s14 + $0xf8] sm:$0xf] %v400_v10  ;;  %v402_v11 = vld [vmem:[%s2259_s6 + $0x3f0] sm:$0xf]  ;;  %v404_v12 = vld [vmem:[%s2259_s6 + $0x400] sm:$0xf] }
  0x64   : > { %v406_v13 = vld [vmem:[%s2259_s6 + $0x410] sm:$0xf]  ;;  %403 = vst [vmem:[%s2264_s14 + $0xfc] sm:$0xf] %v402_v11  ;;  %405 = vst [vmem:[%s2264_s14 + $0x100] sm:$0xf] %v404_v12 }
  0x65   : > { %407 = vst [vmem:[%s2264_s14 + $0x104] sm:$0xf] %v406_v13  ;;  %v408_v14 = vld [vmem:[%s2259_s6 + $0x420] sm:$0xf]  ;;  %v410_v15 = vld [vmem:[%s2259_s6 + $0x430] sm:$0xf] }
  0x66   : > { %v412_v16 = vld [vmem:[%s2259_s6 + $0x440] sm:$0xf]  ;;  %409 = vst [vmem:[%s2264_s14 + $0x108] sm:$0xf] %v408_v14  ;;  %411 = vst [vmem:[%s2264_s14 + $0x10c] sm:$0xf] %v410_v15 }
  0x67   : > { %413 = vst [vmem:[%s2264_s14 + $0x110] sm:$0xf] %v412_v16  ;;  %v414_v17 = vld [vmem:[%s2259_s6 + $0x450] sm:$0xf]  ;;  %v416_v18 = vld [vmem:[%s2259_s6 + $0x460] sm:$0xf] }
  0x68   : > { %v418_v19 = vld [vmem:[%s2259_s6 + $0x470] sm:$0xf]  ;;  %415 = vst [vmem:[%s2264_s14 + $0x114] sm:$0xf] %v414_v17  ;;  %417 = vst [vmem:[%s2264_s14 + $0x118] sm:$0xf] %v416_v18 }
  0x69   : > { %419 = vst [vmem:[%s2264_s14 + $0x11c] sm:$0xf] %v418_v19  ;;  %v420_v20 = vld [vmem:[%s2259_s6 + $0x480] sm:$0xf]  ;;  %v422_v21 = vld [vmem:[%s2259_s6 + $0x490] sm:$0xf] }
  0x6a   : > { %v424_v22 = vld [vmem:[%s2259_s6 + $0x4a0] sm:$0xf]  ;;  %421 = vst [vmem:[%s2264_s14 + $0x120] sm:$0xf] %v420_v20  ;;  %423 = vst [vmem:[%s2264_s14 + $0x124] sm:$0xf] %v422_v21 }
  0x6b   : > { %425 = vst [vmem:[%s2264_s14 + $0x128] sm:$0xf] %v424_v22  ;;  %v426_v23 = vld [vmem:[%s2259_s6 + $0x4b0] sm:$0xf]  ;;  %v428_v24 = vld [vmem:[%s2259_s6 + $0x4c0] sm:$0xf] }
  0x6c   : > { %v430_v25 = vld [vmem:[%s2259_s6 + $0x4d0] sm:$0xf]  ;;  %427 = vst [vmem:[%s2264_s14 + $0x12c] sm:$0xf] %v426_v23  ;;  %429 = vst [vmem:[%s2264_s14 + $0x130] sm:$0xf] %v428_v24 }
  0x6d   : > { %431 = vst [vmem:[%s2264_s14 + $0x134] sm:$0xf] %v430_v25  ;;  %v432_v26 = vld [vmem:[%s2259_s6 + $0x4e0] sm:$0xf]  ;;  %v434_v27 = vld [vmem:[%s2259_s6 + $0x4f0] sm:$0xf] }
  0x6e   : > { %v436_v28 = vld [vmem:[%s2259_s6 + $0x500] sm:$0xf]  ;;  %433 = vst [vmem:[%s2264_s14 + $0x138] sm:$0xf] %v432_v26  ;;  %435 = vst [vmem:[%s2264_s14 + $0x13c] sm:$0xf] %v434_v27 }
  0x6f   : > { %437 = vst [vmem:[%s2264_s14 + $0x140] sm:$0xf] %v436_v28  ;;  %v438_v29 = vld [vmem:[%s2259_s6 + $0x510] sm:$0xf]  ;;  %v440_v30 = vld [vmem:[%s2259_s6 + $0x520] sm:$0xf] }
  0x70   : > { %v442_v31 = vld [vmem:[%s2259_s6 + $0x530] sm:$0xf]  ;;  %439 = vst [vmem:[%s2264_s14 + $0x144] sm:$0xf] %v438_v29  ;;  %441 = vst [vmem:[%s2264_s14 + $0x148] sm:$0xf] %v440_v30 }
  0x71   : > { %443 = vst [vmem:[%s2264_s14 + $0x14c] sm:$0xf] %v442_v31  ;;  %v444_v32 = vld [vmem:[%s2259_s6 + $0x540] sm:$0xf]  ;;  %v446_v33 = vld [vmem:[%s2259_s6 + $0x550] sm:$0xf] }
  0x72   : > { %v448_v34 = vld [vmem:[%s2259_s6 + $0x560] sm:$0xf]  ;;  %445 = vst [vmem:[%s2264_s14 + $0x150] sm:$0xf] %v444_v32  ;;  %447 = vst [vmem:[%s2264_s14 + $0x154] sm:$0xf] %v446_v33 }
  0x73   : > { %449 = vst [vmem:[%s2264_s14 + $0x158] sm:$0xf] %v448_v34  ;;  %v450_v35 = vld [vmem:[%s2259_s6 + $0x570] sm:$0xf]  ;;  %v452_v36 = vld [vmem:[%s2259_s6 + $0x580] sm:$0xf] }
  0x74   : > { %v454_v37 = vld [vmem:[%s2259_s6 + $0x590] sm:$0xf]  ;;  %451 = vst [vmem:[%s2264_s14 + $0x15c] sm:$0xf] %v450_v35  ;;  %453 = vst [vmem:[%s2264_s14 + $0x160] sm:$0xf] %v452_v36 }
  0x75   : > { %455 = vst [vmem:[%s2264_s14 + $0x164] sm:$0xf] %v454_v37  ;;  %v456_v38 = vld [vmem:[%s2259_s6 + $0x5a0] sm:$0xf]  ;;  %v458_v39 = vld [vmem:[%s2259_s6 + $0x5b0] sm:$0xf] }
  0x76   : > { %v460_v40 = vld [vmem:[%s2259_s6 + $0x5c0] sm:$0xf]  ;;  %457 = vst [vmem:[%s2264_s14 + $0x168] sm:$0xf] %v456_v38  ;;  %459 = vst [vmem:[%s2264_s14 + $0x16c] sm:$0xf] %v458_v39 }
  0x77   : > { %461 = vst [vmem:[%s2264_s14 + $0x170] sm:$0xf] %v460_v40  ;;  %v462_v41 = vld [vmem:[%s2259_s6 + $0x5d0] sm:$0xf]  ;;  %v464_v42 = vld [vmem:[%s2259_s6 + $0x5e0] sm:$0xf] }
  0x78   : > { %v466_v43 = vld [vmem:[%s2259_s6 + $0x5f0] sm:$0xf]  ;;  %463 = vst [vmem:[%s2264_s14 + $0x174] sm:$0xf] %v462_v41  ;;  %465 = vst [vmem:[%s2264_s14 + $0x178] sm:$0xf] %v464_v42 }
  0x79   : > { %467 = vst [vmem:[%s2264_s14 + $0x17c] sm:$0xf] %v466_v43 }
  0x7a PF: > { %p1675_p0 = scmp.ge.s32.totalorder %s2112_s28, 1  ;;  %p699_p1 = scmp.lt.s32.totalorder %s2112_s28, 13 }
  0x7c   : > { %p700_p2 = pnand %p1675_p0, %p699_p1 }
  0x7d   : > { %s706_s0 = sand.u32 (!%p700_p2), 1, %s2088_s22   ;;  %s713_s15 = sand.u32 (!%p700_p2), 1, %s2080_s20  }
  0x7e   : > { %703 = sbr.rel (%p700_p2) target bundleno = 503 (0x1f7), region = 96  ;;  %s749_s6 = sand.u32 (!%p700_p2), 1, %s2072_s18  }
  0x7f   : > { %s1867_s29 = smul.u32 (!%p700_p2), 96, %s706_s0  ;;  %s1676_s7 = sshll.u32 (!%p700_p2), %s749_s6, 4 }
  0x80   : > { %s1868_s9 = smul.u32 (!%p700_p2), 384, %s713_s15  ;;  %p754_p3 = scmp.lt.s32.totalorder (!%p700_p2), %s2100_s25, 3 }
  0x81   : > { %s2476_s0 = scalar_lea.vmem (!%p700_p2), [#allocation3], %s1867_s29  ;;  %s2480_s6 = scalar_lea.vmem (!%p700_p2), [#allocation5], %s1676_s7 }
  0x82   : > { %s2478_s15 = scalar_lea.vmem (!%p700_p2), [#allocation4], %s1868_s9  ;;  %p1677_p4 = scmp.ne.s32.totalorder (!%p700_p2), %s2096_s24, 0 }
  0x85   : > { %s2462_s8 = scalar_select %p754_p3, %s2100_s25, 3 }
  0x86   : > { %767 = sbr.rel (%p1677_p4) target bundleno = 141 (0x8d), region = 108  ;;  %v2114_v44 = vmov (!%p1677_p4), 0.0  }
  0x87   : > { %s756_s13 = scalar_lea.vmem %s2606_s2, %s2462_s8  ;;  %s759_s27 = scalar_lea.vmem %s2607_s3, %s2462_s8  ;;  %768 = vst [vmem:[#allocation2] sm:$0xff] (!%p1677_p4), %v2114_v44  ;;  %769 = vst [vmem:[#allocation2 + $0x8] sm:$0xff] (!%p1677_p4), %v2114_v44 }
  0x88   : > { %s762_s18 = scalar_lea.vmem %s2608_s4, %s2462_s8  ;;  %770 = vst [vmem:[#allocation2 + $0x10] sm:$0xff] (!%p1677_p4), %v2114_v44  ;;  %771 = vst [vmem:[#allocation2 + $0x18] sm:$0xff] (!%p1677_p4), %v2114_v44 }
  0x8d PF: > { %v1958_v45 = vld [vmem:[%s2478_s15 + $0x40] sm:$0xff]   ;;  %v1962_v49 = vld [vmem:[%s2478_s15 + $0x48] sm:$0xff]   ;;  %v1966_v53 = vld [vmem:[%s2478_s15 + $0x50] sm:$0xff]   ;;  %p1738_p5 = scmp.ne.s32.totalorder %s2096_s24, 2 }
  0x8e   : > { %v1959_v46 = vld [vmem:[%s2478_s15 + $0xc0] sm:$0xff]   ;;  %1765 = vmatprep.subr.bf16.mxu0 %v1958_v45  ;;  %v1963_v50 = vld [vmem:[%s2478_s15 + $0xc8] sm:$0xff]   ;;  %v1967_v54 = vld [vmem:[%s2478_s15 + $0xd0] sm:$0xff]  }
  0x8f   : > { %v1960_v47 = vld [vmem:[%s2478_s15] sm:$0xff]   ;;  %1793 = vmatprep.subr.bf16.mxu1 %v1959_v46  ;;  %v1964_v51 = vld [vmem:[%s2478_s15 + $0x8] sm:$0xff]   ;;  %v1968_v55 = vld [vmem:[%s2478_s15 + $0x10] sm:$0xff]  }
  0x90   : > { %v1961_v48 = vld [vmem:[%s2478_s15 + $0x80] sm:$0xff]   ;;  %1766 = vmatpush3.bf16.msra.mxu0 %v1960_v47  ;;  %v1965_v52 = vld [vmem:[%s2478_s15 + $0x88] sm:$0xff]   ;;  %v1969_v56 = vld [vmem:[%s2478_s15 + $0x90] sm:$0xff]  }
  0x91   : > { %1794 = vmatpush3.bf16.msra.mxu1 %v1961_v48  ;;  %1767 = vmatprep.subr.bf16.mxu0 %v1962_v49  ;;  %v1970_v57 = vld [vmem:[%s2478_s15 + $0x58] sm:$0xff]   ;;  %v1974_v61 = vld [vmem:[%s2478_s15 + $0x60] sm:$0xff]   ;;  %v1978_v1 = vld [vmem:[%s2478_s15 + $0x68] sm:$0xff]  }
  0x92   : > { %1795 = vmatprep.subr.bf16.mxu1 %v1963_v50  ;;  %v1971_v58 = vld [vmem:[%s2478_s15 + $0xd8] sm:$0xff]   ;;  %v1975_v62 = vld [vmem:[%s2478_s15 + $0xe0] sm:$0xff]   ;;  %v1979_v2 = vld [vmem:[%s2478_s15 + $0xe8] sm:$0xff]  }
  0x93   : > { %v1972_v59 = vld [vmem:[%s2478_s15 + $0x18] sm:$0xff]   ;;  %v1976_v63 = vld [vmem:[%s2478_s15 + $0x20] sm:$0xff]   ;;  %v1980_v3 = vld [vmem:[%s2478_s15 + $0x28] sm:$0xff]  }
  0x94   : > { %1768 = vmatpush3.bf16.msra.mxu0 %v1964_v51  ;;  %v1973_v60 = vld [vmem:[%s2478_s15 + $0x98] sm:$0xff]   ;;  %v1977_v0 = vld [vmem:[%s2478_s15 + $0xa0] sm:$0xff]   ;;  %v1981_v4 = vld [vmem:[%s2478_s15 + $0xa8] sm:$0xff]  }
  0x95   : > { %1796 = vmatpush3.bf16.msra.mxu1 %v1965_v52  ;;  %1769 = vmatprep.subr.bf16.mxu0 %v1966_v53  ;;  %v1982_v5 = vld [vmem:[%s2478_s15 + $0x70] sm:$0xff]   ;;  %v1986_v9 = vld [vmem:[%s2478_s15 + $0x78] sm:$0xff]   ;;  %v1993_v15 = vld [vmem:[%s2476_s0 + $0x8] ss:$24 sps:$4 sm:$0xff]  }
  0x96   : > { %1797 = vmatprep.subr.bf16.mxu1 %v1967_v54  ;;  %v1983_v6 = vld [vmem:[%s2478_s15 + $0xf0] sm:$0xff]   ;;  %v1987_v10 = vld [vmem:[%s2478_s15 + $0xf8] sm:$0xff]   ;;  %v1995_v16 = vld [vmem:[%s2476_s0 + $0xc] ss:$24 sps:$4 sm:$0xff]  }
  0x97   : > { %v1984_v7 = vld [vmem:[%s2478_s15 + $0x30] sm:$0xff]   ;;  %v1988_v11 = vld [vmem:[%s2478_s15 + $0x38] sm:$0xff]   ;;  %v1996_v17 = vld [vmem:[%s2478_s15 + $0x140] sm:$0xff]   ;;  %1313 = vmatprep.mubr.bf16.mxu1 %v1995_v16 }
  0x98   : > { %1770 = vmatpush3.bf16.msra.mxu0 %v1968_v55  ;;  %v1985_v8 = vld [vmem:[%s2478_s15 + $0xb0] sm:$0xff]   ;;  %v1989_v12 = vld [vmem:[%s2478_s15 + $0xb8] sm:$0xff]   ;;  %v1997_v18 = vld [vmem:[%s2478_s15 + $0x100] sm:$0xff]  }
  0x99   : > { %1798 = vmatpush3.bf16.msra.mxu1 %v1969_v56  ;;  %1771 = vmatprep.subr.bf16.mxu0 %v1970_v57  ;;  %v1990_v13 = vld [vmem:[%s2476_s0] ss:$24 sps:$4 sm:$0xff]   ;;  %v1992_v14 = vld [vmem:[%s2476_s0 + $0x4] ss:$24 sps:$4 sm:$0xff]   ;;  %v1998_v19 = vld [vmem:[%s2478_s15 + $0x148] sm:$0xff]  }
  0x9a   : > { %1799 = vmatprep.subr.bf16.mxu1 %v1971_v58  ;;  %1264 = vmatprep.mubr.bf16.mxu0 %v1992_v14  ;;  %v1999_v20 = vld [vmem:[%s2478_s15 + $0x108] sm:$0xff]   ;;  %v2000_v21 = vld [vmem:[%s2478_s15 + $0x150] sm:$0xff]   ;;  %v2002_v23 = vld [vmem:[%s2478_s15 + $0x158] sm:$0xff]  }
  0x9b   : > { %v2001_v22 = vld [vmem:[%s2478_s15 + $0x110] sm:$0xff]   ;;  %v2003_v24 = vld [vmem:[%s2478_s15 + $0x118] sm:$0xff]   ;;  %v2004_v27 = vld [vmem:[%s2478_s15 + $0x160] sm:$0xff]  }
  0x9c   : > { %1772 = vmatpush3.bf16.msra.mxu0 %v1972_v59  ;;  %v2006_v25 = vld [vmem:[%s2476_s0 + $0x34] ss:$24 sps:$4 sm:$0xff]   ;;  %v2011_v28 = vld [vmem:[%s2476_s0 + $0x30] ss:$24 sps:$4 sm:$0xff]   ;;  %v2005_v30 = vld [vmem:[%s2478_s15 + $0x120] sm:$0xff]  }
  0x9d   : > { %1800 = vmatpush3.bf16.msra.mxu1 %v1973_v60  ;;  %1773 = vmatprep.subr.bf16.mxu0 %v1974_v61  ;;  %v2008_v26 = vld [vmem:[%s2476_s0 + $0x3c] ss:$24 sps:$4 sm:$0xff]   ;;  %v2012_v29 = vld [vmem:[%s2476_s0 + $0x38] ss:$24 sps:$4 sm:$0xff]   ;;  %v2010_v31 = vld [vmem:[%s2478_s15 + $0x168] sm:$0xff]  }
  0x9e   : > { %1801 = vmatprep.subr.bf16.mxu1 %v1975_v62  ;;  %v2013_v32 = vld [vmem:[%s2478_s15 + $0x128] sm:$0xff]   ;;  %v2014_v34 = vld [vmem:[%s2478_s15 + $0x170] sm:$0xff]   ;;  %v2023_v35 = vld [vmem:[%s2476_s0 + $0x44] ss:$24 sps:$4 sm:$0xff]  }
  0x9f   : > { %v2020_v33 = vld [vmem:[%s2476_s0 + $0x14] ss:$24 sps:$4 sm:$0xff]   ;;  %v2016_v37 = vld [vmem:[%s2478_s15 + $0x178] sm:$0xff]   ;;  %v2018_v39 = vld [vmem:[%s2476_s0 + $0x10] ss:$24 sps:$4 sm:$0xff]  }
  0xa0   : > { %1774 = vmatpush3.bf16.msra.mxu0 %v1976_v63  ;;  %v2015_v36 = vld [vmem:[%s2478_s15 + $0x130] sm:$0xff]   ;;  %v2017_v38 = vld [vmem:[%s2478_s15 + $0x138] sm:$0xff]  }
  0xa1   : > { %1802 = vmatpush3.bf16.msra.mxu1 %v1977_v0  ;;  %1775 = vmatprep.subr.bf16.mxu0 %v1978_v1  ;;  %v2021_v40 = vld [vmem:[%s2476_s0 + $0x40] ss:$24 sps:$4 sm:$0xff]   ;;  %v774_v16 = vld [vmem:[#allocation2 + $0x10] sm:$0xff] }
  0xa2   : > { %1803 = vmatprep.subr.bf16.mxu1 %v1979_v2 }
  0xa4   : > { %1776 = vmatpush3.bf16.msra.mxu0 %v1980_v3 }
  0xa5   : > { %1804 = vmatpush3.bf16.msra.mxu1 %v1981_v4  ;;  %1777 = vmatprep.subr.bf16.mxu0 %v1982_v5 }
  0xa6   : > { %1805 = vmatprep.subr.bf16.mxu1 %v1983_v6 }
  0xa8   : > { %1778 = vmatpush3.bf16.msra.mxu0 %v1984_v7 }
  0xa9   : > { %1806 = vmatpush3.bf16.msra.mxu1 %v1985_v8  ;;  %1779 = vmatprep.subr.bf16.mxu0 %v1986_v9 }
  0xaa   : > { %1807 = vmatprep.subr.bf16.mxu1 %v1987_v10 }
  0xac   : > { %1780 = vmatpush3.bf16.msra.mxu0 %v1988_v11  ;;  %v772_v11 = vld [vmem:[#allocation2] sm:$0xff] }
  0xad   : > { %1808 = vmatpush3.bf16.msra.mxu1 %v1989_v12  ;;  %1821 = vmatprep.subr.bf16.mxu0 %v1996_v17 }
  0xae   : > { %1849 = vmatprep.subr.bf16.mxu1 %v1996_v17 }
  0xaf   : > { %1265 = vmatmul.mubr.bf16.vlgmr.msra.gmra.mrb[0].mxu0 %v1990_v13 }
  0xb0   : > { %1314 = vmatmul.mubr.bf16.vlgmr.msra.gmra.mrb[0].mxu1 %v1993_v15  ;;  %1822 = vmatpush3.bf16.msra.mxu0 %v1997_v18 }
  0xb1   : > { %1857 = vmatpush3.bf16.msra.mxu1 %v1997_v18  ;;  %1823 = vmatprep.subr.bf16.mxu0 %v1998_v19 }
  0xb2   : > { %1850 = vmatprep.subr.bf16.mxu1 %v1998_v19  ;;  %1272 = vmatprep.mubr.bf16.mxu0 %v2006_v25 }
  0xb3   : > { %1321 = vmatprep.mubr.bf16.mxu1 %v2008_v26 }
  0xb4   : > { %1824 = vmatpush3.bf16.msra.mxu0 %v1999_v20 }
  0xb5   : > { %1858 = vmatpush3.bf16.msra.mxu1 %v1999_v20  ;;  %1825 = vmatprep.subr.bf16.mxu0 %v2000_v21  ;;  %v773_v20 = vld [vmem:[#allocation2 + $0x8] sm:$0xff] }
  0xb6   : > { %1851 = vmatprep.subr.bf16.mxu1 %v2000_v21 }
  0xb7   : > { %1273 = vmatmul.mubr.bf16.gmra.mrb[4].mxu0 %v2011_v28 }
  0xb8   : > { %1826 = vmatpush3.bf16.msra.mxu0 %v2001_v22  ;;  %1322 = vmatmul.mubr.bf16.gmra.mrb[4].mxu1 %v2012_v29 }
  0xb9   : > { %1859 = vmatpush3.bf16.msra.mxu1 %v2001_v22  ;;  %1827 = vmatprep.subr.bf16.mxu0 %v2002_v23 }
  0xba   : > { %1852 = vmatprep.subr.bf16.mxu1 %v2002_v23  ;;  %1362 = vmatprep.mubr.bf16.mxu0 %v2020_v33  ;;  %v1739_v33 = vld [vmem:[%s756_s13] ss:$0 sm:$0xff] (!%p1738_p5) }
  0xbb   : > { %1370 = vmatprep.mubr.bf16.mxu1 %v2023_v35 }
  0xbc   : > { %1828 = vmatpush3.bf16.msra.mxu0 %v2003_v24 }
  0xbd   : > { %1860 = vmatpush3.bf16.msra.mxu1 %v2003_v24  ;;  %1829 = vmatprep.subr.bf16.mxu0 %v2004_v27  ;;  %v775_v24 = vld [vmem:[#allocation2 + $0x18] sm:$0xff] }
  0xbe   : > { %1853 = vmatprep.subr.bf16.mxu1 %v2004_v27 }
  0xc0   : > { %1830 = vmatpush3.bf16.msra.mxu0 %v2005_v30 }
  0xc1   : > { %1861 = vmatpush3.bf16.msra.mxu1 %v2005_v30  ;;  %1831 = vmatprep.subr.bf16.mxu0 %v2010_v31 }
  0xc2   : > { %1854 = vmatprep.subr.bf16.mxu1 %v2010_v31 }
  0xc4   : > { %1832 = vmatpush3.bf16.msra.mxu0 %v2013_v32 }
  0xc5   : > { %1862 = vmatpush3.bf16.msra.mxu1 %v2013_v32  ;;  %1833 = vmatprep.subr.bf16.mxu0 %v2014_v34 }
  0xc6   : > { %1855 = vmatprep.subr.bf16.mxu1 %v2014_v34 }
  0xc8   : > { %1834 = vmatpush3.bf16.msra.mxu0 %v2015_v36 }
  0xc9   : > { %1863 = vmatpush3.bf16.msra.mxu1 %v2015_v36  ;;  %1835 = vmatprep.subr.bf16.mxu0 %v2016_v37 }
  0xca   : > { %1856 = vmatprep.subr.bf16.mxu1 %v2016_v37 }
  0xcc   : > { %1836 = vmatpush3.bf16.msra.mxu0 %v2017_v38 }
  0xcd   : > { %1864 = vmatpush3.bf16.msra.mxu1 %v2017_v38 }
  0xcf   : > { %1363 = vmatmul.mubr.bf16.vlgmr.msra.gmra.mrb[8].mxu0 %v2018_v39 }
  0xd0   : > { %1371 = vmatmul.mubr.bf16.vlgmr.msra.gmra.mrb[8].mxu1 %v2021_v40 }
 0x182   : > { %v1781_v41 = vpop.f32.mrb[0].mxu0 }
 0x183   : > { %v1809_v42 = vpop.f32.mrb[0].mxu1  ;;  %v1782_v43 = vpop.f32.mrb[1].mxu0 }
 0x184   : > { %v1783_v44 = vadd.f32 %v1782_v43, %v1781_v41  ;;  %v1810_v45 = vpop.f32.mrb[1].mxu1  ;;  %v1784_v46 = vpop.f32.mrb[2].mxu0 }
 0x185   : > { %v1811_v47 = vadd.f32 %v1810_v45, %v1809_v42  ;;  %v1812_v48 = vpop.f32.mrb[2].mxu1  ;;  %v1785_v49 = vpop.f32.mrb[3].mxu0 }
 0x186   : > { %v1786_v50 = vadd.f32 %v1785_v49, %v1784_v46  ;;  %v1813_v51 = vpop.f32.mrb[3].mxu1 }
 0x187   : > { %v1316_v52 = vadd.f32 %v1811_v47, %v1783_v44  ;;  %v1814_v53 = vadd.f32 %v1813_v51, %v1812_v48 }
 0x189   : > { %v1319_v54 = vadd.f32 %v1814_v53, %v1786_v50 }
 0x18a   : > { %v1787_v55 = vpop.f32.mrb[4].mxu0 }
 0x18b   : > { %v1815_v56 = vpop.f32.mrb[4].mxu1  ;;  %v1788_v57 = vpop.f32.mrb[5].mxu0 }
 0x18c   : > { %v1789_v58 = vadd.f32 %v1788_v57, %v1787_v55  ;;  %v1816_v59 = vpop.f32.mrb[5].mxu1  ;;  %v1790_v60 = vpop.f32.mrb[6].mxu0 }
 0x18d   : > { %v1817_v61 = vadd.f32 %v1816_v59, %v1815_v56  ;;  %v1818_v62 = vpop.f32.mrb[6].mxu1  ;;  %v1791_v63 = vpop.f32.mrb[7].mxu0 }
 0x18e   : > { %v1792_v0 = vadd.f32 %v1791_v63, %v1790_v60  ;;  %v1819_v1 = vpop.f32.mrb[7].mxu1 }
 0x18f   : > { %v1324_v2 = vadd.f32 %v1817_v61, %v1789_v58  ;;  %v1820_v3 = vadd.f32 %v1819_v1, %v1818_v62 }
 0x191   : > { %v1327_v4 = vadd.f32 %v1820_v3, %v1792_v0 }
 0x1a2   : > { %v1837_v5 = vpop.f32.mrb[8].mxu0 }
 0x1a3   : > { %v1843_v6 = vpop.f32.mrb[8].mxu1  ;;  %v1838_v7 = vpop.f32.mrb[9].mxu0 }
 0x1a4   : > { %v1839_v8 = vadd.f32 %v1838_v7, %v1837_v5  ;;  %v1844_v9 = vpop.f32.mrb[9].mxu1  ;;  %v1840_v10 = vpop.f32.mrb[10].mxu0 }
 0x1a5   : > { %v1845_v12 = vadd.f32 %v1844_v9, %v1843_v6  ;;  %v1846_v13 = vpop.f32.mrb[10].mxu1  ;;  %v1841_v14 = vpop.f32.mrb[11].mxu0 }
 0x1a6   : > { %v1365_v15 = vadd.f32 %v1839_v8, %v1316_v52  ;;  %v1842_v17 = vadd.f32 %v1841_v14, %v1840_v10  ;;  %v1847_v18 = vpop.f32.mrb[11].mxu1  ;;  %v1438_v8 = vld [vmem:[%s762_s18] sm:$0x1] (!%p1738_p5) }
 0x1a7   : > { %v1373_v19 = vadd.f32 %v1845_v12, %v1324_v2  ;;  %v1848_v21 = vadd.f32 %v1847_v18, %v1846_v13  ;;  %1390 = sbr.rel (%p1738_p5) target bundleno = 494 (0x1ee), region = 112  ;;  %v1442_v2 = vlaneseq (!%p1738_p5) }
 0x1a8   : > { %v1379_v22 = vadd.f32 %v1365_v15, %v772_v11  ;;  %v1368_v23 = vadd.f32 %v1842_v17, %v1319_v54 }
 0x1a9   : > { %v1381_v25 = vadd.f32 %v1373_v19, %v774_v16  ;;  %v1376_v26 = vadd.f32 %v1848_v21, %v1327_v4  ;;  %v1443_v3 = vshrl.u32 (!%p1738_p5), %v1442_v2, 7  ;;  %v1434_v4 = vld [vmem:[%s759_s27] sm:$0x1] (!%p1738_p5) }
 0x1aa   : > { %1383 = vst [vmem:[#allocation2] sm:$0xff] %v1379_v22  ;;  %v1380_v27 = vadd.f32 %v1368_v23, %v773_v20 }
 0x1ab   : > { %1385 = vst [vmem:[#allocation2 + $0x10] sm:$0xff] %v1381_v25  ;;  %v1382_v28 = vadd.f32 %v1376_v26, %v775_v24  ;;  %v1444_v5 = vsub.s32 (!%p1738_p5), 0, %v1443_v3 }
 0x1ac   : > { %1384 = vst [vmem:[#allocation2 + $0x8] sm:$0xff] %v1380_v27 }
 0x1ad   : > { %1386 = vst [vmem:[#allocation2 + $0x18] sm:$0xff] %v1382_v28 }
 0x1b1   : > { %v1391_v29 = vld [vmem:[#allocation2] sm:$0xff] }
 0x1b2   : > { %v1393_v31 = vld [vmem:[#allocation2 + $0x10] sm:$0xff]  ;;  %v1402_v34 = vadd.f32 %v1739_v33, %v1391_v29 }
 0x1b3   : > { %v1392_v30 = vld [vmem:[#allocation2 + $0x8] sm:$0xff]  ;;  %v1404_v36 = vadd.f32 %v1739_v33, %v1393_v31 }
 0x1b4   : > { %v1394_v32 = vld [vmem:[#allocation2 + $0x18] sm:$0xff]  ;;  %v1403_v35 = vadd.f32 %v1739_v33, %v1392_v30  ;;  %v1417_v39 = vmul.f32 %v1402_v34, %v1402_v34 }
 0x1b5   : > { %v1405_v37 = vadd.f32 %v1739_v33, %v1394_v32  ;;  %v1419_v41 = vmul.f32 %v1404_v36, %v1404_v36 }
 0x1b6   : > { %v1406_v38 = vadd.f32 %v1403_v35, %v1402_v34  ;;  %v1418_v40 = vmul.f32 %v1403_v35, %v1403_v35 }
 0x1b7   : > { %v1420_v43 = vmul.f32 %v1405_v37, %v1405_v37 }
 0x1b8   : > { %v1407_v42 = vadd.f32 %v1406_v38, %v1404_v36  ;;  %v1421_v44 = vadd.f32 %v1418_v40, %v1417_v39 }
 0x1ba   : > { %v1408_v45 = vadd.f32 %v1407_v42, %v1405_v37  ;;  %v1422_v46 = vadd.f32 %v1421_v44, %v1419_v41 }
 0x1bc   : > { %v1409_v47 = vrot.slane %v1408_v45, 4  ;;  %v1423_v48 = vadd.f32 %v1422_v46, %v1420_v43 }
 0x1be   : > { %v1410_v49 = vadd.f32 %v1409_v47, %v1408_v45  ;;  %v1424_v50 = vrot.slane %v1423_v48, 4 }
 0x1c0   : > { %v1411_v51 = vrot.slane %v1410_v49, 2  ;;  %v1425_v52 = vadd.f32 %v1424_v50, %v1423_v48 }
 0x1c2   : > { %v1412_v53 = vadd.f32 %v1411_v51, %v1410_v49  ;;  %v1426_v54 = vrot.slane %v1425_v52, 2 }
 0x1c4   : > { %v1413_v55 = vrot.slane %v1412_v53, 1  ;;  %v1427_v56 = vadd.f32 %v1426_v54, %v1425_v52 }
 0x1c6   : > { %v1414_v57 = vadd.f32 %v1413_v55, %v1412_v53  ;;  %v1428_v58 = vrot.slane %v1427_v56, 1 }
 0x1c8   : > { %v1416_v59 = vmul.f32 0.03125, %v1414_v57  ;;  %v1429_v60 = vadd.f32 %v1428_v58, %v1427_v56 }
 0x1ca   : > { %v1430_v61 = vmul.f32 0.03125, %v1429_v60  ;;  %v1431_v62 = vmul.f32 %v1416_v59, %v1416_v59 }
 0x1cc   : > { %v1432_v63 = vsub.f32 %v1430_v61, %v1431_v62 }
 0x1ce   : > { %v1433_v0 = vmax.f32 %v1432_v63, 0.0 }
 0x1d0   : > { %v1435_v1 = vadd.f32 1e-05, %v1433_v0 }
 0x1d2   : > { %2024 = vrsqrt.f32 %v1435_v1 }
 0x1dc   : > { %v2025_v6 = vpop.eup %2024 }
 0x1dd   : > { %v1437_v7 = vmul.f32 %v2025_v6, %v1434_v4 }
 0x1df   : > { %v1439_v9 = vmul.f32 %v1437_v7, %v1416_v59  ;;  %v1445_v10 = vrot.slane %v1437_v7, %v1444_v5 }
 0x1e1   : > { %v1440_v11 = vsub.f32 %v1438_v8, %v1439_v9  ;;  %v1447_v12 = vmul.f32 %v1445_v10, %v1402_v34  ;;  %v1448_v13 = vmul.f32 %v1445_v10, %v1403_v35  ;;  %v1449_v14 = vmul.f32 %v1445_v10, %v1404_v36 }
 0x1e2   : > { %v1450_v15 = vmul.f32 %v1445_v10, %v1405_v37 }
 0x1e3   : > { %v1455_v16 = vrot.slane %v1440_v11, %v1444_v5 }
 0x1e5   : > { %v1457_v17 = vadd.f32 %v1455_v16, %v1447_v12  ;;  %v1458_v18 = vadd.f32 %v1455_v16, %v1448_v13  ;;  %v1459_v19 = vadd.f32 %v1455_v16, %v1449_v14  ;;  %v1460_v20 = vadd.f32 %v1455_v16, %v1450_v15 }
 0x1e7   : > { %vm1461_vm0 = vcmp.ge.f32.partialorder %v1457_v17, 0.0  ;;  %vm1462_vm1 = vcmp.ge.f32.partialorder %v1458_v18, 0.0  ;;  %v1465_v21 = vmul.f32 0.2, %v1457_v17  ;;  %v1466_v22 = vmul.f32 0.2, %v1458_v18 }
 0x1e8   : > { %vm1463_vm2 = vcmp.ge.f32.partialorder %v1459_v19, 0.0  ;;  %vm1464_vm3 = vcmp.ge.f32.partialorder %v1460_v20, 0.0  ;;  %v1467_v23 = vmul.f32 0.2, %v1459_v19  ;;  %v1468_v24 = vmul.f32 0.2, %v1460_v20 }
 0x1e9   : > { %v1469_v25 = vsel %vm1461_vm0, %v1457_v17, %v1465_v21  ;;  %v1470_v26 = vsel %vm1462_vm1, %v1458_v18, %v1466_v22 }
 0x1ea   : > { %v1757_v27 = vpack.c.bf16 %v1470_v26, %v1469_v25  ;;  %v1471_v28 = vsel %vm1463_vm2, %v1459_v19, %v1467_v23  ;;  %v1472_v29 = vsel %vm1464_vm3, %v1460_v20, %v1468_v24 }
 0x1eb   : > { %v1762_v30 = vpack.c.bf16 %v1472_v29, %v1471_v28 }
 0x1ec   : > { %1758 = vst [vmem:[%s2480_s6] sm:$0xff] %v1757_v27  }
 0x1ed   : > { %1764 = vst [vmem:[%s2480_s6 + $0x8] sm:$0xff] %v1762_v30  }
 0x1ee PF: > { %1499 = sbr.rel (!%p2239_p12) target bundleno = 503 (0x1f7), region = 116  ;;  %s1745_s27 = sshll.u32 (%p2239_p12), %s2100_s25, 2 }
 0x1ef   : > { %s1501_s13 = scalar_lea.vmem (%p2239_p12), %s2609_s5, %s1745_s27 }
 0x1f3   : > { %v1517_v31 = vld [vmem:[%s2480_s6] sm:$0xf] (%p2239_p12)  ;;  %v1519_v32 = vld [vmem:[%s2480_s6 + $0x4] sm:$0xf] (%p2239_p12) }
 0x1f4   : > { %v1521_v33 = vld [vmem:[%s2480_s6 + $0x8] sm:$0xf] (%p2239_p12)  ;;  %v1523_v34 = vld [vmem:[%s2480_s6 + $0xc] sm:$0xf] (%p2239_p12)  ;;  %1518 = vst [vmem:[%s1501_s13] sm:$0xf] (%p2239_p12), %v1517_v31 }
 0x1f5   : > { %1520 = vst [vmem:[%s1501_s13 + $0x10] sm:$0xf] %v1519_v32  ;;  %1522 = vst [vmem:[%s1501_s13 + $0x20] sm:$0xf] %v1521_v33 }
 0x1f6   : > { %1524 = vst [vmem:[%s1501_s13 + $0x30] sm:$0xf] %v1523_v34 }
 0x1f7 PF: > { %s15_s28 = sadd.s32 1, %s2112_s28   ;;  %s2623_s25 = sld [smem:[#allocation6_spill]] }
 0x1f8   : > { %p12_p6 = scmp.ge.s32.totalorder %s15_s28, 14   ;;  %s2624_s30 = sld [smem:[#allocation7_spill]] }
 0x1f9   : > { %s2625_s27 = sld [smem:[#allocation8_spill]]  ;;  %s2626_s18 = smov %s2076_s19 }
 0x1fa   : > { %s2627_s19 = smov %s2237_s17  ;;  %s2628_s20 = smov %s2084_s21 }
 0x1fb   : > { %s2629_s21 = smov %s2234_s16  ;;  %s2630_s22 = smov %s2092_s23 }
 0x1fc   : > { %s2631_s23 = smov %s2220_s11  ;;  %s2632_s24 = smov %s2104_s26 }
 0x1fd   :  { %14 = sbr.rel (!%p12_p6) target bundleno = 9 (0x9), region = 205 }
 0x1fe   : > { %s2633_s26 = smov %s2624_s30 }

// kernel: discriminator32_forward.9
= control target key start
LH: loop header
LB: loop body
LE: loop exit
PB: predicated region body
PF: predicated region fallthrough
CT: control target
= control target key end

     0   :  { %v56_v1 = vlaneseq  ;;  %v1114_v51 = vmov 1983009808   ;;  %vm968_vm0 = vcmask 1041408   ;;  %vm1106_vm1 = vcmask 1024   ;;  %s1875_s2 = inlined_call_operand.<no memory space> [shape: f32[1,1], index: 2, kind: input, shape index: {}]   ;;  %s1876_s1 = inlined_call_operand.vmem [shape: f32[1,8192], index: 1, kind: input, shape index: {}]   ;;  %s1877_s0 = inlined_call_operand.vmem [shape: bf16[2,8192], index: 0, kind: input, shape index: {}]   ;;  %s1878_s3 = inlined_call_operand.vmem [shape: f32[2,1], index: 3, kind: output, shape index: {}]  }
   0x1   :  { %v8_v0 = vstv %s1875_s2  ;;  %v1143_v3 = vld [vmem:[%s1876_s1 + $0x20] sm:$0xff]  ;;  %v1160_v8 = vld [vmem:[%s1876_s1 + $0x28] sm:$0xff]  ;;  %v1185_v17 = vld [vmem:[%s1876_s1 + $0x30] sm:$0xff]  ;;  %v315_v52 = vunpack.c.l.s4 %v1114_v51 }
   0x2   :  { %9 = vst [vmem:[#allocation2] sm:$0x1] %v8_v0  ;;  %v1138_v2 = vshrl.u32 %v56_v1, 7  ;;  %v1206_v26 = vld [vmem:[%s1876_s1 + $0x38] sm:$0xff]  ;;  %v1243_v43 = vld [vmem:[%s1877_s0 + $0x20] sm:$0xff]  ;;  %v1248_v44 = vld [vmem:[%s1877_s0 + $0x28] sm:$0xff] }
   0x3   :  { %v1261_v49 = vld [vmem:[%s1877_s0 + $0x30] sm:$0xff]  ;;  %v1266_v50 = vld [vmem:[%s1877_s0 + $0x38] sm:$0xff]  ;;  %v1271_v53 = vld [vmem:[%s1876_s1] sm:$0xff]  ;;  %v316_v1 = vunpack.c.0.s8 %v315_v52 }
   0x4   :  { %v1146_v4 = vsub.s32 0, %v1138_v2  ;;  %v1149_v5 = vsub.s32 1, %v1138_v2  ;;  %v1152_v6 = vsub.s32 2, %v1138_v2  ;;  %v1155_v7 = vsub.s32 3, %v1138_v2  ;;  %v1283_v61 = vld [vmem:[%s1876_s1 + $0x8] sm:$0xff]  ;;  %v1301_v62 = vld [vmem:[%s1876_s1 + $0x10] sm:$0xff] }
   0x5   :  { %v1163_v9 = vsub.s32 4, %v1138_v2  ;;  %v1166_v10 = vsub.s32 5, %v1138_v2  ;;  %v1169_v11 = vsub.s32 6, %v1138_v2  ;;  %v1172_v12 = vsub.s32 7, %v1138_v2 }
   0x6   :  { %v187_v13 = vrot.slane %v1143_v3, %v1146_v4  ;;  %v191_v14 = vrot.slane %v1143_v3, %v1149_v5  ;;  %v195_v15 = vrot.slane %v1143_v3, %v1152_v6  ;;  %v199_v16 = vrot.slane %v1143_v3, %v1155_v7 }
   0x7   :  { %v203_v18 = vrot.slane %v1143_v3, %v1163_v9  ;;  %v207_v19 = vrot.slane %v1143_v3, %v1166_v10  ;;  %v211_v20 = vrot.slane %v1143_v3, %v1169_v11  ;;  %v215_v21 = vrot.slane %v1143_v3, %v1172_v12 }
   0x8   :  { %v219_v22 = vrot.slane %v1160_v8, %v1146_v4  ;;  %v223_v23 = vrot.slane %v1160_v8, %v1149_v5  ;;  %v227_v24 = vrot.slane %v1160_v8, %v1152_v6  ;;  %v231_v25 = vrot.slane %v1160_v8, %v1155_v7 }
   0x9   :  { %v235_v27 = vrot.slane %v1160_v8, %v1163_v9  ;;  %v239_v28 = vrot.slane %v1160_v8, %v1166_v10  ;;  %v243_v29 = vrot.slane %v1160_v8, %v1169_v11  ;;  %v247_v30 = vrot.slane %v1160_v8, %v1172_v12 }
   0xa   :  { %v251_v31 = vrot.slane %v1185_v17, %v1146_v4  ;;  %v255_v32 = vrot.slane %v1185_v17, %v1149_v5  ;;  %v259_v33 = vrot.slane %v1185_v17, %v1152_v6  ;;  %v263_v34 = vrot.slane %v1185_v17, %v1155_v7 }
   0xb   :  { %v267_v35 = vrot.slane %v1185_v17, %v1163_v9  ;;  %v271_v36 = vrot.slane %v1185_v17, %v1166_v10  ;;  %v279_v38 = vrot.slane %v1185_v17, %v1172_v12  ;;  %v59_v63 = vrot.slane %v1271_v53, %v1146_v4 }
   0xc   :  { %v63_v0 = vrot.slane %v1271_v53, %v1149_v5  ;;  %v67_v51 = vrot.slane %v1271_v53, %v1152_v6  ;;  %v71_v60 = vrot.slane %v1271_v53, %v1155_v7  ;;  %v75_v59 = vrot.slane %v1271_v53, %v1163_v9 }
   0xd   :  { %v79_v58 = vrot.slane %v1271_v53, %v1166_v10  ;;  %v83_v52 = vrot.slane %v1271_v53, %v1169_v11  ;;  %v87_v57 = vrot.slane %v1271_v53, %v1172_v12  ;;  %v91_v56 = vrot.slane %v1283_v61, %v1146_v4 }
   0xe   :  { %v95_v55 = vrot.slane %v1283_v61, %v1149_v5  ;;  %v99_v54 = vrot.slane %v1283_v61, %v1152_v6  ;;  %v103_v47 = vrot.slane %v1283_v61, %v1155_v7  ;;  %v107_v48 = vrot.slane %v1283_v61, %v1163_v9 }
   0xf   :  { %v111_v45 = vrot.slane %v1283_v61, %v1166_v10  ;;  %v115_v53 = vrot.slane %v1283_v61, %v1169_v11  ;;  %v119_v46 = vrot.slane %v1283_v61, %v1172_v12  ;;  %v1324_v41 = vsub.s32 %v316_v1, %v1138_v2 }
  0x10   :  { %v448_v42 = vcombine.low %v187_v13, %v191_v14  ;;  %v123_v39 = vrot.slane %v1301_v62, %v1146_v4  ;;  %v127_v40 = vrot.slane %v1301_v62, %v1149_v5  ;;  %v131_v37 = vrot.slane %v1301_v62, %v1152_v6 }
  0x11   :  { %v449_v2 = vcombine.low %v195_v15, %v199_v16  ;;  %v135_v61 = vrot.slane %v1301_v62, %v1155_v7  ;;  %v465_v14 = vcombine.low %v203_v18, %v207_v19  ;;  %v466_v1 = vcombine.low %v211_v20, %v215_v21 }
  0x12   :  { %v456_v13 = vrot.slane %v448_v42, %v1324_v41  ;;  %v1359_v15 = vcombine.low %v59_v63, %v63_v0  ;;  %v482_v42 = vcombine.low %v219_v22, %v223_v23  ;;  %v483_v18 = vcombine.low %v227_v24, %v231_v25 }
  0x13   :  { %v463_v16 = vrot.slane %v449_v2, %v1324_v41  ;;  %v1374_v3 = vcombine.low %v67_v51, %v71_v60  ;;  %v473_v19 = vrot.slane %v465_v14, %v1324_v41  ;;  %v480_v20 = vrot.slane %v466_v1, %v1324_v41 }
  0x14   :  { %v499_v21 = vcombine.low %v235_v27, %v239_v28  ;;  %v490_v23 = vrot.slane %v482_v42, %v1324_v41  ;;  %v497_v63 = vrot.slane %v483_v18, %v1324_v41  ;;  %v500_v24 = vcombine.low %v243_v29, %v247_v30 }
  0x15   :  { %v464_v22 = vcombine.low %v456_v13, %v463_v16  ;;  %v481_v25 = vcombine.low %v473_v19, %v480_v20  ;;  %v516_v27 = vcombine.low %v251_v31, %v255_v32  ;;  %v517_v28 = vcombine.low %v259_v33, %v263_v34 }
  0x16   :  { %v507_v60 = vrot.slane %v499_v21, %v1324_v41  ;;  %v498_v0 = vcombine.low %v490_v23, %v497_v63  ;;  %v514_v8 = vrot.slane %v500_v24, %v1324_v41  ;;  %v533_v29 = vcombine.low %v267_v35, %v271_v36 }
  0x17   :  { %v1880_v30 = vrot.slane %v1185_v17, %v1169_v11  ;;  %v524_v32 = vrot.slane %v516_v27, %v1324_v41  ;;  %v531_v33 = vrot.slane %v517_v28, %v1324_v41  ;;  %v1881_v34 = vrot.slane %v1206_v26, %v1149_v5 }
  0x18   :  { %v1882_v51 = vrot.slane %v1206_v26, %v1146_v4  ;;  %v1883_v35 = vrot.slane %v1206_v26, %v1155_v7  ;;  %v1884_v36 = vrot.slane %v1206_v26, %v1152_v6  ;;  %v515_v17 = vcombine.low %v507_v60, %v514_v8 }
  0x19   :  { %v534_v31 = vcombine.low %v1880_v30, %v279_v38  ;;  %v541_v38 = vrot.slane %v533_v29, %v1324_v41  ;;  %v1885_v1 = vrot.slane %v1206_v26, %v1166_v10  ;;  %v1886_v16 = vrot.slane %v1206_v26, %v1163_v9 }
  0x1a   :  { %v550_v2 = vcombine.low %v1882_v51, %v1881_v34  ;;  %v551_v13 = vcombine.low %v1884_v36, %v1883_v35  ;;  %v532_v18 = vcombine.low %v524_v32, %v531_v33  ;;  %v1887_v21 = vrot.slane %v1206_v26, %v1172_v12  ;;  %v17_v36 = vld [vmem:[%s1877_s0 + $0x8] sm:$0xff] }
  0x1b   :  { %v548_v14 = vrot.slane %v534_v31, %v1324_v41  ;;  %v567_v42 = vcombine.low %v1886_v16, %v1885_v1  ;;  %v1888_v23 = vrot.slane %v1206_v26, %v1169_v11  ;;  %v329_v24 = vcombine.low %v75_v59, %v79_v58  ;;  %v1507_v1 = vld [vmem:[%s1877_s0 + $0x10] sm:$0xff] }
  0x1c   :  { %v558_v19 = vrot.slane %v550_v2, %v1324_v41  ;;  %v565_v20 = vrot.slane %v551_v13, %v1324_v41  ;;  %v330_v60 = vcombine.low %v83_v52, %v87_v57  ;;  %v346_v8 = vcombine.low %v91_v56, %v95_v55 }
  0x1d   :  { %v568_v63 = vcombine.low %v1888_v23, %v1887_v21  ;;  %v549_v27 = vcombine.low %v541_v38, %v548_v14  ;;  %v575_v28 = vrot.slane %v567_v42, %v1324_v41  ;;  %v347_v29 = vcombine.low %v99_v54, %v103_v47 }
  0x1e   :  { %v566_v30 = vcombine.low %v558_v19, %v565_v20  ;;  %v320_v32 = vrot.slane %v1359_v15, %v1324_v41  ;;  %v327_v33 = vrot.slane %v1374_v3, %v1324_v41  ;;  %v363_v34 = vcombine.low %v107_v48, %v111_v45 }
  0x1f   :  { %v582_v31 = vrot.slane %v568_v63, %v1324_v41  ;;  %v364_v51 = vcombine.low %v115_v53, %v119_v46  ;;  %v1889_v58 = vunpack.c.l.bf16 %v1243_v43  ;;  %v1890_v59 = vunpack.c.h.bf16 %v1243_v43  ;;  %v16_v43 = vld [vmem:[%s1877_s0] sm:$0xff] }
  0x20   :  { %v1891_v47 = vunpack.c.l.bf16 %v1248_v44  ;;  %v1892_v55 = vunpack.c.h.bf16 %v1248_v44  ;;  %v1893_v15 = vunpack.c.l.bf16 %v1261_v49  ;;  %v1894_v45 = vunpack.c.h.bf16 %v1261_v49 }
  0x21   :  { %v583_v26 = vcombine.low %v575_v28, %v582_v31  ;;  %v608_v57 = vmul.f32 %v464_v22, %v1889_v58  ;;  %v609_v52 = vmul.f32 %v481_v25, %v1890_v59  ;;  %v1895_v48 = vunpack.c.l.bf16 %v1266_v50 }
  0x22   :  { %v610_v54 = vmul.f32 %v498_v0, %v1891_v47  ;;  %v611_v56 = vmul.f32 %v515_v17, %v1892_v55  ;;  %v1464_v2 = vmul.f32 %v532_v18, %v1893_v15  ;;  %v1468_v46 = vmul.f32 %v549_v27, %v1894_v45 }
  0x23   :  { %v1472_v53 = vmul.f32 %v566_v30, %v1895_v48  ;;  %v337_v3 = vrot.slane %v329_v24, %v1324_v41  ;;  %v344_v44 = vrot.slane %v330_v60, %v1324_v41  ;;  %v1896_v22 = vunpack.c.h.bf16 %v1266_v50 }
  0x24   :  { %v354_v49 = vrot.slane %v346_v8, %v1324_v41  ;;  %v361_v0 = vrot.slane %v347_v29, %v1324_v41  ;;  %v380_v35 = vcombine.low %v123_v39, %v127_v40  ;;  %v381_v50 = vcombine.low %v131_v37, %v135_v61  ;;  %v1512_v37 = vld [vmem:[%s1876_s1 + $0x18] sm:$0xff] }
  0x25   :  { %v1481_v25 = vmul.f32 %v583_v26, %v1896_v22  ;;  %v371_v13 = vrot.slane %v363_v34, %v1324_v41  ;;  %v378_v17 = vrot.slane %v364_v51, %v1324_v41  ;;  %v24_v38 = vunpack.c.l.bf16 %v16_v43 }
  0x26   :  { %v25_v14 = vunpack.c.h.bf16 %v16_v43  ;;  %v139_v39 = vrot.slane %v1301_v62, %v1163_v9  ;;  %v328_v40 = vcombine.low %v320_v32, %v327_v33  ;;  %v143_v61 = vrot.slane %v1301_v62, %v1166_v10 }
  0x27   :  { %v147_v16 = vrot.slane %v1301_v62, %v1169_v11  ;;  %v151_v42 = vrot.slane %v1301_v62, %v1172_v12  ;;  %v345_v18 = vcombine.low %v337_v3, %v344_v44  ;;  %v26_v19 = vunpack.c.l.bf16 %v17_v36 }
  0x28   :  { %v362_v20 = vcombine.low %v354_v49, %v361_v0  ;;  %v388_v21 = vrot.slane %v380_v35, %v1324_v41  ;;  %v395_v23 = vrot.slane %v381_v50, %v1324_v41  ;;  %v27_v63 = vunpack.c.h.bf16 %v17_v36 }
  0x29   :  { %v379_v24 = vcombine.low %v371_v13, %v378_v17  ;;  %v28_v60 = vunpack.c.l.bf16 %v1507_v1  ;;  %v600_v8 = vmul.f32 %v328_v40, %v24_v38  ;;  %v1529_v29 = vcombine.low %v139_v39, %v143_v61 }
  0x2a   :  { %v1531_v30 = vcombine.low %v147_v16, %v151_v42  ;;  %v601_v31 = vmul.f32 %v345_v18, %v25_v14  ;;  %v396_v32 = vcombine.low %v388_v21, %v395_v23  ;;  %v602_v33 = vmul.f32 %v362_v20, %v26_v19 }
  0x2b   :  { %v632_v34 = vcombine.high %v600_v8, %v600_v8  ;;  %v768_v51 = vcombine.high %v608_v57, %v608_v57  ;;  %v603_v26 = vmul.f32 %v379_v24, %v27_v63  ;;  %v1534_v58 = vrot.slane %v608_v57, %v1324_v41 }
  0x2c   :  { %v785_v59 = vcombine.high %v609_v52, %v609_v52  ;;  %v1537_v47 = vrot.slane %v609_v52, %v1324_v41  ;;  %v639_v55 = vrot.slane %v600_v8, %v1324_v41  ;;  %v802_v45 = vcombine.high %v610_v54, %v610_v54 }
  0x2d   :  { %1897 = vst [vmem:[#allocation3_spill] sm:$0xff] %v1534_v58  ;;  %v1541_v15 = vrot.slane %v768_v51, %v1324_v41  ;;  %v1544_v48 = vrot.slane %v610_v54, %v1324_v41  ;;  %v649_v43 = vcombine.high %v601_v31, %v601_v31  ;;  %v656_v3 = vrot.slane %v601_v31, %v1324_v41 }
  0x2e   :  { %v1548_v44 = vrot.slane %v785_v59, %v1324_v41  ;;  %v819_v57 = vcombine.high %v611_v56, %v611_v56  ;;  %v646_v22 = vrot.slane %v632_v34, %v1324_v41  ;;  %v666_v52 = vcombine.high %v602_v33, %v602_v33 }
  0x2f   :  { %v1552_v49 = vrot.slane %v802_v45, %v1324_v41  ;;  %v1555_v0 = vrot.slane %v611_v56, %v1324_v41  ;;  %v673_v35 = vrot.slane %v602_v33, %v1324_v41  ;;  %v836_v50 = vcombine.high %v1464_v2, %v1464_v2 }
  0x30   :  { %v1559_v54 = vrot.slane %v819_v57, %v1324_v41  ;;  %v1565_v36 = vrot.slane %v1464_v2, %v1324_v41  ;;  %v647_v13 = vcombine.high %v639_v55, %v639_v55  ;;  %v683_v17 = vcombine.high %v603_v26, %v603_v26 }
  0x31   :  { %v853_v38 = vcombine.high %v1468_v46, %v1468_v46  ;;  %v1571_v56 = vrot.slane %v1468_v46, %v1324_v41  ;;  %v663_v14 = vrot.slane %v649_v43, %v1324_v41  ;;  %v1575_v39 = vrot.slane %v603_v26, %v1324_v41 }
  0x32   :  { %v1578_v40 = vrot.slane %v836_v50, %v1324_v41  ;;  %v870_v2 = vcombine.high %v1472_v53, %v1472_v53  ;;  %v648_v61 = vcombine.high %v646_v22, %v646_v22  ;;  %v1587_v42 = vrot.slane %v1472_v53, %v1324_v41 }
  0x33   :  { %v1583_v16 = vrot.slane %v853_v38, %v1324_v41  ;;  %v887_v46 = vcombine.high %v1481_v25, %v1481_v25  ;;  %v680_v18 = vrot.slane %v666_v52, %v1324_v41  ;;  %v1597_v20 = vrot.slane %v1481_v25, %v1324_v41 }
  0x34   :  { %v1593_v19 = vrot.slane %v870_v2, %v1324_v41  ;;  %v969_v21 = vsel %vm968_vm0, %v639_v55, 0.0  ;;  %v970_v24 = vsel %vm968_vm0, %v647_v13, 0.0  ;;  %v1610_v31 = vmul.f32 %v396_v32, %v28_v60 }
  0x35   :  { %v1605_v63 = vrot.slane %v887_v46, %v1324_v41  ;;  %v971_v25 = vadd.f32 %v970_v24, %v969_v21  ;;  %v972_v33 = vsel %vm968_vm0, %v646_v22, 0.0  ;;  %v664_v34 = vcombine.high %v656_v3, %v656_v3 }
  0x36   :  { %v681_v51 = vcombine.high %v673_v35, %v673_v35  ;;  %v1614_v26 = vrot.slane %v683_v17, %v1324_v41  ;;  %v974_v59 = vsel %vm968_vm0, %v648_v61, 0.0  ;;  %v665_v55 = vcombine.high %v663_v14, %v663_v14 }
  0x37   :  { %v682_v45 = vcombine.high %v680_v18, %v680_v18  ;;  %v973_v57 = vadd.f32 %v972_v33, %v971_v25  ;;  %v783_v60 = vcombine.high %v1534_v58, %v1534_v58  ;;  %v784_v32 = vcombine.high %v1541_v15, %v1541_v15 }
  0x38   :  { %v800_v22 = vcombine.high %v1537_v47, %v1537_v47  ;;  %v976_v52 = vsel %vm968_vm0, %v656_v3, 0.0  ;;  %v801_v50 = vcombine.high %v1548_v44, %v1548_v44  ;;  %v817_v13 = vcombine.high %v1544_v48, %v1544_v48 }
  0x39   :  { %v818_v17 = vcombine.high %v1552_v49, %v1552_v49  ;;  %v975_v38 = vadd.f32 %v974_v59, %v973_v57  ;;  %v834_v2 = vcombine.high %v1555_v0, %v1555_v0  ;;  %v835_v61 = vcombine.high %v1559_v54, %v1559_v54 }
  0x3a   :  { %v851_v46 = vcombine.high %v1565_v36, %v1565_v36  ;;  %v978_v3 = vsel %vm968_vm0, %v664_v34, 0.0  ;;  %v852_v21 = vcombine.high %v1578_v40, %v1578_v40  ;;  %v868_v24 = vcombine.high %v1571_v56, %v1571_v56 }
  0x3b   :  { %v869_v25 = vcombine.high %v1583_v16, %v1583_v16  ;;  %v977_v33 = vadd.f32 %v976_v52, %v975_v38  ;;  %v885_v59 = vcombine.high %v1587_v42, %v1587_v42  ;;  %v886_v57 = vcombine.high %v1593_v19, %v1593_v19 }
  0x3c   :  { %v902_v43 = vcombine.high %v1597_v20, %v1597_v20  ;;  %v980_v34 = vsel %vm968_vm0, %v663_v14, 0.0  ;;  %v903_v62 = vcombine.high %v1605_v63, %v1605_v63  ;;  %v982_v27 = vsel %vm968_vm0, %v665_v55, 0.0 }
  0x3d   :  { %v979_v23 = vadd.f32 %v978_v3, %v977_v33  ;;  %v984_v28 = vsel %vm968_vm0, %v673_v35, 0.0  ;;  %v986_v52 = vsel %vm968_vm0, %v681_v51, 0.0  ;;  %v988_v38 = vsel %vm968_vm0, %v680_v18, 0.0 }
  0x3e   :  { %v990_v53 = vsel %vm968_vm0, %v682_v45, 0.0  ;;  %v1660_v8 = vsel %vm968_vm0, %v783_v60, 0.0  ;;  %v1664_v14 = vsel %vm968_vm0, %v1541_v15, 0.0  ;;  %v1667_v3 = vsel %vm968_vm0, %v784_v32, 0.0 }
  0x3f   :  { %v981_v58 = vadd.f32 %v980_v34, %v979_v23  ;;  %v1671_v35 = vsel %vm968_vm0, %v1537_v47, 0.0  ;;  %v1674_v51 = vsel %vm968_vm0, %v800_v22, 0.0  ;;  %v1678_v18 = vsel %vm968_vm0, %v1548_v44, 0.0 }
  0x40   :  { %v1681_v23 = vsel %vm968_vm0, %v801_v50, 0.0  ;;  %v1685_v15 = vsel %vm968_vm0, %v1544_v48, 0.0  ;;  %v1688_v45 = vsel %vm968_vm0, %v817_v13, 0.0  ;;  %v1692_v47 = vsel %vm968_vm0, %v1552_v49, 0.0 }
  0x41   :  { %v983_v55 = vadd.f32 %v982_v27, %v981_v58  ;;  %v1695_v60 = vsel %vm968_vm0, %v818_v17, 0.0  ;;  %v1699_v44 = vsel %vm968_vm0, %v1555_v0, 0.0  ;;  %v1702_v32 = vsel %vm968_vm0, %v834_v2, 0.0 }
  0x42   :  { %v1706_v27 = vsel %vm968_vm0, %v1559_v54, 0.0  ;;  %v1709_v58 = vsel %vm968_vm0, %v835_v61, 0.0  ;;  %v1713_v49 = vsel %vm968_vm0, %v1565_v36, 0.0  ;;  %v1716_v22 = vsel %vm968_vm0, %v851_v46, 0.0 }
  0x43   :  { %v985_v48 = vadd.f32 %v984_v28, %v983_v55  ;;  %v1720_v0 = vsel %vm968_vm0, %v1578_v40, 0.0  ;;  %v1723_v50 = vsel %vm968_vm0, %v852_v21, 0.0  ;;  %v1727_v54 = vsel %vm968_vm0, %v1571_v56, 0.0 }
  0x44   :  { %v1730_v28 = vsel %vm968_vm0, %v868_v24, 0.0  ;;  %v1734_v36 = vsel %vm968_vm0, %v1583_v16, 0.0  ;;  %v1737_v17 = vsel %vm968_vm0, %v869_v25, 0.0  ;;  %v1741_v40 = vsel %vm968_vm0, %v1587_v42, 0.0 }
  0x45   :  { %v987_v13 = vadd.f32 %v986_v52, %v985_v48  ;;  %v1744_v2 = vsel %vm968_vm0, %v885_v59, 0.0  ;;  %v1748_v56 = vsel %vm968_vm0, %v1593_v19, 0.0  ;;  %v1751_v61 = vsel %vm968_vm0, %v886_v57, 0.0 }
  0x46   :  { %v1755_v16 = vsel %vm968_vm0, %v1597_v20, 0.0  ;;  %v1758_v46 = vsel %vm968_vm0, %v902_v43, 0.0  ;;  %v1762_v42 = vsel %vm968_vm0, %v1605_v63, 0.0  ;;  %v1765_v24 = vsel %vm968_vm0, %v903_v62, 0.0 }
  0x47   :  { %v989_v21 = vadd.f32 %v988_v38, %v987_v13  ;;  %v29_v19 = vunpack.c.h.bf16 %v1507_v1  ;;  %v992_v25 = vsel %vm968_vm0, %v1575_v39, 0.0  ;;  %v1898_v20 = vrot.slane %v1531_v30, %v1324_v41 }
  0x48   :  { %v1899_v43 = vrot.slane %v1529_v29, %v1324_v41  ;;  %v1900_v59 = vrot.slane %v1512_v37, %v1149_v5  ;;  %v1901_v63 = vrot.slane %v1512_v37, %v1146_v4  ;;  %v1902_v1 = vrot.slane %v1512_v37, %v1155_v7 }
  0x49   :  { %v1903_v57 = vrot.slane %v1512_v37, %v1152_v6  ;;  %v991_v52 = vadd.f32 %v990_v53, %v989_v21  ;;  %v699_v30 = vcombine.high %v1614_v26, %v1614_v26  ;;  %v700_v29 = vcombine.high %v1610_v31, %v1610_v31 }
  0x4a   :  { %v413_v33 = vcombine.low %v1899_v43, %v1898_v20  ;;  %v414_v62 = vcombine.low %v1901_v63, %v1900_v59  ;;  %v707_v5 = vrot.slane %v1610_v31, %v1324_v41  ;;  %v1904_v4 = vcombine.high %v1575_v39, %v1575_v39  ;;  %v19_v31 = vld [vmem:[%s1877_s0 + $0x18] sm:$0xff] }
  0x4b   :  { %v415_v34 = vcombine.low %v1903_v57, %v1902_v1  ;;  %v993_v7 = vadd.f32 %v992_v25, %v991_v52  ;;  %v171_v6 = vrot.slane %v1512_v37, %v1163_v9  ;;  %v175_v53 = vrot.slane %v1512_v37, %v1166_v10 }
  0x4c   :  { %v994_v38 = vsel %vm968_vm0, %v1904_v4, 0.0  ;;  %v179_v55 = vrot.slane %v1512_v37, %v1169_v11  ;;  %v996_v48 = vsel %vm968_vm0, %v1614_v26, 0.0  ;;  %v183_v39 = vrot.slane %v1512_v37, %v1172_v12 }
  0x4d   :  { %v422_v13 = vrot.slane %v414_v62, %v1324_v41  ;;  %v429_v9 = vrot.slane %v415_v34, %v1324_v41  ;;  %v995_v21 = vadd.f32 %v994_v38, %v993_v7  ;;  %v605_v25 = vmul.f32 %v413_v33, %v29_v19 }
  0x4e   :  { %v714_v10 = vrot.slane %v700_v29, %v1324_v41  ;;  %v715_v20 = vcombine.high %v707_v5, %v707_v5  ;;  %v998_v11 = vsel %vm968_vm0, %v699_v30, 0.0  ;;  %v30_v26 = vunpack.c.l.bf16 %v19_v31 }
  0x4f   :  { %v997_v43 = vadd.f32 %v996_v48, %v995_v21  ;;  %v1000_v59 = vsel %vm968_vm0, %v707_v5, 0.0  ;;  %v430_v63 = vcombine.low %v422_v13, %v429_v9  ;;  %v431_v1 = vcombine.low %v171_v6, %v175_v53 }
  0x50   :  { %v432_v57 = vcombine.low %v179_v55, %v183_v39  ;;  %v716_v12 = vcombine.high %v714_v10, %v714_v10  ;;  %v717_v37 = vcombine.high %v605_v25, %v605_v25  ;;  %v724_v62 = vrot.slane %v605_v25, %v1324_v41 }
  0x51   :  { %v999_v52 = vadd.f32 %v998_v11, %v997_v43  ;;  %v1002_v34 = vsel %vm968_vm0, %v715_v20, 0.0  ;;  %v1004_v33 = vsel %vm968_vm0, %v714_v10, 0.0  ;;  %v439_v29 = vrot.slane %v431_v1, %v1324_v41 }
  0x52   :  { %v446_v30 = vrot.slane %v432_v57, %v1324_v41  ;;  %v606_v38 = vmul.f32 %v430_v63, %v30_v26  ;;  %v731_v5 = vrot.slane %v717_v37, %v1324_v41  ;;  %v732_v7 = vcombine.high %v724_v62, %v724_v62 }
  0x53   :  { %v1001_v19 = vadd.f32 %v1000_v59, %v999_v52  ;;  %v1006_v6 = vsel %vm968_vm0, %v716_v12, 0.0  ;;  %v1008_v55 = vsel %vm968_vm0, %v724_v62, 0.0  ;;  %v31_v48 = vunpack.c.h.bf16 %v19_v31 }
  0x54   :  { %v447_v39 = vcombine.low %v439_v29, %v446_v30  ;;  %v733_v9 = vcombine.high %v731_v5, %v731_v5  ;;  %v734_v21 = vcombine.high %v606_v38, %v606_v38  ;;  %v741_v25 = vrot.slane %v606_v38, %v1324_v41 }
  0x55   :  { %v1003_v4 = vadd.f32 %v1002_v34, %v1001_v19  ;;  %v1010_v10 = vsel %vm968_vm0, %v732_v7, 0.0  ;;  %v1012_v11 = vsel %vm968_vm0, %v731_v5, 0.0 }
  0x56   :  { %v607_v26 = vmul.f32 %v447_v39, %v31_v48  ;;  %v748_v59 = vrot.slane %v734_v21, %v1324_v41  ;;  %v749_v63 = vcombine.high %v741_v25, %v741_v25  ;;  %v1014_v1 = vsel %vm968_vm0, %v733_v9, 0.0 }
  0x57   :  { %v1005_v53 = vadd.f32 %v1004_v33, %v1003_v4  ;;  %v1016_v31 = vsel %vm968_vm0, %v741_v25, 0.0  ;;  %v1905_v25 = vld [vmem:[#allocation3_spill] sm:$0xff] }
  0x58   :  { %v750_v12 = vcombine.high %v748_v59, %v748_v59  ;;  %v751_v37 = vcombine.high %v607_v26, %v607_v26  ;;  %v758_v62 = vrot.slane %v607_v26, %v1324_v41  ;;  %v1018_v34 = vsel %vm968_vm0, %v749_v63, 0.0 }
  0x59   :  { %v1007_v13 = vadd.f32 %v1006_v6, %v1005_v53  ;;  %v1020_v33 = vsel %vm968_vm0, %v748_v59, 0.0 }
  0x5a   :  { %v765_v30 = vrot.slane %v751_v37, %v1324_v41  ;;  %v766_v4 = vcombine.high %v758_v62, %v758_v62  ;;  %v1022_v38 = vsel %vm968_vm0, %v750_v12, 0.0  ;;  %v1024_v7 = vsel %vm968_vm0, %v758_v62, 0.0 }
  0x5b   :  { %v1009_v20 = vadd.f32 %v1008_v55, %v1007_v13  ;;  %v1032_v41 = vsel %vm968_vm0, %v1905_v25, 0.0 }
  0x5c   :  { %v767_v53 = vcombine.high %v765_v30, %v765_v30  ;;  %v1026_v55 = vsel %vm968_vm0, %v766_v4, 0.0  ;;  %v1028_v39 = vsel %vm968_vm0, %v765_v30, 0.0 }
  0x5d   :  { %v1011_v43 = vadd.f32 %v1010_v10, %v1009_v20 }
  0x5e   :  { %v1030_v9 = vsel %vm968_vm0, %v767_v53, 0.0 }
  0x5f   :  { %v1013_v57 = vadd.f32 %v1012_v11, %v1011_v43 }
  0x61   :  { %v1015_v52 = vadd.f32 %v1014_v1, %v1013_v57 }
  0x63   :  { %v1017_v19 = vadd.f32 %v1016_v31, %v1015_v52 }
  0x65   :  { %v1019_v29 = vadd.f32 %v1018_v34, %v1017_v19 }
  0x67   :  { %v1021_v5 = vadd.f32 %v1020_v33, %v1019_v29 }
  0x69   :  { %v1023_v6 = vadd.f32 %v1022_v38, %v1021_v5 }
  0x6b   :  { %v1025_v48 = vadd.f32 %v1024_v7, %v1023_v6 }
  0x6d   :  { %v1027_v13 = vadd.f32 %v1026_v55, %v1025_v48 }
  0x6f   :  { %v1029_v21 = vadd.f32 %v1028_v39, %v1027_v13 }
  0x71   :  { %v1031_v10 = vadd.f32 %v1030_v9, %v1029_v21 }
  0x73   :  { %v1033_v20 = vadd.f32 %v1032_v41, %v1031_v10 }
  0x75   :  { %v1035_v11 = vadd.f32 %v1660_v8, %v1033_v20 }
  0x77   :  { %v1037_v43 = vadd.f32 %v1664_v14, %v1035_v11 }
  0x79   :  { %v1039_v26 = vadd.f32 %v1667_v3, %v1037_v43 }
  0x7b   :  { %v1041_v59 = vadd.f32 %v1671_v35, %v1039_v26 }
  0x7d   :  { %v1043_v63 = vadd.f32 %v1674_v51, %v1041_v59 }
  0x7f   :  { %v1045_v1 = vadd.f32 %v1678_v18, %v1043_v63 }
  0x81   :  { %v1047_v57 = vadd.f32 %v1681_v23, %v1045_v1 }
  0x83   :  { %v1049_v31 = vadd.f32 %v1685_v15, %v1047_v57 }
  0x85   :  { %v1051_v52 = vadd.f32 %v1688_v45, %v1049_v31 }
  0x87   :  { %v1053_v12 = vadd.f32 %v1692_v47, %v1051_v52 }
  0x89   :  { %v1055_v8 = vadd.f32 %v1695_v60, %v1053_v12 }
  0x8b   :  { %v1057_v14 = vadd.f32 %v1699_v44, %v1055_v8 }
  0x8d   :  { %v1059_v3 = vadd.f32 %v1702_v32, %v1057_v14 }
  0x8f   :  { %v1061_v35 = vadd.f32 %v1706_v27, %v1059_v3 }
  0x91   :  { %v1063_v51 = vadd.f32 %v1709_v58, %v1061_v35 }
  0x93   :  { %v1065_v18 = vadd.f32 %v1713_v49, %v1063_v51 }
  0x95   :  { %v1067_v23 = vadd.f32 %v1716_v22, %v1065_v18 }
  0x97   :  { %v1069_v15 = vadd.f32 %v1720_v0, %v1067_v23 }
  0x99   :  { %v1071_v45 = vadd.f32 %v1723_v50, %v1069_v15 }
  0x9b   :  { %v1073_v47 = vadd.f32 %v1727_v54, %v1071_v45 }
  0x9d   :  { %v1075_v60 = vadd.f32 %v1730_v28, %v1073_v47 }
  0x9f   :  { %v1077_v44 = vadd.f32 %v1734_v36, %v1075_v60  ;;  %v1112_v36 = vld [vmem:[#allocation2] ss:$0 sm:$0xff] }
  0xa1   :  { %v1079_v32 = vadd.f32 %v1737_v17, %v1077_v44 }
  0xa3   :  { %v1081_v27 = vadd.f32 %v1741_v40, %v1079_v32 }
  0xa5   :  { %v1083_v58 = vadd.f32 %v1744_v2, %v1081_v27 }
  0xa7   :  { %v1085_v49 = vadd.f32 %v1748_v56, %v1083_v58 }
  0xa9   :  { %v1087_v22 = vadd.f32 %v1751_v61, %v1085_v49 }
  0xab   :  { %v1089_v0 = vadd.f32 %v1755_v16, %v1087_v22 }
  0xad   :  { %v1091_v50 = vadd.f32 %v1758_v46, %v1089_v0 }
  0xaf   :  { %v1093_v54 = vadd.f32 %v1762_v42, %v1091_v50 }
  0xb1   :  { %v1095_v28 = vadd.f32 %v1765_v24, %v1093_v54 }
  0xb3   :  { %1096 = vadd.xlane.f32.xlu0 %v1095_v28 }
 0x140   :  { %v1097_v37 = vpop.xlane.xlu0 %1096 }
 0x141   :  { %v1105_v17 = vadd.f32 %v1112_v36, %v1097_v37 }
 0x143   :  { %1107 = vst.msk [vmem:[%s1878_s3] sm:$0x3] %vm1106_vm1, %v1105_v17 }

</bundles_post_ra>
